<compile_context>
chip_gen: v7x
topology: tpu7x:2x2x1
jax: 0.10.0
libtpu: 0.0.40
codegen_flags: <defaults>
</compile_context>

<pallas_src>
import jax
import jax.numpy as jnp
from jax.experimental import pallas as pl
from jax.experimental.pallas import tpu as pltpu

BN_EPS = 1e-5
# Explicit scoped-VMEM budget: comfortably below v7x's 64 MiB physical VMEM
# (and the 128 MiB of v5e/v6e) while lifting the 16 MiB v5e scoped default.
_VMEM_LIMIT_BYTES = 32 * 1024 * 1024


# ---------------------------------------------------------------------------
# Shared in-kernel helpers
# ---------------------------------------------------------------------------
def _prelu(y, alpha):
    return jnp.where(y > 0, y, alpha * y)


def _conv3x3_from_field(xfield, w_ref):
    """3x3 conv (stride=1, pad=1, no bias) of one row tile as one MXU dot.

    xfield: (1, TH+2, W, Cin) rows [r-1, r+TH] of the zero-padded input
            (halo rows already zeroed at image boundaries by the caller).
    w_ref : (9*Cin, Cout) weights with (dx-major, dy, cin-minor) row order.
    Returns (TH*W, Cout) f32 raw conv output.
    """
    _, thp2, w_len, cin = xfield.shape
    th = thp2 - 2
    # W halo: two in-register zero columns (activations are stored unpadded).
    # TODO(synk): pre-padding W in HBM would remove this one concat as well.
    zcol = jnp.zeros((1, thp2, 1, cin), jnp.float32)
    xf = jnp.concatenate([zcol, xfield, zcol], axis=2)       # (1, TH+2, W+2, Cin)
    # dy shifts: stack the three row-shifted views along the channel axis.
    x3 = jnp.concatenate(
        [xf[:, 0:th], xf[:, 1:th + 1], xf[:, 2:th + 2]], axis=-1
    )                                                         # (1, TH, W+2, 3Cin)
    # dx shifts: stack the three column-shifted views along the channel axis.
    slab = jnp.concatenate(
        [x3[:, :, 0:w_len], x3[:, :, 1:w_len + 1], x3[:, :, 2:w_len + 2]],
        axis=-1,
    )                                                         # (1, TH, W, 9Cin)
    slab = slab.reshape(th * w_len, 9 * cin)
    return jnp.dot(slab, w_ref[...], preferred_element_type=jnp.float32)


def _emit_conv_outputs(acc, acc_ref, stats_ref):
    """Store raw conv output + per-tile per-channel [sum | sumsq] BN partials."""
    _, th, w_len, cout = acc_ref.shape
    acc_ref[...] = acc.reshape(1, th, w_len, cout)
    s = jnp.sum(acc, axis=0, keepdims=True)                   # (1, Cout)
    ss = jnp.sum(acc * acc, axis=0, keepdims=True)            # (1, Cout)
    stats_ref[...] = jnp.concatenate([s, ss], axis=1).reshape(1, 1, 1, 2 * cout)


# ---------------------------------------------------------------------------
# Pass 1 kernels: conv3x3 (+ optional fused BN1+PReLU pre-normalization)
# ---------------------------------------------------------------------------
def _conv1_kernel(xt_ref, xm_ref, xb_ref, w_ref, acc_ref, stats_ref):
    # xt_ref/xb_ref: (1, 1, W, Cin) halo rows; xm_ref: (1, TH, W, Cin) main rows.
    i = pl.program_id(1)
    not_first = (i > 0).astype(jnp.float32)
    not_last = (i < pl.num_programs(1) - 1).astype(jnp.float32)
    top = xt_ref[...] * not_first          # zero-pad row above the image
    bot = xb_ref[...] * not_last           # zero-pad row below the image
    xfield = jnp.concatenate([top, xm_ref[...], bot], axis=1)
    acc = _conv3x3_from_field(xfield, w_ref)
    _emit_conv_outputs(acc, acc_ref, stats_ref)


def _conv2_fused_kernel(at_ref, am_ref, ab_ref, w_ref, scale_ref, shift_ref,
                        alpha_ref, acc_ref, stats_ref):
    # Same as _conv1_kernel but the input tiles are the RAW conv1 output; BN1
    # (folded into scale/shift) + PReLU are applied in-register before the conv.
    i = pl.program_id(1)
    cin = am_ref.shape[-1]
    scale = scale_ref[...].reshape(1, 1, 1, cin)
    shift = shift_ref[...].reshape(1, 1, 1, cin)
    alpha = alpha_ref[...].reshape(1, 1, 1, cin)

    def prenorm(v):                        # BN1 as one FMA, then PReLU
        return _prelu(v * scale + shift, alpha)

    top = prenorm(at_ref[...])
    main = prenorm(am_ref[...])
    bot = prenorm(ab_ref[...])
    # conv2's zero padding pads the *normalized* activation -> zero AFTER prenorm.
    not_first = (i > 0).astype(jnp.float32)
    not_last = (i < pl.num_programs(1) - 1).astype(jnp.float32)
    top = top * not_first
    bot = bot * not_last
    xfield = jnp.concatenate([top, main, bot], axis=1)
    acc = _conv3x3_from_field(xfield, w_ref)
    _emit_conv_outputs(acc, acc_ref, stats_ref)


def _conv3x3_pass1(x, wmat, tile_h, prenorm=None):
    """x: (N, H, W, Cin) unpadded NHWC activation; wmat: (9*Cin, Cout).

    prenorm: None, or (scale, shift, alpha) each (1, Cin) to fuse BN+PReLU of
    the *input* into this pass (used for conv2, consuming conv1's raw output).
    Returns (acc, stats): acc (N, H, W, Cout) raw conv output; stats
    (N, n_h, 1, 2*Cout) per-tile [sum | sumsq] partials.
    """
    n, h, w_len, cin = x.shape
    cout = wmat.shape[1]
    assert h % tile_h == 0
    n_h = h // tile_h

    def top_map(b, i):   # single halo row just above the main block (clamped)
        return (b, jnp.maximum(i * tile_h - 1, 0), 0, 0)

    def main_map(b, i):
        return (b, i, 0, 0)

    def bot_map(b, i):   # single halo row just below the main block (clamped)
        return (b, jnp.minimum(i * tile_h + tile_h, h - 1), 0, 0)

    halo_spec = lambda imap: pl.BlockSpec((1, 1, w_len, cin), imap)
    in_specs = [
        halo_spec(top_map),
        pl.BlockSpec((1, tile_h, w_len, cin), main_map),
        halo_spec(bot_map),
        pl.BlockSpec((9 * cin, cout), lambda b, i: (0, 0)),   # weights resident
    ]
    args = [x, x, x, wmat]
    kernel = _conv1_kernel
    if prenorm is not None:
        scale, shift, alpha = prenorm
        vec = pl.BlockSpec((1, cin), lambda b, i: (0, 0))
        in_specs += [vec, vec, vec]
        args += [scale, shift, alpha]
        kernel = _conv2_fused_kernel

    out_specs = (
        pl.BlockSpec((1, tile_h, w_len, cout), lambda b, i: (b, i, 0, 0)),
        pl.BlockSpec((1, 1, 1, 2 * cout), lambda b, i: (b, i, 0, 0)),
    )
    out_shape = (
        jax.ShapeDtypeStruct((n, h, w_len, cout), jnp.float32),
        jax.ShapeDtypeStruct((n, n_h, 1, 2 * cout), jnp.float32),
    )
    return pl.pallas_call(
        kernel,
        grid=(n, n_h),
        in_specs=in_specs,
        out_specs=out_specs,
        out_shape=out_shape,
        compiler_params=pltpu.CompilerParams(
            dimension_semantics=("parallel", "parallel"),
            vmem_limit_bytes=_VMEM_LIMIT_BYTES),
    )(*args)


# ---------------------------------------------------------------------------
# Fold per-tile partials into per-channel BN scale/shift (tiny XLA op).
# ---------------------------------------------------------------------------
def _bn_affine(stats, count, gamma, beta):
    # stats: (N, n_h, 1, 2*C) partial [sum | sumsq]; biased var (training BN).
    # TODO(synk): one-pass variance (E[x^2]-E[x]^2, clamped) can lose precision
    # vs a two-pass mean-then-variance for ill-conditioned activations.
    c = stats.shape[-1] // 2
    s = jnp.sum(stats[..., :c], axis=(0, 1, 2))
    ss = jnp.sum(stats[..., c:], axis=(0, 1, 2))
    mean = s / count
    var = jnp.maximum(ss / count - mean * mean, 0.0)
    inv = jax.lax.rsqrt(var + BN_EPS)
    scale = gamma.reshape(-1) * inv
    shift = beta.reshape(-1) - mean * scale
    return scale.reshape(1, -1), shift.reshape(1, -1)


# ---------------------------------------------------------------------------
# Pass 2: BN2 + PReLU + identity residual, lane-dense (N, H, W*C) layout.
# ---------------------------------------------------------------------------
def _bn_prelu_residual_kernel(acc_ref, res_ref, scale_ref, shift_ref,
                              alpha_ref, o_ref):
    # acc_ref/res_ref/o_ref: (1, TH, W*C); scale/shift/alpha: (1, W*C) rows.
    scale = scale_ref[...].reshape(1, 1, -1)
    shift = shift_ref[...].reshape(1, 1, -1)
    alpha = alpha_ref[...].reshape(1, 1, -1)
    y = acc_ref[...] * scale + shift               # BN as a single FMA
    y = _prelu(y, alpha)
    o_ref[...] = (y + res_ref[...]).astype(o_ref.dtype)


def _bn_prelu_residual(acc_flat, res_flat, scale_row, shift_row, alpha_row,
                       tile_h):
    n, h, wc = acc_flat.shape
    n_h = h // tile_h
    blk = pl.BlockSpec((1, tile_h, wc), lambda b, i: (b, i, 0))
    vec = pl.BlockSpec((1, wc), lambda b, i: (0, 0))
    return pl.pallas_call(
        _bn_prelu_residual_kernel,
        grid=(n, n_h),
        in_specs=[blk, blk, vec, vec, vec],
        out_specs=blk,
        out_shape=jax.ShapeDtypeStruct((n, h, wc), jnp.float32),
        compiler_params=pltpu.CompilerParams(
            dimension_semantics=("parallel", "parallel"),
            vmem_limit_bytes=_VMEM_LIMIT_BYTES),
    )(acc_flat, res_flat, scale_row, shift_row, alpha_row)


# ---------------------------------------------------------------------------
# Top level
# ---------------------------------------------------------------------------
def _pick_tile_h(h, target=32):
    """Largest divisor of H that is <= target (targets TH*W >= 256 im2col M)."""
    t = min(h, target)
    while h % t != 0:
        t -= 1
    return t


def basic_block_forward(x_nchw, params, tile_h=None):
    """BasicBlock.forward with downsample=None (identity residual)."""
    # TODO(synk): arbitrary `downsample` sub-modules are not translated; this
    # config uses downsample=None (identity), requiring in_channel == out_channel.
    x = jnp.transpose(x_nchw, (0, 2, 3, 1)).astype(jnp.float32)   # NCHW -> NHWC
    n, h, w_len, cin = x.shape
    cout = params["w1"].shape[-1]
    assert cin == cout, "identity residual requires in_channel == out_channel"
    if tile_h is None or h % tile_h != 0:
        tile_h = _pick_tile_h(h)
    count = float(n * h * w_len)

    # (kh=dy, kw=dx, Cin, Cout) -> (dx, dy, cin)-major flattened (9*Cin, Cout),
    # matching the in-kernel slab column order (dx-major, dy, cin-minor).
    w1m = jnp.transpose(params["w1"], (1, 0, 2, 3)).reshape(9 * cin, cout)
    w2m = jnp.transpose(params["w2"], (1, 0, 2, 3)).reshape(9 * cout, cout)
    # nn.PReLU() default: ONE shared slope used by both activations; broadcast
    # per channel for lane-friendly application.
    # TODO(synk): nn.PReLU(num_parameters=C) would need a real (1, C) alpha here.
    alpha = jnp.broadcast_to(params["alpha"].reshape(1, 1), (1, cout))

    # conv1: raw conv output + BN1 per-tile stats (no padded copies, no residual).
    acc1, stats1 = _conv3x3_pass1(x, w1m, tile_h)
    scale1, shift1 = _bn_affine(stats1, count, params["gamma1"], params["beta1"])

    # conv2 with BN1 + PReLU fused into its pass 1 (no HBM intermediate).
    acc2, stats2 = _conv3x3_pass1(acc1, w2m, tile_h,
                                  prenorm=(scale1, shift1, alpha))
    scale2, shift2 = _bn_affine(stats2, count, params["gamma2"], params["beta2"])

    # BN2 + PReLU + identity residual on a lane-dense (N, H, W*C) view.
    wc = w_len * cout
    scale_row = jnp.tile(scale2, (1, w_len))       # channel-minor -> per-lane row
    shift_row = jnp.tile(shift2, (1, w_len))
    alpha_row = jnp.tile(alpha, (1, w_len))
    out = _bn_prelu_residual(acc2.reshape(n, h, wc), x.reshape(n, h, wc),
                             scale_row, shift_row, alpha_row, tile_h)
    out = out.reshape(n, h, w_len, cout)
    return jnp.transpose(out, (0, 3, 1, 2))                       # NHWC -> NCHW


def init_params(key, cin, cout):
    k1, k2 = jax.random.split(key)
    # Conv weights stored as (kh, kw, Cin, Cout); a PyTorch (Cout, Cin, kh, kw)
    # weight maps here via w.transpose(2, 3, 1, 0).
    w1 = 0.1 * jax.random.normal(k1, (3, 3, cin, cout), jnp.float32)
    w2 = 0.1 * jax.random.normal(k2, (3, 3, cout, cout), jnp.float32)
    return dict(
        w1=w1, w2=w2,
        gamma1=jnp.ones((1, cout), jnp.float32),
        beta1=jnp.zeros((1, cout), jnp.float32),
        gamma2=jnp.ones((1, cout), jnp.float32),
        beta2=jnp.zeros((1, cout), jnp.float32),
        alpha=jnp.full((1, 1), 0.25, jnp.float32),   # nn.PReLU default init
    )


if __name__ == "__main__":
    key = jax.random.PRNGKey(0)
    kx, kp = jax.random.split(key)

    # Small shapes: batch=2, in_channel=out_channel=4, spatial=16 (NCHW).
    x = jax.random.normal(kx, (2, 4, 16, 16), jnp.float32)
    params = init_params(kp, 4, 4)

    out = jax.jit(basic_block_forward)(x, params)
    jax.block_until_ready(out)
    assert out.shape == (2, 4, 16, 16) and out.dtype == jnp.float32
    print("KERNEL_OK")
</pallas_src>

<mosaic_0001>
module attributes {stable_mosaic.version = 11 : i64} {
  func.func @_conv1_kernel(%arg0: i32, %arg1: i32, %arg2: memref<1x1x16x4xf32, #tpu.memory_space<vmem>>, %arg3: memref<1x16x16x4xf32, #tpu.memory_space<vmem>>, %arg4: memref<1x1x16x4xf32, #tpu.memory_space<vmem>>, %arg5: memref<36x4xf32, #tpu.memory_space<vmem>>, %arg6: memref<1x16x16x4xf32, #tpu.memory_space<vmem>>, %arg7: memref<1x1x1x8xf32, #tpu.memory_space<vmem>>) attributes {dimension_semantics = [#tpu.dimension_semantics<parallel>, #tpu.dimension_semantics<parallel>], iteration_bounds = array<i64: 2, 1>, scalar_prefetch = 0 : i64, scratch_operands = 0 : i64, tpu.core_type = #tpu.core_type<tc>, window_params = [{transform_indices = @transform_0, window_bounds = array<i64: 1, 1, 16, 4>}, {transform_indices = @transform_1, window_bounds = array<i64: 1, 16, 16, 4>}, {transform_indices = @transform_2, window_bounds = array<i64: 1, 1, 16, 4>}, {pipeline_mode = #tpu.pipeline_mode<synchronous>, transform_indices = @transform_3, window_bounds = array<i64: 36, 4>}, {transform_indices = @transform_4, window_bounds = array<i64: 1, 16, 16, 4>}, {transform_indices = @transform_5, window_bounds = array<i64: 1, 1, 1, 8>}]} {
    %c0_i32 = arith.constant 0 : i32
    %0 = arith.cmpi sgt, %arg1, %c0_i32 : i32
    %1 = arith.extui %0 : i1 to i32
    %2 = arith.sitofp %1 : i32 to f32
    %c0_i32_0 = arith.constant 0 : i32
    %3 = arith.cmpi slt, %arg1, %c0_i32_0 : i32
    %4 = arith.extui %3 : i1 to i32
    %5 = arith.sitofp %4 : i32 to f32
    %c0 = arith.constant 0 : index
    %c0_1 = arith.constant 0 : index
    %c0_2 = arith.constant 0 : index
    %c0_3 = arith.constant 0 : index
    %6 = vector.load %arg2[%c0, %c0_1, %c0_2, %c0_3] : memref<1x1x16x4xf32, #tpu.memory_space<vmem>>, vector<1x1x16x4xf32>
    %7 = vector.broadcast %2 : f32 to vector<1x1x16x4xf32>
    %8 = arith.mulf %6, %7 : vector<1x1x16x4xf32>
    %c0_4 = arith.constant 0 : index
    %c0_5 = arith.constant 0 : index
    %c0_6 = arith.constant 0 : index
    %c0_7 = arith.constant 0 : index
    %9 = vector.load %arg4[%c0_4, %c0_5, %c0_6, %c0_7] : memref<1x1x16x4xf32, #tpu.memory_space<vmem>>, vector<1x1x16x4xf32>
    %10 = vector.broadcast %5 : f32 to vector<1x1x16x4xf32>
    %11 = arith.mulf %9, %10 : vector<1x1x16x4xf32>
    %c0_8 = arith.constant 0 : index
    %c0_9 = arith.constant 0 : index
    %c0_10 = arith.constant 0 : index
    %c0_11 = arith.constant 0 : index
    %12 = vector.load %arg3[%c0_8, %c0_9, %c0_10, %c0_11] : memref<1x16x16x4xf32, #tpu.memory_space<vmem>>, vector<1x16x16x4xf32>
    %13 = tpu.concatenate %8, %12, %11 in 1 : vector<1x1x16x4xf32>, vector<1x16x16x4xf32>, vector<1x1x16x4xf32> -> vector<1x18x16x4xf32>
    %cst = arith.constant 0.000000e+00 : f32
    %14 = vector.broadcast %cst : f32 to vector<1x18x1x4xf32>
    %15 = tpu.concatenate %14, %13, %14 in 2 : vector<1x18x1x4xf32>, vector<1x18x16x4xf32>, vector<1x18x1x4xf32> -> vector<1x18x18x4xf32>
    %16 = vector.extract_strided_slice %15 {offsets = [0, 0, 0, 0], sizes = [1, 16, 18, 4], strides = [1, 1, 1, 1]} : vector<1x18x18x4xf32> to vector<1x16x18x4xf32>
    %17 = vector.extract_strided_slice %15 {offsets = [0, 1, 0, 0], sizes = [1, 16, 18, 4], strides = [1, 1, 1, 1]} : vector<1x18x18x4xf32> to vector<1x16x18x4xf32>
    %18 = vector.extract_strided_slice %15 {offsets = [0, 2, 0, 0], sizes = [1, 16, 18, 4], strides = [1, 1, 1, 1]} : vector<1x18x18x4xf32> to vector<1x16x18x4xf32>
    %19 = tpu.concatenate %16, %17, %18 in 3 : vector<1x16x18x4xf32>, vector<1x16x18x4xf32>, vector<1x16x18x4xf32> -> vector<1x16x18x12xf32>
    %20 = vector.extract_strided_slice %19 {offsets = [0, 0, 0, 0], sizes = [1, 16, 16, 12], strides = [1, 1, 1, 1]} : vector<1x16x18x12xf32> to vector<1x16x16x12xf32>
    %21 = vector.extract_strided_slice %19 {offsets = [0, 0, 1, 0], sizes = [1, 16, 16, 12], strides = [1, 1, 1, 1]} : vector<1x16x18x12xf32> to vector<1x16x16x12xf32>
    %22 = vector.extract_strided_slice %19 {offsets = [0, 0, 2, 0], sizes = [1, 16, 16, 12], strides = [1, 1, 1, 1]} : vector<1x16x18x12xf32> to vector<1x16x16x12xf32>
    %23 = tpu.concatenate %20, %21, %22 in 3 : vector<1x16x16x12xf32>, vector<1x16x16x12xf32>, vector<1x16x16x12xf32> -> vector<1x16x16x36xf32>
    %24 = vector.shape_cast %23 : vector<1x16x16x36xf32> to vector<256x36xf32>
    %c0_12 = arith.constant 0 : index
    %c0_13 = arith.constant 0 : index
    %25 = vector.load %arg5[%c0_12, %c0_13] : memref<36x4xf32, #tpu.memory_space<vmem>>, vector<36x4xf32>
    %cst_14 = arith.constant dense<0.000000e+00> : vector<256x4xf32>
    %26 = tpu.matmul %24, %25, %cst_14 {dimension_numbers = #tpu.dot_dimension_numbers<[1], [0], [0], [1], [0, 0, 1, 1], [], []>} : vector<256x36xf32>, vector<36x4xf32>, vector<256x4xf32> -> vector<256x4xf32>
    %27 = vector.shape_cast %26 : vector<256x4xf32> to vector<1x16x16x4xf32>
    %c0_15 = arith.constant 0 : index
    %c0_16 = arith.constant 0 : index
    %c0_17 = arith.constant 0 : index
    %c0_18 = arith.constant 0 : index
    %28 = vector.load %arg6[%c0_15, %c0_16, %c0_17, %c0_18] : memref<1x16x16x4xf32, #tpu.memory_space<vmem>>, vector<1x16x16x4xf32>
    tpu.vector_store %arg6[%c0_15, %c0_16, %c0_17, %c0_18], %27 {strides = array<i32>} : memref<1x16x16x4xf32, #tpu.memory_space<vmem>>, vector<1x16x16x4xf32>,
    %cst_19 = arith.constant dense<0.000000e+00> : vector<4xf32>
    %29 = vector.multi_reduction <add>, %26, %cst_19 [0] : vector<256x4xf32> to vector<4xf32>
    %30 = vector.shape_cast %29 : vector<4xf32> to vector<1x4xf32>
    %31 = arith.mulf %26, %26 : vector<256x4xf32>
    %cst_20 = arith.constant dense<0.000000e+00> : vector<4xf32>
    %32 = vector.multi_reduction <add>, %31, %cst_20 [0] : vector<256x4xf32> to vector<4xf32>
    %33 = vector.shape_cast %32 : vector<4xf32> to vector<1x4xf32>
    %34 = tpu.concatenate %30, %33 in 1 : vector<1x4xf32>, vector<1x4xf32> -> vector<1x8xf32>
    %35 = vector.shape_cast %34 : vector<1x8xf32> to vector<1x1x1x8xf32>
    %c0_21 = arith.constant 0 : index
    %c0_22 = arith.constant 0 : index
    %c0_23 = arith.constant 0 : index
    %c0_24 = arith.constant 0 : index
    %36 = vector.load %arg7[%c0_21, %c0_22, %c0_23, %c0_24] : memref<1x1x1x8xf32, #tpu.memory_space<vmem>>, vector<1x1x1x8xf32>
    tpu.vector_store %arg7[%c0_21, %c0_22, %c0_23, %c0_24], %35 {strides = array<i32>} : memref<1x1x1x8xf32, #tpu.memory_space<vmem>>, vector<1x1x1x8xf32>,
    return
  }
  func.func @transform_0(%arg0: i32, %arg1: i32) -> (i32, i32, i32, i32) {
    %c16_i32 = arith.constant 16 : i32
    %0 = arith.muli %arg1, %c16_i32 : i32
    %c1_i32 = arith.constant 1 : i32
    %1 = arith.subi %0, %c1_i32 : i32
    %c0_i32 = arith.constant 0 : i32
    %2 = arith.maxsi %1, %c0_i32 : i32
    %c0_i32_0 = arith.constant 0 : i32
    %c0_i32_1 = arith.constant 0 : i32
    %c0_i32_2 = arith.constant 0 : i32
    return %arg0, %2, %c0_i32_0, %c0_i32_1 : i32, i32, i32, i32
  }
  func.func @transform_1(%arg0: i32, %arg1: i32) -> (i32, i32, i32, i32) {
    %c0_i32 = arith.constant 0 : i32
    %c0_i32_0 = arith.constant 0 : i32
    %c0_i32_1 = arith.constant 0 : i32
    return %arg0, %arg1, %c0_i32, %c0_i32_0 : i32, i32, i32, i32
  }
  func.func @transform_2(%arg0: i32, %arg1: i32) -> (i32, i32, i32, i32) {
    %c16_i32 = arith.constant 16 : i32
    %0 = arith.muli %arg1, %c16_i32 : i32
    %c16_i32_0 = arith.constant 16 : i32
    %1 = arith.addi %0, %c16_i32_0 : i32
    %c15_i32 = arith.constant 15 : i32
    %2 = arith.minsi %1, %c15_i32 : i32
    %c0_i32 = arith.constant 0 : i32
    %c0_i32_1 = arith.constant 0 : i32
    %c0_i32_2 = arith.constant 0 : i32
    return %arg0, %2, %c0_i32, %c0_i32_1 : i32, i32, i32, i32
  }
  func.func @transform_3(%arg0: i32, %arg1: i32) -> (i32, i32) {
    %c0_i32 = arith.constant 0 : i32
    %c0_i32_0 = arith.constant 0 : i32
    %c0_i32_1 = arith.constant 0 : i32
    return %c0_i32, %c0_i32_0 : i32, i32
  }
  func.func @transform_4(%arg0: i32, %arg1: i32) -> (i32, i32, i32, i32) {
    %c0_i32 = arith.constant 0 : i32
    %c0_i32_0 = arith.constant 0 : i32
    %c0_i32_1 = arith.constant 0 : i32
    return %arg0, %arg1, %c0_i32, %c0_i32_0 : i32, i32, i32, i32
  }
  func.func @transform_5(%arg0: i32, %arg1: i32) -> (i32, i32, i32, i32) {
    %c0_i32 = arith.constant 0 : i32
    %c0_i32_0 = arith.constant 0 : i32
    %c0_i32_1 = arith.constant 0 : i32
    return %arg0, %arg1, %c0_i32, %c0_i32_0 : i32, i32, i32, i32
  }
}

module attributes {stable_mosaic.version = 11 : i64} {
  func.func @_conv2_fused_kernel(%arg0: i32, %arg1: i32, %arg2: memref<1x1x16x4xf32, #tpu.memory_space<vmem>>, %arg3: memref<1x16x16x4xf32, #tpu.memory_space<vmem>>, %arg4: memref<1x1x16x4xf32, #tpu.memory_space<vmem>>, %arg5: memref<36x4xf32, #tpu.memory_space<vmem>>, %arg6: memref<1x4xf32, #tpu.memory_space<vmem>>, %arg7: memref<1x4xf32, #tpu.memory_space<vmem>>, %arg8: memref<1x4xf32, #tpu.memory_space<vmem>>, %arg9: memref<1x16x16x4xf32, #tpu.memory_space<vmem>>, %arg10: memref<1x1x1x8xf32, #tpu.memory_space<vmem>>) attributes {dimension_semantics = [#tpu.dimension_semantics<parallel>, #tpu.dimension_semantics<parallel>], iteration_bounds = array<i64: 2, 1>, scalar_prefetch = 0 : i64, scratch_operands = 0 : i64, tpu.core_type = #tpu.core_type<tc>, window_params = [{transform_indices = @transform_0, window_bounds = array<i64: 1, 1, 16, 4>}, {transform_indices = @transform_1, window_bounds = array<i64: 1, 16, 16, 4>}, {transform_indices = @transform_2, window_bounds = array<i64: 1, 1, 16, 4>}, {pipeline_mode = #tpu.pipeline_mode<synchronous>, transform_indices = @transform_3, window_bounds = array<i64: 36, 4>}, {pipeline_mode = #tpu.pipeline_mode<synchronous>, transform_indices = @transform_4, window_bounds = array<i64: 1, 4>}, {pipeline_mode = #tpu.pipeline_mode<synchronous>, transform_indices = @transform_5, window_bounds = array<i64: 1, 4>}, {pipeline_mode = #tpu.pipeline_mode<synchronous>, transform_indices = @transform_6, window_bounds = array<i64: 1, 4>}, {transform_indices = @transform_7, window_bounds = array<i64: 1, 16, 16, 4>}, {transform_indices = @transform_8, window_bounds = array<i64: 1, 1, 1, 8>}]} {
    %c0 = arith.constant 0 : index
    %c0_0 = arith.constant 0 : index
    %0 = vector.load %arg6[%c0, %c0_0] : memref<1x4xf32, #tpu.memory_space<vmem>>, vector<1x4xf32>
    %1 = vector.shape_cast %0 : vector<1x4xf32> to vector<1x1x1x4xf32>
    %c0_1 = arith.constant 0 : index
    %c0_2 = arith.constant 0 : index
    %2 = vector.load %arg7[%c0_1, %c0_2] : memref<1x4xf32, #tpu.memory_space<vmem>>, vector<1x4xf32>
    %3 = vector.shape_cast %2 : vector<1x4xf32> to vector<1x1x1x4xf32>
    %c0_3 = arith.constant 0 : index
    %c0_4 = arith.constant 0 : index
    %4 = vector.load %arg8[%c0_3, %c0_4] : memref<1x4xf32, #tpu.memory_space<vmem>>, vector<1x4xf32>
    %5 = vector.shape_cast %4 : vector<1x4xf32> to vector<1x1x1x4xf32>
    %c0_5 = arith.constant 0 : index
    %c0_6 = arith.constant 0 : index
    %c0_7 = arith.constant 0 : index
    %c0_8 = arith.constant 0 : index
    %6 = vector.load %arg2[%c0_5, %c0_6, %c0_7, %c0_8] : memref<1x1x16x4xf32, #tpu.memory_space<vmem>>, vector<1x1x16x4xf32>
    %7 = vector.broadcast %1 : vector<1x1x1x4xf32> to vector<1x1x16x4xf32>
    %8 = arith.mulf %6, %7 : vector<1x1x16x4xf32>
    %9 = vector.broadcast %3 : vector<1x1x1x4xf32> to vector<1x1x16x4xf32>
    %10 = arith.addf %8, %9 : vector<1x1x16x4xf32>
    %cst = arith.constant 0.000000e+00 : f32
    %11 = vector.broadcast %cst : f32 to vector<1x1x16x4xf32>
    %12 = arith.cmpf ogt, %10, %11 : vector<1x1x16x4xf32>
    %13 = vector.broadcast %5 : vector<1x1x1x4xf32> to vector<1x1x16x4xf32>
    %14 = arith.mulf %13, %10 : vector<1x1x16x4xf32>
    %15 = arith.select %12, %10, %14 : vector<1x1x16x4xi1>, vector<1x1x16x4xf32>
    %c0_9 = arith.constant 0 : index
    %c0_10 = arith.constant 0 : index
    %c0_11 = arith.constant 0 : index
    %c0_12 = arith.constant 0 : index
    %16 = vector.load %arg3[%c0_9, %c0_10, %c0_11, %c0_12] : memref<1x16x16x4xf32, #tpu.memory_space<vmem>>, vector<1x16x16x4xf32>
    %17 = vector.broadcast %1 : vector<1x1x1x4xf32> to vector<1x16x16x4xf32>
    %18 = arith.mulf %16, %17 : vector<1x16x16x4xf32>
    %19 = vector.broadcast %3 : vector<1x1x1x4xf32> to vector<1x16x16x4xf32>
    %20 = arith.addf %18, %19 : vector<1x16x16x4xf32>
    %cst_13 = arith.constant 0.000000e+00 : f32
    %21 = vector.broadcast %cst_13 : f32 to vector<1x16x16x4xf32>
    %22 = arith.cmpf ogt, %20, %21 : vector<1x16x16x4xf32>
    %23 = vector.broadcast %5 : vector<1x1x1x4xf32> to vector<1x16x16x4xf32>
    %24 = arith.mulf %23, %20 : vector<1x16x16x4xf32>
    %25 = arith.select %22, %20, %24 : vector<1x16x16x4xi1>, vector<1x16x16x4xf32>
    %c0_14 = arith.constant 0 : index
    %c0_15 = arith.constant 0 : index
    %c0_16 = arith.constant 0 : index
    %c0_17 = arith.constant 0 : index
    %26 = vector.load %arg4[%c0_14, %c0_15, %c0_16, %c0_17] : memref<1x1x16x4xf32, #tpu.memory_space<vmem>>, vector<1x1x16x4xf32>
    %27 = vector.broadcast %1 : vector<1x1x1x4xf32> to vector<1x1x16x4xf32>
    %28 = arith.mulf %26, %27 : vector<1x1x16x4xf32>
    %29 = vector.broadcast %3 : vector<1x1x1x4xf32> to vector<1x1x16x4xf32>
    %30 = arith.addf %28, %29 : vector<1x1x16x4xf32>
    %cst_18 = arith.constant 0.000000e+00 : f32
    %31 = vector.broadcast %cst_18 : f32 to vector<1x1x16x4xf32>
    %32 = arith.cmpf ogt, %30, %31 : vector<1x1x16x4xf32>
    %33 = vector.broadcast %5 : vector<1x1x1x4xf32> to vector<1x1x16x4xf32>
    %34 = arith.mulf %33, %30 : vector<1x1x16x4xf32>
    %35 = arith.select %32, %30, %34 : vector<1x1x16x4xi1>, vector<1x1x16x4xf32>
    %c0_i32 = arith.constant 0 : i32
    %36 = arith.cmpi sgt, %arg1, %c0_i32 : i32
    %37 = arith.extui %36 : i1 to i32
    %38 = arith.sitofp %37 : i32 to f32
    %c0_i32_19 = arith.constant 0 : i32
    %39 = arith.cmpi slt, %arg1, %c0_i32_19 : i32
    %40 = arith.extui %39 : i1 to i32
    %41 = arith.sitofp %40 : i32 to f32
    %42 = vector.broadcast %38 : f32 to vector<1x1x16x4xf32>
    %43 = arith.mulf %15, %42 : vector<1x1x16x4xf32>
    %44 = vector.broadcast %41 : f32 to vector<1x1x16x4xf32>
    %45 = arith.mulf %35, %44 : vector<1x1x16x4xf32>
    %46 = tpu.concatenate %43, %25, %45 in 1 : vector<1x1x16x4xf32>, vector<1x16x16x4xf32>, vector<1x1x16x4xf32> -> vector<1x18x16x4xf32>
    %cst_20 = arith.constant 0.000000e+00 : f32
    %47 = vector.broadcast %cst_20 : f32 to vector<1x18x1x4xf32>
    %48 = tpu.concatenate %47, %46, %47 in 2 : vector<1x18x1x4xf32>, vector<1x18x16x4xf32>, vector<1x18x1x4xf32> -> vector<1x18x18x4xf32>
    %49 = vector.extract_strided_slice %48 {offsets = [0, 0, 0, 0], sizes = [1, 16, 18, 4], strides = [1, 1, 1, 1]} : vector<1x18x18x4xf32> to vector<1x16x18x4xf32>
    %50 = vector.extract_strided_slice %48 {offsets = [0, 1, 0, 0], sizes = [1, 16, 18, 4], strides = [1, 1, 1, 1]} : vector<1x18x18x4xf32> to vector<1x16x18x4xf32>
    %51 = vector.extract_strided_slice %48 {offsets = [0, 2, 0, 0], sizes = [1, 16, 18, 4], strides = [1, 1, 1, 1]} : vector<1x18x18x4xf32> to vector<1x16x18x4xf32>
    %52 = tpu.concatenate %49, %50, %51 in 3 : vector<1x16x18x4xf32>, vector<1x16x18x4xf32>, vector<1x16x18x4xf32> -> vector<1x16x18x12xf32>
    %53 = vector.extract_strided_slice %52 {offsets = [0, 0, 0, 0], sizes = [1, 16, 16, 12], strides = [1, 1, 1, 1]} : vector<1x16x18x12xf32> to vector<1x16x16x12xf32>
    %54 = vector.extract_strided_slice %52 {offsets = [0, 0, 1, 0], sizes = [1, 16, 16, 12], strides = [1, 1, 1, 1]} : vector<1x16x18x12xf32> to vector<1x16x16x12xf32>
    %55 = vector.extract_strided_slice %52 {offsets = [0, 0, 2, 0], sizes = [1, 16, 16, 12], strides = [1, 1, 1, 1]} : vector<1x16x18x12xf32> to vector<1x16x16x12xf32>
    %56 = tpu.concatenate %53, %54, %55 in 3 : vector<1x16x16x12xf32>, vector<1x16x16x12xf32>, vector<1x16x16x12xf32> -> vector<1x16x16x36xf32>
    %57 = vector.shape_cast %56 : vector<1x16x16x36xf32> to vector<256x36xf32>
    %c0_21 = arith.constant 0 : index
    %c0_22 = arith.constant 0 : index
    %58 = vector.load %arg5[%c0_21, %c0_22] : memref<36x4xf32, #tpu.memory_space<vmem>>, vector<36x4xf32>
    %cst_23 = arith.constant dense<0.000000e+00> : vector<256x4xf32>
    %59 = tpu.matmul %57, %58, %cst_23 {dimension_numbers = #tpu.dot_dimension_numbers<[1], [0], [0], [1], [0, 0, 1, 1], [], []>} : vector<256x36xf32>, vector<36x4xf32>, vector<256x4xf32> -> vector<256x4xf32>
    %60 = vector.shape_cast %59 : vector<256x4xf32> to vector<1x16x16x4xf32>
    %c0_24 = arith.constant 0 : index
    %c0_25 = arith.constant 0 : index
    %c0_26 = arith.constant 0 : index
    %c0_27 = arith.constant 0 : index
    %61 = vector.load %arg9[%c0_24, %c0_25, %c0_26, %c0_27] : memref<1x16x16x4xf32, #tpu.memory_space<vmem>>, vector<1x16x16x4xf32>
    tpu.vector_store %arg9[%c0_24, %c0_25, %c0_26, %c0_27], %60 {strides = array<i32>} : memref<1x16x16x4xf32, #tpu.memory_space<vmem>>, vector<1x16x16x4xf32>,
    %cst_28 = arith.constant dense<0.000000e+00> : vector<4xf32>
    %62 = vector.multi_reduction <add>, %59, %cst_28 [0] : vector<256x4xf32> to vector<4xf32>
    %63 = vector.shape_cast %62 : vector<4xf32> to vector<1x4xf32>
    %64 = arith.mulf %59, %59 : vector<256x4xf32>
    %cst_29 = arith.constant dense<0.000000e+00> : vector<4xf32>
    %65 = vector.multi_reduction <add>, %64, %cst_29 [0] : vector<256x4xf32> to vector<4xf32>
    %66 = vector.shape_cast %65 : vector<4xf32> to vector<1x4xf32>
    %67 = tpu.concatenate %63, %66 in 1 : vector<1x4xf32>, vector<1x4xf32> -> vector<1x8xf32>
    %68 = vector.shape_cast %67 : vector<1x8xf32> to vector<1x1x1x8xf32>
    %c0_30 = arith.constant 0 : index
    %c0_31 = arith.constant 0 : index
    %c0_32 = arith.constant 0 : index
    %c0_33 = arith.constant 0 : index
    %69 = vector.load %arg10[%c0_30, %c0_31, %c0_32, %c0_33] : memref<1x1x1x8xf32, #tpu.memory_space<vmem>>, vector<1x1x1x8xf32>
    tpu.vector_store %arg10[%c0_30, %c0_31, %c0_32, %c0_33], %68 {strides = array<i32>} : memref<1x1x1x8xf32, #tpu.memory_space<vmem>>, vector<1x1x1x8xf32>,
    return
  }
  func.func @transform_0(%arg0: i32, %arg1: i32) -> (i32, i32, i32, i32) {
    %c16_i32 = arith.constant 16 : i32
    %0 = arith.muli %arg1, %c16_i32 : i32
    %c1_i32 = arith.constant 1 : i32
    %1 = arith.subi %0, %c1_i32 : i32
    %c0_i32 = arith.constant 0 : i32
    %2 = arith.maxsi %1, %c0_i32 : i32
    %c0_i32_0 = arith.constant 0 : i32
    %c0_i32_1 = arith.constant 0 : i32
    %c0_i32_2 = arith.constant 0 : i32
    return %arg0, %2, %c0_i32_0, %c0_i32_1 : i32, i32, i32, i32
  }
  func.func @transform_1(%arg0: i32, %arg1: i32) -> (i32, i32, i32, i32) {
    %c0_i32 = arith.constant 0 : i32
    %c0_i32_0 = arith.constant 0 : i32
    %c0_i32_1 = arith.constant 0 : i32
    return %arg0, %arg1, %c0_i32, %c0_i32_0 : i32, i32, i32, i32
  }
  func.func @transform_2(%arg0: i32, %arg1: i32) -> (i32, i32, i32, i32) {
    %c16_i32 = arith.constant 16 : i32
    %0 = arith.muli %arg1, %c16_i32 : i32
    %c16_i32_0 = arith.constant 16 : i32
    %1 = arith.addi %0, %c16_i32_0 : i32
    %c15_i32 = arith.constant 15 : i32
    %2 = arith.minsi %1, %c15_i32 : i32
    %c0_i32 = arith.constant 0 : i32
    %c0_i32_1 = arith.constant 0 : i32
    %c0_i32_2 = arith.constant 0 : i32
    return %arg0, %2, %c0_i32, %c0_i32_1 : i32, i32, i32, i32
  }
  func.func @transform_3(%arg0: i32, %arg1: i32) -> (i32, i32) {
    %c0_i32 = arith.constant 0 : i32
    %c0_i32_0 = arith.constant 0 : i32
    %c0_i32_1 = arith.constant 0 : i32
    return %c0_i32, %c0_i32_0 : i32, i32
  }
  func.func @transform_4(%arg0: i32, %arg1: i32) -> (i32, i32) {
    %c0_i32 = arith.constant 0 : i32
    %c0_i32_0 = arith.constant 0 : i32
    %c0_i32_1 = arith.constant 0 : i32
    return %c0_i32, %c0_i32_0 : i32, i32
  }
  func.func @transform_5(%arg0: i32, %arg1: i32) -> (i32, i32) {
    %c0_i32 = arith.constant 0 : i32
    %c0_i32_0 = arith.constant 0 : i32
    %c0_i32_1 = arith.constant 0 : i32
    return %c0_i32, %c0_i32_0 : i32, i32
  }
  func.func @transform_6(%arg0: i32, %arg1: i32) -> (i32, i32) {
    %c0_i32 = arith.constant 0 : i32
    %c0_i32_0 = arith.constant 0 : i32
    %c0_i32_1 = arith.constant 0 : i32
    return %c0_i32, %c0_i32_0 : i32, i32
  }
  func.func @transform_7(%arg0: i32, %arg1: i32) -> (i32, i32, i32, i32) {
    %c0_i32 = arith.constant 0 : i32
    %c0_i32_0 = arith.constant 0 : i32
    %c0_i32_1 = arith.constant 0 : i32
    return %arg0, %arg1, %c0_i32, %c0_i32_0 : i32, i32, i32, i32
  }
  func.func @transform_8(%arg0: i32, %arg1: i32) -> (i32, i32, i32, i32) {
    %c0_i32 = arith.constant 0 : i32
    %c0_i32_0 = arith.constant 0 : i32
    %c0_i32_1 = arith.constant 0 : i32
    return %arg0, %arg1, %c0_i32, %c0_i32_0 : i32, i32, i32, i32
  }
}

module attributes {stable_mosaic.version = 11 : i64} {
  func.func @_bn_prelu_residual_kernel(%arg0: i32, %arg1: i32, %arg2: memref<1x16x64xf32, #tpu.memory_space<vmem>>, %arg3: memref<1x16x64xf32, #tpu.memory_space<vmem>>, %arg4: memref<1x64xf32, #tpu.memory_space<vmem>>, %arg5: memref<1x64xf32, #tpu.memory_space<vmem>>, %arg6: memref<1x64xf32, #tpu.memory_space<vmem>>, %arg7: memref<1x16x64xf32, #tpu.memory_space<vmem>>) attributes {dimension_semantics = [#tpu.dimension_semantics<parallel>, #tpu.dimension_semantics<parallel>], iteration_bounds = array<i64: 2, 1>, scalar_prefetch = 0 : i64, scratch_operands = 0 : i64, tpu.core_type = #tpu.core_type<tc>, window_params = [{transform_indices = @transform_0, window_bounds = array<i64: 1, 16, 64>}, {transform_indices = @transform_1, window_bounds = array<i64: 1, 16, 64>}, {pipeline_mode = #tpu.pipeline_mode<synchronous>, transform_indices = @transform_2, window_bounds = array<i64: 1, 64>}, {pipeline_mode = #tpu.pipeline_mode<synchronous>, transform_indices = @transform_3, window_bounds = array<i64: 1, 64>}, {pipeline_mode = #tpu.pipeline_mode<synchronous>, transform_indices = @transform_4, window_bounds = array<i64: 1, 64>}, {transform_indices = @transform_5, window_bounds = array<i64: 1, 16, 64>}]} {
    %c0 = arith.constant 0 : index
    %c0_0 = arith.constant 0 : index
    %0 = vector.load %arg4[%c0, %c0_0] : memref<1x64xf32, #tpu.memory_space<vmem>>, vector<1x64xf32>
    %1 = vector.shape_cast %0 : vector<1x64xf32> to vector<1x1x64xf32>
    %c0_1 = arith.constant 0 : index
    %c0_2 = arith.constant 0 : index
    %2 = vector.load %arg5[%c0_1, %c0_2] : memref<1x64xf32, #tpu.memory_space<vmem>>, vector<1x64xf32>
    %3 = vector.shape_cast %2 : vector<1x64xf32> to vector<1x1x64xf32>
    %c0_3 = arith.constant 0 : index
    %c0_4 = arith.constant 0 : index
    %4 = vector.load %arg6[%c0_3, %c0_4] : memref<1x64xf32, #tpu.memory_space<vmem>>, vector<1x64xf32>
    %5 = vector.shape_cast %4 : vector<1x64xf32> to vector<1x1x64xf32>
    %c0_5 = arith.constant 0 : index
    %c0_6 = arith.constant 0 : index
    %c0_7 = arith.constant 0 : index
    %6 = vector.load %arg2[%c0_5, %c0_6, %c0_7] : memref<1x16x64xf32, #tpu.memory_space<vmem>>, vector<1x16x64xf32>
    %7 = vector.broadcast %1 : vector<1x1x64xf32> to vector<1x16x64xf32>
    %8 = arith.mulf %6, %7 : vector<1x16x64xf32>
    %9 = vector.broadcast %3 : vector<1x1x64xf32> to vector<1x16x64xf32>
    %10 = arith.addf %8, %9 : vector<1x16x64xf32>
    %cst = arith.constant 0.000000e+00 : f32
    %11 = vector.broadcast %cst : f32 to vector<1x16x64xf32>
    %12 = arith.cmpf ogt, %10, %11 : vector<1x16x64xf32>
    %13 = vector.broadcast %5 : vector<1x1x64xf32> to vector<1x16x64xf32>
    %14 = arith.mulf %13, %10 : vector<1x16x64xf32>
    %15 = arith.select %12, %10, %14 : vector<1x16x64xi1>, vector<1x16x64xf32>
    %c0_8 = arith.constant 0 : index
    %c0_9 = arith.constant 0 : index
    %c0_10 = arith.constant 0 : index
    %16 = vector.load %arg3[%c0_8, %c0_9, %c0_10] : memref<1x16x64xf32, #tpu.memory_space<vmem>>, vector<1x16x64xf32>
    %17 = arith.addf %15, %16 : vector<1x16x64xf32>
    %c0_11 = arith.constant 0 : index
    %c0_12 = arith.constant 0 : index
    %c0_13 = arith.constant 0 : index
    %18 = vector.load %arg7[%c0_11, %c0_12, %c0_13] : memref<1x16x64xf32, #tpu.memory_space<vmem>>, vector<1x16x64xf32>
    tpu.vector_store %arg7[%c0_11, %c0_12, %c0_13], %17 {strides = array<i32>} : memref<1x16x64xf32, #tpu.memory_space<vmem>>, vector<1x16x64xf32>,
    return
  }
  func.func @transform_0(%arg0: i32, %arg1: i32) -> (i32, i32, i32) {
    %c0_i32 = arith.constant 0 : i32
    %c0_i32_0 = arith.constant 0 : i32
    return %arg0, %arg1, %c0_i32 : i32, i32, i32
  }
  func.func @transform_1(%arg0: i32, %arg1: i32) -> (i32, i32, i32) {
    %c0_i32 = arith.constant 0 : i32
    %c0_i32_0 = arith.constant 0 : i32
    return %arg0, %arg1, %c0_i32 : i32, i32, i32
  }
  func.func @transform_2(%arg0: i32, %arg1: i32) -> (i32, i32) {
    %c0_i32 = arith.constant 0 : i32
    %c0_i32_0 = arith.constant 0 : i32
    %c0_i32_1 = arith.constant 0 : i32
    return %c0_i32, %c0_i32_0 : i32, i32
  }
  func.func @transform_3(%arg0: i32, %arg1: i32) -> (i32, i32) {
    %c0_i32 = arith.constant 0 : i32
    %c0_i32_0 = arith.constant 0 : i32
    %c0_i32_1 = arith.constant 0 : i32
    return %c0_i32, %c0_i32_0 : i32, i32
  }
  func.func @transform_4(%arg0: i32, %arg1: i32) -> (i32, i32) {
    %c0_i32 = arith.constant 0 : i32
    %c0_i32_0 = arith.constant 0 : i32
    %c0_i32_1 = arith.constant 0 : i32
    return %c0_i32, %c0_i32_0 : i32, i32
  }
  func.func @transform_5(%arg0: i32, %arg1: i32) -> (i32, i32, i32) {
    %c0_i32 = arith.constant 0 : i32
    %c0_i32_0 = arith.constant 0 : i32
    return %arg0, %arg1, %c0_i32 : i32, i32, i32
  }
}

</mosaic_0001>

<bundles_post_ra>
// kernel: basic_block_forward.5
= control target key start
LH: loop header
LB: loop body
LE: loop exit
PB: predicated region body
PF: predicated region fallthrough
CT: control target
= control target key end

     0   :  { %s542_s18 = smov 0   ;;  %s544_s19 = smov 0   ;;  %s587_s0 = inlined_call_operand.vmem [shape: f32[2,16,64], index: 0, kind: input, shape index: {}]   ;;  %s588_s1 = inlined_call_operand.vmem [shape: f32[2,16,64], index: 1, kind: input, shape index: {}]   ;;  %s589_s2 = inlined_call_operand.vmem [shape: f32[1,64], index: 2, kind: input, shape index: {}]   ;;  %s590_s3 = inlined_call_operand.vmem [shape: f32[1,64], index: 3, kind: input, shape index: {}]   ;;  %s591_s4 = inlined_call_operand.vmem [shape: f32[1,64], index: 4, kind: input, shape index: {}]   ;;  %s592_s5 = inlined_call_operand.vmem [shape: f32[2,16,64], index: 5, kind: output, shape index: {}]  }
   0x1   :  { %s546_s20 = smov 0  }
   0x2 LB: > { %s27_s21 = sadd.s32 1, %s506_s19  ;;  %p449_p0 = scmp.ge.s32.totalorder %s510_s20, 1  ;;  %s510_s20 = sphi %s546_s20, %s15_s20   ;;  %s506_s19 = sphi %s544_s19, %s594_s19   ;;  %s502_s18 = sphi %s542_s18, %s593_s18  }
   0x3   : > { %p29_p1 = scmp.ge.s32.totalorder %s27_s21, 2  ;;  %p225_p2 = scmp.lt.s32.totalorder %s510_s20, 3 }
   0x5   : > { %s596_s21 = smov (%p29_p1, %s27_s21), 0  ;;  %p226_p3 = pnand %p449_p0, %p225_p2 }
   0x6   : > { %p271_p4 = scmp.lt.s32.totalorder (!%p226_p3), %s502_s18, 1  ;;  %v456_v0 = vld [vmem:[%s589_s2] ss:$0 sm:$0xff] (!%p226_p3)  ;;  %vm337_vm2 = vcmask (!%p226_p3), 523264  }
   0x7   : > { %229 = sbr.rel (%p226_p3) target bundleno = 28 (0x1c), region = 40  ;;  %v457_v1 = vld [vmem:[%s590_s3] ss:$0 sm:$0xff] (!%p226_p3) }
   0x8   : > { %v458_v6 = vld [vmem:[%s591_s4] ss:$0 sm:$0xff] (!%p226_p3) }
   0xe   : > { %s598_s18 = smov (!%p271_p4, %s502_s18), 1 }
   0xf   : > { %s461_s22 = sshll.u32 %s598_s18, 4 }
  0x10   : > { %s278_s27 = scalar_lea.vmem %s587_s0, %s461_s22  ;;  %s288_s7 = scalar_lea.vmem %s588_s1, %s461_s22 }
  0x11   : > { %v303_v2 = vld [vmem:[%s278_s27] sm:$0xff]  ;;  %v304_v3 = vld [vmem:[%s278_s27 + $0x8] sm:$0xff]  ;;  %s298_s12 = scalar_lea.vmem %s592_s5, %s461_s22 }
  0x12   : > { %v311_v4 = vmul.f32 %v456_v0, %v303_v2  ;;  %v312_v5 = vmul.f32 %v456_v0, %v304_v3  ;;  %v333_v10 = vld [vmem:[%s288_s7] sm:$0xff]  ;;  %v334_v12 = vld [vmem:[%s288_s7 + $0x8] sm:$0xff] }
  0x14   : > { %v319_v7 = vadd.f32 %v457_v1, %v311_v4  ;;  %v320_v8 = vadd.f32 %v457_v1, %v312_v5 }
  0x16   : > { %vm321_vm0 = vcmp.gt.f32.partialorder %v319_v7, 0.0  ;;  %v329_v9 = vmul.f32 %v458_v6, %v319_v7  ;;  %vm322_vm1 = vcmp.gt.f32.partialorder %v320_v8, 0.0  ;;  %v330_v11 = vmul.f32 %v458_v6, %v320_v8 }
  0x18   : > { %v331_v13 = vsel %vm321_vm0, %v319_v7, %v329_v9  ;;  %v332_v14 = vsel %vm322_vm1, %v320_v8, %v330_v11 }
  0x19   : > { %v335_v15 = vadd.f32 %v333_v10, %v331_v13  ;;  %v336_v16 = vadd.f32 %v334_v12, %v332_v14 }
  0x1b   : > { %338 = vst.msk [vmem:[%s298_s12] sm:$0xff] %vm337_vm2, %v335_v15  ;;  %339 = vst.msk [vmem:[%s298_s12 + $0x8] sm:$0xff] %vm337_vm2, %v336_v16 }
  0x1c PF: > { %s15_s20 = sadd.s32 1, %s510_s20   ;;  %s593_s18 = smov %s506_s19 }
  0x1d   : > { %p12_p5 = scmp.ge.s32.totalorder %s15_s20, 4   ;;  %s594_s19 = smov %s596_s21 }
  0x1f   :  { %14 = sbr.rel (!%p12_p5) target bundleno = 2 (0x2), region = 73 }

// kernel: basic_block_forward.3
= control target key start
LH: loop header
LB: loop body
LE: loop exit
PB: predicated region body
PF: predicated region fallthrough
CT: control target
= control target key end

     0   :  { %s2487_s18 = smov 0   ;;  %s2489_s19 = smov 0   ;;  %s3797_s0 = inlined_call_operand.vmem [shape: f32[2,16,16,4], index: 0, kind: input, shape index: {}, may-alias: {0,1,2}]   ;;  %s3798_s1 = inlined_call_operand.vmem [shape: f32[2,16,16,4], index: 1, kind: input, shape index: {}, may-alias: {0,1,2}]   ;;  %s3799_s2 = inlined_call_operand.vmem [shape: f32[2,16,16,4], index: 2, kind: input, shape index: {}, may-alias: {0,1,2}]   ;;  %s3800_s3 = inlined_call_operand.vmem [shape: f32[36,4], index: 3, kind: input, shape index: {}]   ;;  %s3801_s4 = inlined_call_operand.vmem [shape: f32[2,16,16,4], index: 4, kind: output, shape index: {0}]   ;;  %s3802_s5 = inlined_call_operand.vmem [shape: f32[2,1,1,8], index: 5, kind: output, shape index: {1}]  }
   0x1   :  { %s2491_s20 = smov 0  }
   0x2 LB: > { %s28_s21 = sadd.s32 1, %s2447_s19  ;;  %p2242_p0 = scmp.ge.s32.totalorder %s2451_s20, 1  ;;  %s2451_s20 = sphi %s2491_s20, %s16_s20   ;;  %s2447_s19 = sphi %s2489_s19, %s3897_s19   ;;  %s2443_s18 = sphi %s2487_s18, %s3896_s18  }
   0x3   : > { %p30_p1 = scmp.ge.s32.totalorder %s28_s21, 2  ;;  %p278_p2 = scmp.lt.s32.totalorder %s2451_s20, 3 }
   0x5   : > { %s3899_s21 = smov (%p30_p1, %s28_s21), 0  ;;  %p279_p3 = pnand %p2242_p0, %p278_p2 }
   0x7   : > { %282 = sbr.rel (%p279_p3) target bundleno = 805 (0x325), region = 36 }
   0xe   : > { %p352_p4 = scmp.lt.s32.totalorder %s2443_s18, 1  ;;  %vm494_vm0 = vcmask 1040384   ;;  %s2453_s26 = smov 4   ;;  %vm959_vm1 = vcmask 31744   ;;  %vm1627_vm2 = vcmask 1043456   ;;  %vm1008_vm3 = vcmask 64512  }
   0xf   : > { %s2454_s27 = smov 8   ;;  %vm1105_vm4 = vcmask 1046528   ;;  %vm1282_vm5 = vcmask 1045504   ;;  %vm1459_vm6 = vcmask 97280   ;;  %vm1492_vm7 = vcmask 195584  }
  0x10   : > { %s3901_s18 = smov (!%p352_p4, %s2443_s18), 1  ;;  %vm1530_vm8 = vcmask 293888   ;;  %vm2063_vm9 = vcmask 57344  }
  0x11   : > { %s2508_s22 = sshll.u32 %s3901_s18, 8  ;;  %s409_s7 = scalar_lea.vmem %s3802_s5, %s3901_s18 }
  0x12   : > { %s2514_s25 = scalar_lea.vmem %s3798_s1, %s2508_s22  ;;  %s2289_s28 = sadd.s32 240, %s2508_s22 }
  0x13   : > { %v427_v0 = vld [vmem:[%s2514_s25 + $0x8] sm:$0xff]  ;;  %v426_v1 = vld [vmem:[%s2514_s25] sm:$0xff]  ;;  %v428_v2 = vld [vmem:[%s2514_s25 + $0x10] sm:$0xff]  ;;  %s360_s6 = scalar_lea.vmem %s3797_s0, %s2508_s22  ;;  %s388_s9 = scalar_lea.vmem %s3799_s2, %s2289_s28 }
  0x14   : > { %v499_v3 = vrot.slane %v427_v0, 7  ;;  %v498_v4 = vrot.slane %v426_v1, 7  ;;  %v501_v5 = vrot.slane %v428_v2, 7  ;;  %v429_v6 = vld [vmem:[%s2514_s25 + $0x18] sm:$0xff]  ;;  %v438_v10 = vld [vmem:[%s2514_s25 + $0x60] sm:$0xff]  ;;  %v439_v15 = vld [vmem:[%s2514_s25 + $0x68] sm:$0xff]  ;;  %s3652_s30 = scalar_lea.vmem %s3801_s4, %s2508_s22 }
  0x15   : > { %v502_v9 = vrot.slane %v429_v6, 7  ;;  %v2538_v13 = vld [vmem:[%s2514_s25 + $0x20] sm:$0xff]  ;;  %v516_v14 = vrot.slane %v438_v10, 7  ;;  %v440_v16 = vld [vmem:[%s2514_s25 + $0x70] sm:$0xff]  ;;  %v441_v17 = vld [vmem:[%s2514_s25 + $0x78] sm:$0xff]  ;;  %v517_v26 = vrot.slane %v439_v15, 7 }
  0x16   : > { %v2521_v7 = vsel %vm494_vm0, %v499_v3, 0.0  ;;  %v2524_v8 = vsel %vm494_vm0, 0.0, %v498_v4  ;;  %v2532_v11 = vsel %vm494_vm0, 0.0, %v501_v5  ;;  %v2535_v12 = vsel %vm494_vm0, %v498_v4, %v499_v3  ;;  %v442_v18 = vld [vmem:[%s2514_s25 + $0x80] sm:$0xff]  ;;  %v443_v19 = vld [vmem:[%s2514_s25 + $0x88] sm:$0xff]  ;;  %v444_v20 = vld [vmem:[%s2514_s25 + $0x90] sm:$0xff] }
  0x17   : > { %673 = vrot.lane.b32.xlu1 %v2521_v7, %s2453_s26  ;;  %669 = vrot.lane.b32.xlu0 %v2524_v8, %s2453_s26  ;;  %v2551_v21 = vsel %vm494_vm0, %v502_v9, 0.0  ;;  %v504_v22 = vrot.slane %v2538_v13, 7  ;;  %v445_v23 = vld [vmem:[%s2514_s25 + $0x98] sm:$0xff]  ;;  %v2556_v24 = vsel %vm494_vm0, %v501_v5, %v502_v9  ;;  %v2559_v25 = vsel %vm494_vm0, 0.0, %v516_v14  ;;  %v446_v32 = vld [vmem:[%s2514_s25 + $0xa0] sm:$0xff] }
  0x18   : > { %3834 = vst [vmem:[#allocation2_spill] sm:$0xff] %v2559_v25  ;;  %v519_v27 = vrot.slane %v440_v16, 7  ;;  %v520_v28 = vrot.slane %v441_v17, 7  ;;  %v522_v29 = vrot.slane %v442_v18, 7  ;;  %v523_v30 = vrot.slane %v443_v19, 7  ;;  %v447_v37 = vld [vmem:[%s2514_s25 + $0xa8] sm:$0xff] }
  0x19   : > { %v525_v31 = vrot.slane %v444_v20, 7  ;;  %v2563_v33 = vsel %vm494_vm0, %v517_v26, 0.0  ;;  %v2566_v34 = vsel %vm494_vm0, %v516_v14, %v517_v26  ;;  %v526_v36 = vrot.slane %v445_v23, 7  ;;  %v448_v38 = vld [vmem:[%s2514_s25 + $0xb0] sm:$0xff]  ;;  %v449_v39 = vld [vmem:[%s2514_s25 + $0xb8] sm:$0xff]  ;;  %v450_v44 = vld [vmem:[%s2514_s25 + $0xc0] sm:$0xff] }
  0x1a   : > { %3835 = vst [vmem:[#allocation3_spill] sm:$0xff] %v2563_v33  ;;  %3836 = vst [vmem:[#allocation4_spill] sm:$0xff] %v2566_v34  ;;  %v2569_v35 = vsel %vm494_vm0, 0.0, %v519_v27  ;;  %v2579_v40 = vsel %vm494_vm0, %v520_v28, 0.0  ;;  %v2582_v41 = vsel %vm494_vm0, %v519_v27, %v520_v28  ;;  %v2585_v42 = vsel %vm494_vm0, 0.0, %v522_v29  ;;  %v451_v45 = vld [vmem:[%s2514_s25 + $0xc8] sm:$0xff] }
  0x1b   : > { %815 = vrot.lane.b32.xlu1 %v2532_v11, %s2454_s27  ;;  %671 = vrot.lane.b32.xlu0 %v2535_v12, %s2453_s26  ;;  %3837 = vst [vmem:[#allocation5_spill] sm:$0xff] %v2569_v35  ;;  %3838 = vst [vmem:[#allocation6_spill] sm:$0xff] %v2579_v40  ;;  %v2588_v43 = vsel %vm494_vm0, %v523_v30, 0.0  ;;  %v431_v46 = vld [vmem:[%s2514_s25 + $0x28] sm:$0xff]  ;;  %v2594_v47 = vsel %vm494_vm0, %v522_v29, %v523_v30  ;;  %v2597_v48 = vsel %vm494_vm0, 0.0, %v525_v31  ;;  %v2600_v49 = vsel %vm494_vm0, %v526_v36, 0.0 }
  0x1c   : > { %3839 = vst [vmem:[#allocation7_spill] sm:$0xff] %v2582_v41  ;;  %3840 = vst [vmem:[#allocation8_spill] sm:$0xff] %v2585_v42  ;;  %v2603_v50 = vsel %vm494_vm0, %v525_v31, %v526_v36  ;;  %v528_v51 = vrot.slane %v446_v32, 7  ;;  %v529_v52 = vrot.slane %v447_v37, 7  ;;  %v531_v53 = vrot.slane %v448_v38, 7  ;;  %v452_v4 = vld [vmem:[%s2514_s25 + $0xd0] sm:$0xff] }
  0x1d   : > { %3841 = vst [vmem:[#allocation9_spill] sm:$0xff] %v2588_v43  ;;  %3842 = vst [vmem:[#allocation10_spill] sm:$0xff] %v2594_v47  ;;  %v532_v54 = vrot.slane %v449_v39, 7  ;;  %v534_v55 = vrot.slane %v450_v44, 7  ;;  %v535_v56 = vrot.slane %v451_v45, 7  ;;  %v2610_v57 = vsel %vm494_vm0, 0.0, %v504_v22 }
  0x1e   : > { %3843 = vst [vmem:[#allocation11_spill] sm:$0xff] %v2597_v48  ;;  %3844 = vst [vmem:[#allocation12_spill] sm:$0xff] %v2600_v49  ;;  %v505_v58 = vrot.slane %v431_v46, 7  ;;  %v2613_v59 = vsel %vm494_vm0, 0.0, %v528_v51  ;;  %v2616_v60 = vsel %vm494_vm0, %v529_v52, 0.0  ;;  %v2619_v61 = vsel %vm494_vm0, %v528_v51, %v529_v52  ;;  %v432_v10 = vld [vmem:[%s2514_s25 + $0x30] sm:$0xff] }
  0x1f   : > { %819 = vrot.lane.b32.xlu1 %v2551_v21, %s2454_s27  ;;  %817 = vrot.lane.b32.xlu0 %v2556_v24, %s2454_s27  ;;  %3845 = vst [vmem:[#allocation13_spill] sm:$0xff] %v2603_v50  ;;  %3846 = vst [vmem:[#allocation14_spill] sm:$0xff] %v2613_v59  ;;  %v2622_v62 = vsel %vm494_vm0, 0.0, %v531_v53  ;;  %v2625_v63 = vsel %vm494_vm0, %v532_v54, 0.0  ;;  %v2628_v0 = vsel %vm494_vm0, %v531_v53, %v532_v54  ;;  %v2631_v1 = vsel %vm494_vm0, 0.0, %v534_v55  ;;  %v453_v14 = vld [vmem:[%s2514_s25 + $0xd8] sm:$0xff] }
  0x20   : > { %3847 = vst [vmem:[#allocation15_spill] sm:$0xff] %v2616_v60  ;;  %3848 = vst [vmem:[#allocation16_spill] sm:$0xff] %v2619_v61  ;;  %v2634_v2 = vsel %vm494_vm0, %v535_v56, 0.0  ;;  %v2637_v3 = vsel %vm494_vm0, %v534_v55, %v535_v56  ;;  %v2645_v5 = vsel %vm494_vm0, %v505_v58, 0.0  ;;  %v2648_v6 = vsel %vm494_vm0, %v504_v22, %v505_v58  ;;  %v433_v17 = vld [vmem:[%s2514_s25 + $0x38] sm:$0xff]  ;;  %v454_v23 = vld [vmem:[%s2514_s25 + $0xe0] sm:$0xff] }
  0x21   : > { %3849 = vst [vmem:[#allocation17_spill] sm:$0xff] %v2622_v62  ;;  %3850 = vst [vmem:[#allocation18_spill] sm:$0xff] %v2625_v63  ;;  %v537_v9 = vrot.slane %v452_v4, 7  ;;  %v507_v15 = vrot.slane %v432_v10, 7  ;;  %v538_v16 = vrot.slane %v453_v14, 7  ;;  %v508_v22 = vrot.slane %v433_v17, 7 }
  0x22   : > { %3851 = vst [vmem:[#allocation19_spill] sm:$0xff] %v2628_v0  ;;  %3852 = vst [vmem:[#allocation20_spill] sm:$0xff] %v2631_v1  ;;  %v540_v28 = vrot.slane %v454_v23, 7  ;;  %v434_v29 = vld [vmem:[%s2514_s25 + $0x40] sm:$0xff]  ;;  %v455_v31 = vld [vmem:[%s2514_s25 + $0xe8] sm:$0xff] }
  0x23   : > { %677 = vrot.lane.b32.xlu1 %v2556_v24, %s2453_s26  ;;  %675 = vrot.lane.b32.xlu0 %v2532_v11, %s2453_s26  ;;  %3853 = vst [vmem:[#allocation21_spill] sm:$0xff] %v2634_v2  ;;  %3854 = vst [vmem:[#allocation22_spill] sm:$0xff] %v2637_v3  ;;  %v2652_v13 = vsel %vm494_vm0, 0.0, %v537_v9  ;;  %v2661_v18 = vsel %vm494_vm0, %v538_v16, 0.0  ;;  %v2664_v19 = vsel %vm494_vm0, %v537_v9, %v538_v16  ;;  %v2671_v20 = vsel %vm494_vm0, 0.0, %v507_v15  ;;  %v435_v37 = vld [vmem:[%s2514_s25 + $0x48] sm:$0xff] }
  0x24   : > { %3855 = vst [vmem:[#allocation23_spill] sm:$0xff] %v2652_v13  ;;  %3856 = vst [vmem:[#allocation24_spill] sm:$0xff] %v2661_v18  ;;  %v2679_v26 = vsel %vm494_vm0, %v508_v22, 0.0  ;;  %v2682_v27 = vsel %vm494_vm0, %v507_v15, %v508_v22  ;;  %v2686_v30 = vsel %vm494_vm0, 0.0, %v540_v28  ;;  %v510_v32 = vrot.slane %v434_v29, 7  ;;  %v456_v46 = vld [vmem:[%s2514_s25 + $0xf0] sm:$0xff] }
  0x25   : > { %3857 = vst [vmem:[#allocation25_spill] sm:$0xff] %v2664_v19  ;;  %3858 = vst [vmem:[#allocation26_spill] sm:$0xff] %v2686_v30  ;;  %v541_v36 = vrot.slane %v455_v31, 7  ;;  %v511_v45 = vrot.slane %v435_v37, 7  ;;  %v543_v53 = vrot.slane %v456_v46, 7  ;;  %v436_v54 = vld [vmem:[%s2514_s25 + $0x50] sm:$0xff] }
  0x26   : > { %v2705_v44 = vsel %vm494_vm0, 0.0, %v510_v32  ;;  %v457_v56 = vld [vmem:[%s2514_s25 + $0xf8] sm:$0xff]  ;;  %v513_v58 = vrot.slane %v436_v54, 7 }
  0x27   : > { %821 = vrot.lane.b32.xlu1 %v2610_v57, %s2454_s27  ;;  %679 = vrot.lane.b32.xlu0 %v2551_v21, %s2453_s26  ;;  %v2695_v38 = vsel %vm494_vm0, %v541_v36, 0.0  ;;  %v2698_v39 = vsel %vm494_vm0, %v540_v28, %v541_v36  ;;  %3861 = vst [vmem:[#allocation29_spill] sm:$0xff] %v2705_v44  ;;  %v2713_v51 = vsel %vm494_vm0, %v511_v45, 0.0  ;;  %v2716_v52 = vsel %vm494_vm0, %v510_v32, %v511_v45  ;;  %v437_v9 = vld [vmem:[%s2514_s25 + $0x58] sm:$0xff]  ;;  %s2455_s25 = smov 12  }
  0x28   : > { %3859 = vst [vmem:[#allocation27_spill] sm:$0xff] %v2695_v38  ;;  %3860 = vst [vmem:[#allocation28_spill] sm:$0xff] %v2698_v39  ;;  %v2720_v55 = vsel %vm494_vm0, 0.0, %v543_v53  ;;  %v544_v4 = vrot.slane %v457_v56, 7  ;;  %v2739_v15 = vsel %vm494_vm0, 0.0, %v513_v58  ;;  %v514_v16 = vrot.slane %v437_v9, 7 }
  0x29   : > { %3862 = vst [vmem:[#allocation30_spill] sm:$0xff] %v2739_v15 }
  0x2a   : > { %v2729_v10 = vsel %vm494_vm0, %v544_v4, 0.0  ;;  %v2732_v14 = vsel %vm494_vm0, %v543_v53, %v544_v4  ;;  %v2746_v17 = vsel %vm494_vm0, %v514_v16, 0.0  ;;  %v2749_v22 = vsel %vm494_vm0, %v513_v58, %v514_v16 }
  0x2b   : > { %825 = vrot.lane.b32.xlu1 %v2645_v5, %s2454_s27  ;;  %823 = vrot.lane.b32.xlu0 %v2648_v6, %s2454_s27  ;;  %3863 = vst [vmem:[#allocation31_spill] sm:$0xff] %v2746_v17  ;;  %3864 = vst [vmem:[#allocation32_spill] sm:$0xff] %v2749_v22 }
  0x2f   : > { %683 = vrot.lane.b32.xlu1 %v2648_v6, %s2453_s26  ;;  %681 = vrot.lane.b32.xlu0 %v2610_v57, %s2453_s26 }
  0x33   : > { %827 = vrot.lane.b32.xlu1 %v2671_v20, %s2454_s27  ;;  %685 = vrot.lane.b32.xlu0 %v2645_v5, %s2453_s26 }
  0x37   : > { %831 = vrot.lane.b32.xlu1 %v2679_v26, %s2454_s27  ;;  %829 = vrot.lane.b32.xlu0 %v2682_v27, %s2454_s27 }
  0x3b   : > { %689 = vrot.lane.b32.xlu1 %v2682_v27, %s2453_s26  ;;  %687 = vrot.lane.b32.xlu0 %v2671_v20, %s2453_s26 }
  0x3f   : > { %833 = vrot.lane.b32.xlu1 %v2705_v44, %s2454_s27  ;;  %691 = vrot.lane.b32.xlu0 %v2679_v26, %s2453_s26 }
  0x43   : > { %837 = vrot.lane.b32.xlu1 %v2713_v51, %s2454_s27  ;;  %835 = vrot.lane.b32.xlu0 %v2716_v52, %s2454_s27 }
  0x47   : > { %695 = vrot.lane.b32.xlu1 %v2716_v52, %s2453_s26  ;;  %693 = vrot.lane.b32.xlu0 %v2705_v44, %s2453_s26 }
  0x4b   : > { %839 = vrot.lane.b32.xlu1 %v2739_v15, %s2454_s27  ;;  %697 = vrot.lane.b32.xlu0 %v2713_v51, %s2453_s26 }
  0x4f   : > { %843 = vrot.lane.b32.xlu1 %v2746_v17, %s2454_s27  ;;  %841 = vrot.lane.b32.xlu0 %v2749_v22, %s2454_s27 }
  0x53   : > { %701 = vrot.lane.b32.xlu1 %v2749_v22, %s2453_s26  ;;  %699 = vrot.lane.b32.xlu0 %v2739_v15, %s2453_s26 }
  0x57   : > { %845 = vrot.lane.b32.xlu1 %v2559_v25, %s2454_s27  ;;  %703 = vrot.lane.b32.xlu0 %v2746_v17, %s2453_s26 }
  0x5b   : > { %849 = vrot.lane.b32.xlu1 %v2563_v33, %s2454_s27  ;;  %847 = vrot.lane.b32.xlu0 %v2566_v34, %s2454_s27 }
  0x5f   : > { %707 = vrot.lane.b32.xlu1 %v2566_v34, %s2453_s26  ;;  %705 = vrot.lane.b32.xlu0 %v2559_v25, %s2453_s26 }
  0x63   : > { %851 = vrot.lane.b32.xlu1 %v2569_v35, %s2454_s27  ;;  %709 = vrot.lane.b32.xlu0 %v2563_v33, %s2453_s26  ;;  %v422_v33 = vld [vmem:[%s388_s9 + $0x8] sm:$0xff] }
  0x67   : > { %855 = vrot.lane.b32.xlu1 %v2579_v40, %s2454_s27  ;;  %853 = vrot.lane.b32.xlu0 %v2582_v41, %s2454_s27 }
  0x6b   : > { %713 = vrot.lane.b32.xlu1 %v2582_v41, %s2453_s26  ;;  %711 = vrot.lane.b32.xlu0 %v2569_v35, %s2453_s26 }
  0x6f   : > { %857 = vrot.lane.b32.xlu1 %v2585_v42, %s2454_s27  ;;  %715 = vrot.lane.b32.xlu0 %v2579_v40, %s2453_s26 }
  0x73   : > { %861 = vrot.lane.b32.xlu1 %v2588_v43, %s2454_s27  ;;  %859 = vrot.lane.b32.xlu0 %v2594_v47, %s2454_s27 }
  0x77   : > { %719 = vrot.lane.b32.xlu1 %v2594_v47, %s2453_s26  ;;  %717 = vrot.lane.b32.xlu0 %v2585_v42, %s2453_s26  ;;  %v421_v42 = vld [vmem:[%s388_s9] sm:$0xff] }
  0x78   : > { %v424_v35 = vmul.f32 0.0, %v421_v42  ;;  %v1527_v42 = vld [vmem:[%s3800_s3 + $0x10] sm:$0xff] }
  0x7b   : > { %863 = vrot.lane.b32.xlu1 %v2597_v48, %s2454_s27  ;;  %721 = vrot.lane.b32.xlu0 %v2588_v43, %s2453_s26  ;;  %v416_v43 = vld [vmem:[%s360_s6] sm:$0xff] }
  0x7c   : > { %v419_v41 = vmul.f32 0.0, %v416_v43  ;;  %v1528_v43 = vld [vmem:[%s3800_s3 + $0x18] sm:$0xff] }
  0x7f   : > { %867 = vrot.lane.b32.xlu1 %v2600_v49, %s2454_s27  ;;  %865 = vrot.lane.b32.xlu0 %v2603_v50, %s2454_s27 }
  0x83   : > { %725 = vrot.lane.b32.xlu1 %v2603_v50, %s2453_s26  ;;  %723 = vrot.lane.b32.xlu0 %v2597_v48, %s2453_s26 }
  0x87   : > { %869 = vrot.lane.b32.xlu1 %v2613_v59, %s2454_s27  ;;  %727 = vrot.lane.b32.xlu0 %v2600_v49, %s2453_s26 }
  0x89   : > { %v2811_v23 = vpop.permute.xlu1 %673  ;;  %v2813_v28 = vpop.permute.xlu0 %669 }
  0x8b   : > { %873 = vrot.lane.b32.xlu1 %v2616_v60, %s2454_s27  ;;  %871 = vrot.lane.b32.xlu0 %v2619_v61, %s2454_s27 }
  0x8d   : > { %v2819_v29 = vpop.permute.xlu1 %815  ;;  %v2821_v31 = vpop.permute.xlu0 %671 }
  0x8f   : > { %731 = vrot.lane.b32.xlu1 %v2619_v61, %s2453_s26  ;;  %729 = vrot.lane.b32.xlu0 %v2613_v59, %s2453_s26 }
  0x91   : > { %v2827_v32 = vpop.permute.xlu1 %819  ;;  %v2829_v36 = vpop.permute.xlu0 %817 }
  0x93   : > { %875 = vrot.lane.b32.xlu1 %v2622_v62, %s2454_s27  ;;  %733 = vrot.lane.b32.xlu0 %v2616_v60, %s2453_s26 }
  0x95   : > { %v2835_v37 = vpop.permute.xlu1 %677  ;;  %v2837_v45 = vpop.permute.xlu0 %675 }
  0x97   : > { %879 = vrot.lane.b32.xlu1 %v2625_v63, %s2454_s27  ;;  %877 = vrot.lane.b32.xlu0 %v2628_v0, %s2454_s27 }
  0x99   : > { %v2843_v46 = vpop.permute.xlu1 %821  ;;  %v2845_v53 = vpop.permute.xlu0 %679 }
  0x9b   : > { %737 = vrot.lane.b32.xlu1 %v2628_v0, %s2453_s26  ;;  %735 = vrot.lane.b32.xlu0 %v2622_v62, %s2453_s26 }
  0x9d   : > { %v2851_v54 = vpop.permute.xlu1 %825  ;;  %v2853_v56 = vpop.permute.xlu0 %823 }
  0x9f   : > { %881 = vrot.lane.b32.xlu1 %v2631_v1, %s2454_s27  ;;  %739 = vrot.lane.b32.xlu0 %v2625_v63, %s2453_s26 }
  0xa1   : > { %v2859_v58 = vpop.permute.xlu1 %683  ;;  %v2861_v4 = vpop.permute.xlu0 %681 }
  0xa3   : > { %885 = vrot.lane.b32.xlu1 %v2634_v2, %s2454_s27  ;;  %883 = vrot.lane.b32.xlu0 %v2637_v3, %s2454_s27 }
  0xa5   : > { %v2867_v9 = vpop.permute.xlu1 %827  ;;  %v2869_v16 = vpop.permute.xlu0 %685 }
  0xa7   : > { %743 = vrot.lane.b32.xlu1 %v2637_v3, %s2453_s26  ;;  %741 = vrot.lane.b32.xlu0 %v2631_v1, %s2453_s26 }
  0xa9   : > { %v2875_v62 = vpop.permute.xlu1 %831  ;;  %v2877_v63 = vpop.permute.xlu0 %829 }
  0xab   : > { %887 = vrot.lane.b32.xlu1 %v2652_v13, %s2454_s27  ;;  %745 = vrot.lane.b32.xlu0 %v2634_v2, %s2453_s26 }
  0xad   : > { %v2883_v0 = vpop.permute.xlu1 %689  ;;  %v2885_v59 = vpop.permute.xlu0 %687 }
  0xaf   : > { %891 = vrot.lane.b32.xlu1 %v2661_v18, %s2454_s27  ;;  %889 = vrot.lane.b32.xlu0 %v2664_v19, %s2454_s27 }
  0xb1   : > { %v2891_v1 = vpop.permute.xlu1 %833  ;;  %v2893_v3 = vpop.permute.xlu0 %691 }
  0xb3   : > { %749 = vrot.lane.b32.xlu1 %v2664_v19, %s2453_s26  ;;  %747 = vrot.lane.b32.xlu0 %v2652_v13, %s2453_s26 }
  0xb5   : > { %v2899_v2 = vpop.permute.xlu1 %837  ;;  %v2901_v60 = vpop.permute.xlu0 %835 }
  0xb7   : > { %893 = vrot.lane.b32.xlu1 %v2686_v30, %s2454_s27  ;;  %751 = vrot.lane.b32.xlu0 %v2661_v18, %s2453_s26  ;;  %v417_v18 = vld [vmem:[%s360_s6 + $0x8] sm:$0xff] }
  0xb8   : > { %v420_v47 = vmul.f32 0.0, %v417_v18 }
  0xb9   : > { %v2907_v61 = vpop.permute.xlu1 %695  ;;  %v2909_v48 = vpop.permute.xlu0 %693 }
  0xba   : > { %v496_v34 = vrot.slane %v420_v47, 7  ;;  %v495_v47 = vrot.slane %v419_v41, 7 }
  0xbb   : > { %897 = vrot.lane.b32.xlu1 %v2695_v38, %s2454_s27  ;;  %895 = vrot.lane.b32.xlu0 %v2698_v39, %s2454_s27 }
  0xbc   : > { %v619_v22 = vsel %vm494_vm0, %v496_v34, 0.0  ;;  %v497_v44 = vsel %vm494_vm0, %v495_v47, %v496_v34  ;;  %v1529_v34 = vld [vmem:[%s3800_s3 + $0x20] sm:$0xf] }
  0xbd   : > { %v2920_v13 = vpop.permute.xlu1 %839  ;;  %v2922_v19 = vpop.permute.xlu0 %697 }
  0xbf   : > { %755 = vrot.lane.b32.xlu1 %v2698_v39, %s2453_s26  ;;  %753 = vrot.lane.b32.xlu0 %v2686_v30, %s2453_s26  ;;  %v1525_v39 = vld [vmem:[%s3800_s3] sm:$0xff]  ;;  %v1526_v30 = vld [vmem:[%s3800_s3 + $0x8] sm:$0xff] }
  0xc0   : > { %v2387_v40 = vpack.c.bf16 %v1526_v30, %v1525_v39  ;;  %v546_v30 = vrot.slane %v424_v35, 7  ;;  %v425_v39 = vmul.f32 0.0, %v422_v33 }
  0xc1   : > { %v2931_v49 = vpop.permute.xlu1 %843  ;;  %v2933_v50 = vpop.permute.xlu0 %841 }
  0xc2   : > { %2388 = vmatprep.subr.bf16.mxu0 %v2387_v40  ;;  %2395 = vmatprep.subr.bf16.mxu1 %v2387_v40  ;;  %v618_v33 = vsel %vm494_vm0, 0.0, %v546_v30  ;;  %v547_v35 = vrot.slane %v425_v39, 7 }
  0xc3   : > { %899 = vrot.lane.b32.xlu1 %v2720_v55, %s2454_s27  ;;  %757 = vrot.lane.b32.xlu0 %v2695_v38, %s2453_s26  ;;  %v2391_v38 = vpack.c.bf16 %v1528_v43, %v1527_v42 }
  0xc4   : > { %2390 = vmatpush3.bf16.msra.mxu0 %v2387_v40  ;;  %2398 = vmatpush3.bf16.msra.mxu1 %v2387_v40  ;;  %v601_v40 = vsel %vm494_vm0, 0.0, %v495_v47 }
  0xc5   : > { %v2945_v25 = vpop.permute.xlu1 %701  ;;  %v2947_v18 = vpop.permute.xlu0 %699  ;;  %2392 = vmatprep.subr.bf16.mxu0 %v2391_v38  ;;  %2396 = vmatprep.subr.bf16.mxu1 %v2391_v38 }
  0xc7   : > { %903 = vrot.lane.b32.xlu1 %v2729_v10, %s2454_s27  ;;  %901 = vrot.lane.b32.xlu0 %v2732_v14, %s2454_s27 }
  0xc8   : > { %2394 = vmatpush3.bf16.msra.mxu0 %v2391_v38  ;;  %2399 = vmatpush3.bf16.msra.mxu1 %v2391_v38 }
  0xc9   : > { %v2959_v15 = vpop.permute.xlu1 %845  ;;  %v2961_v17 = vpop.permute.xlu0 %703  ;;  %2337 = vmatprep.subr.msk.mxu0 %vm1627_vm2, %v1529_v34  ;;  %2397 = vmatprep.subr.msk.mxu1 %vm1627_vm2, %v1529_v34 }
  0xcb   : > { %761 = vrot.lane.b32.xlu1 %v2732_v14, %s2453_s26  ;;  %759 = vrot.lane.b32.xlu0 %v2720_v55, %s2453_s26  ;;  %v962_v14 = vsel %vm959_vm1, %v619_v22, %v2811_v23  ;;  %v961_v55 = vsel %vm959_vm1, %v497_v44, %v2821_v31  ;;  %v960_v22 = vsel %vm959_vm1, %v601_v40, %v2813_v28  ;;  %v636_v23 = vsel %vm494_vm0, %v547_v35, 0.0 }
  0xcc   : > { %v1011_v38 = vsel %vm1008_vm3, %v962_v14, %v2827_v32  ;;  %v2986_v43 = vsel %vm1008_vm3, %v961_v55, %v2829_v36  ;;  %v548_v44 = vsel %vm494_vm0, %v546_v30, %v547_v35  ;;  %2338 = vmatpush3.msk.msra.mxu0 %vm1627_vm2, %v1529_v34  ;;  %2400 = vmatpush3.msk.msra.mxu1 %vm1627_vm2, %v1529_v34 }
  0xcd   : > { %v2971_v41 = vpop.permute.xlu1 %849  ;;  %v2973_v42 = vpop.permute.xlu0 %847  ;;  %v2997_v31 = vsel %vm1008_vm3, %v960_v22, %v2819_v29  ;;  %v1109_v39 = vrot.slane %v1011_v38, 1  ;;  %v1286_v30 = vrot.slane %v1011_v38, 2  ;;  %v1284_v47 = vrot.slane %v2986_v43, 2 }
  0xce   : > { %v1106_v28 = vrot.slane %v2997_v31, 1  ;;  %v964_v35 = vsel %vm959_vm1, %v2535_v12, %v2835_v37  ;;  %v965_v40 = vsel %vm959_vm1, %v2521_v7, %v2845_v53  ;;  %v1283_v12 = vrot.slane %v2997_v31, 2 }
  0xcf   : > { %905 = vrot.lane.b32.xlu1 %v618_v33, %s2454_s27  ;;  %763 = vrot.lane.b32.xlu0 %v2729_v10, %s2453_s26  ;;  %v1107_v10 = vrot.slane %v2986_v43, 1  ;;  %v1014_v55 = vsel %vm1008_vm3, %v965_v40, %v2851_v54  ;;  %v3024_v38 = vsel %vm1008_vm3, %v964_v35, %v2853_v56  ;;  %v963_v7 = vsel %vm959_vm1, %v2524_v8, %v2837_v45 }
  0xd0   : > { %v3034_v37 = vsel %vm1008_vm3, %v963_v7, %v2843_v46  ;;  %v1114_v56 = vrot.slane %v1014_v55, 1  ;;  %v1112_v22 = vrot.slane %v3024_v38, 1  ;;  %v1291_v45 = vrot.slane %v1014_v55, 2 }
  0xd1   : > { %v2999_v32 = vpop.permute.xlu1 %707  ;;  %v3001_v36 = vpop.permute.xlu0 %705  ;;  %v1110_v34 = vsel %vm1105_vm4, %v1107_v10, %v1109_v39  ;;  %v1108_v14 = vsel %vm1105_vm4, %v1106_v28, %v1107_v10  ;;  %v1111_v8 = vrot.slane %v3034_v37, 1  ;;  %v1289_v46 = vrot.slane %v3024_v38, 2 }
  0xd2   : > { %v967_v28 = vsel %vm959_vm1, %v2556_v24, %v2859_v58  ;;  %v1288_v24 = vrot.slane %v3034_v37, 2 }
  0xd3   : > { %909 = vrot.lane.b32.xlu1 %v636_v23, %s2454_s27  ;;  %907 = vrot.lane.b32.xlu0 %v548_v44, %s2454_s27  ;;  %v1287_v23 = vsel %vm1282_vm5, %v1284_v47, %v1286_v30  ;;  %v1285_v44 = vsel %vm1282_vm5, %v1283_v12, %v1284_v47  ;;  %s2456_s27 = smov 24   ;;  %v968_v30 = vsel %vm959_vm1, %v2551_v21, %v2869_v16 }
  0xd4   : > { %v1115_v47 = vsel %vm1105_vm4, %v1112_v22, %v1114_v56  ;;  %v1113_v35 = vsel %vm1105_vm4, %v1111_v8, %v1112_v22  ;;  %v1017_v40 = vsel %vm1008_vm3, %v968_v30, %v2875_v62  ;;  %v966_v21 = vsel %vm959_vm1, %v2532_v11, %v2861_v4 }
  0xd5   : > { %v3008_v33 = vpop.permute.xlu1 %851  ;;  %v3010_v29 = vpop.permute.xlu0 %709  ;;  %v3073_v58 = vsel %vm1008_vm3, %v966_v21, %v2867_v9  ;;  %v1292_v55 = vsel %vm1282_vm5, %v1289_v46, %v1291_v45  ;;  %v1290_v12 = vsel %vm1282_vm5, %v1288_v24, %v1289_v46  ;;  %v1296_v4 = vrot.slane %v1017_v40, 2 }
  0xd6   : > { %v1116_v11 = vrot.slane %v3073_v58, 1  ;;  %v970_v22 = vsel %vm959_vm1, %v2648_v6, %v2883_v0  ;;  %v1293_v0 = vrot.slane %v3073_v58, 2  ;;  %v973_v24 = vsel %vm959_vm1, %v2682_v27, %v2907_v61 }
  0xd7   : > { %1188 = vrot.lane.b32.xlu1 %v1110_v34, %s2455_s25  ;;  %1186 = vrot.lane.b32.xlu0 %v1108_v14, %s2455_s25  ;;  %v3063_v34 = vsel %vm1008_vm3, %v967_v28, %v2877_v63  ;;  %v1119_v63 = vrot.slane %v1017_v40, 1  ;;  %v3102_v46 = vsel %vm1008_vm3, %v970_v22, %v2901_v60  ;;  %v974_v21 = vsel %vm959_vm1, %v2679_v26, %v2922_v19 }
  0xd8   : > { %v1117_v14 = vrot.slane %v3063_v34, 1  ;;  %v1294_v9 = vrot.slane %v3063_v34, 2  ;;  %v1122_v28 = vrot.slane %v3102_v46, 1  ;;  %v972_v19 = vsel %vm959_vm1, %v2671_v20, %v2909_v48 }
  0xd9   : > { %v3036_v53 = vpop.permute.xlu1 %855  ;;  %v3038_v54 = vpop.permute.xlu0 %853  ;;  %v3151_v26 = vsel %vm1008_vm3, %v972_v19, %v2920_v13 }
  0xda   : > { %v1118_v8 = vsel %vm1105_vm4, %v1116_v11, %v1117_v14  ;;  %v1297_v30 = vsel %vm1282_vm5, %v1294_v9, %v1296_v4  ;;  %v1126_v48 = vrot.slane %v3151_v26, 1 }
  0xdb   : > { %1365 = vrot.lane.b32.xlu1 %v1287_v23, %s2456_s27  ;;  %1363 = vrot.lane.b32.xlu0 %v1285_v44, %s2456_s27  ;;  %v971_v23 = vsel %vm959_vm1, %v2645_v5, %v2893_v3  ;;  %v1120_v44 = vsel %vm1105_vm4, %v1117_v14, %v1119_v63  ;;  %v969_v3 = vsel %vm959_vm1, %v2610_v57, %v2885_v59 }
  0xdc   : > { %v1020_v45 = vsel %vm1008_vm3, %v971_v23, %v2899_v2  ;;  %v3112_v5 = vsel %vm1008_vm3, %v969_v3, %v2891_v1  ;;  %v1299_v1 = vrot.slane %v3102_v46, 2 }
  0xdd   : > { %v3047_v39 = vpop.permute.xlu1 %713  ;;  %v3049_v10 = vpop.permute.xlu0 %711  ;;  %v1124_v60 = vrot.slane %v1020_v45, 1  ;;  %v1121_v57 = vrot.slane %v3112_v5, 1  ;;  %v1301_v59 = vrot.slane %v1020_v45, 2  ;;  %v1298_v61 = vrot.slane %v3112_v5, 2 }
  0xdf   : > { %1192 = vrot.lane.b32.xlu1 %v1115_v47, %s2455_s25  ;;  %1190 = vrot.lane.b32.xlu0 %v1113_v35, %s2455_s25  ;;  %v1295_v47 = vsel %vm1282_vm5, %v1293_v0, %v1294_v9  ;;  %v1125_v63 = vsel %vm1105_vm4, %v1122_v28, %v1124_v60  ;;  %v1123_v14 = vsel %vm1105_vm4, %v1121_v57, %v1122_v28 }
  0xe0   : > { %v1302_v4 = vsel %vm1282_vm5, %v1299_v1, %v1301_v59  ;;  %v1300_v9 = vsel %vm1282_vm5, %v1298_v61, %v1299_v1 }
  0xe1   : > { %v3075_v16 = vpop.permute.xlu1 %857  ;;  %v3077_v62 = vpop.permute.xlu0 %715 }
  0xe3   : > { %1369 = vrot.lane.b32.xlu1 %v1292_v55, %s2456_s27  ;;  %1367 = vrot.lane.b32.xlu0 %v1290_v12, %s2456_s27  ;;  %v1023_v55 = vsel %vm1008_vm3, %v974_v21, %v2931_v49  ;;  %v3141_v12 = vsel %vm1008_vm3, %v973_v24, %v2933_v50  ;;  %v3866_v21 = vld [vmem:[#allocation32_spill] sm:$0xff] }
  0xe4   : > { %v1129_v50 = vrot.slane %v1023_v55, 1  ;;  %v1127_v11 = vrot.slane %v3141_v12, 1  ;;  %v1306_v20 = vrot.slane %v1023_v55, 2  ;;  %v1304_v13 = vrot.slane %v3141_v12, 2 }
  0xe5   : > { %v3086_v7 = vpop.permute.xlu1 %861  ;;  %v3088_v56 = vpop.permute.xlu0 %859 }
  0xe6   : > { %v1130_v45 = vsel %vm1105_vm4, %v1127_v11, %v1129_v50  ;;  %v1128_v0 = vsel %vm1105_vm4, %v1126_v48, %v1127_v11 }
  0xe7   : > { %1196 = vrot.lane.b32.xlu1 %v1120_v44, %s2455_s25  ;;  %1194 = vrot.lane.b32.xlu0 %v1118_v8, %s2455_s25  ;;  %v976_v44 = vsel %vm959_vm1, %v2716_v52, %v2945_v25  ;;  %v977_v8 = vsel %vm959_vm1, %v2713_v51, %v2961_v17  ;;  %v1303_v25 = vrot.slane %v3151_v26, 2  ;;  %v3865_v52 = vld [vmem:[#allocation29_spill] sm:$0xff] }
  0xe8   : > { %v1026_v3 = vsel %vm1008_vm3, %v977_v8, %v2971_v41  ;;  %v3180_v60 = vsel %vm1008_vm3, %v976_v44, %v2973_v42  ;;  %v975_v51 = vsel %vm959_vm1, %v3865_v52, %v2947_v18  ;;  %v3870_v52 = vld [vmem:[#allocation3_spill] sm:$0xff] }
  0xe9   : > { %v3114_v6 = vpop.permute.xlu1 %719  ;;  %v3116_v2 = vpop.permute.xlu0 %717  ;;  %v3190_v17 = vsel %vm1008_vm3, %v975_v51, %v2959_v15  ;;  %v1134_v42 = vrot.slane %v1026_v3, 1  ;;  %v1305_v57 = vsel %vm1282_vm5, %v1303_v25, %v1304_v13  ;;  %v1311_v59 = vrot.slane %v1026_v3, 2  ;;  %v3869_v3 = vld [vmem:[#allocation4_spill] sm:$0xff] }
  0xea   : > { %v1131_v18 = vrot.slane %v3190_v17, 1  ;;  %v1309_v15 = vrot.slane %v3180_v60, 2  ;;  %v982_v25 = vsel %vm959_vm1, %v3869_v3, %v3047_v39  ;;  %v983_v51 = vsel %vm959_vm1, %v3870_v52, %v3077_v62 }
  0xeb   : > { %1373 = vrot.lane.b32.xlu1 %v1297_v30, %s2456_s27  ;;  %1371 = vrot.lane.b32.xlu0 %v1295_v47, %s2456_s27  ;;  %v1132_v30 = vrot.slane %v3180_v60, 1  ;;  %v1307_v47 = vsel %vm1282_vm5, %v1304_v13, %v1306_v20 }
  0xec   : > { %v1312_v13 = vsel %vm1282_vm5, %v1309_v15, %v1311_v59 }
  0xed   : > { %v3125_v35 = vpop.permute.xlu1 %863  ;;  %v3127_v40 = vpop.permute.xlu0 %721  ;;  %v1135_v61 = vsel %vm1105_vm4, %v1132_v30, %v1134_v42  ;;  %v1133_v19 = vsel %vm1105_vm4, %v1131_v18, %v1132_v30  ;;  %v3871_v18 = vld [vmem:[#allocation2_spill] sm:$0xff] }
  0xee   : > { %v981_v62 = vsel %vm959_vm1, %v3871_v18, %v3049_v10  ;;  %v3876_v18 = vld [vmem:[#allocation9_spill] sm:$0xff] }
  0xef   : > { %1200 = vrot.lane.b32.xlu1 %v1125_v63, %s2455_s25  ;;  %1198 = vrot.lane.b32.xlu0 %v1123_v14, %s2455_s25  ;;  %v979_v63 = vsel %vm959_vm1, %v3866_v21, %v2999_v32  ;;  %v3867_v14 = vld [vmem:[#allocation31_spill] sm:$0xff]  ;;  %v1308_v32 = vrot.slane %v3190_v17, 2  ;;  %v3268_v59 = vsel %vm1008_vm3, %v981_v62, %v3075_v16 }
  0xf0   : > { %v980_v55 = vsel %vm959_vm1, %v3867_v14, %v3010_v29  ;;  %v3219_v11 = vsel %vm1008_vm3, %v979_v63, %v3038_v54  ;;  %v1141_v10 = vrot.slane %v3268_v59, 1 }
  0xf1   : > { %v3153_v27 = vpop.permute.xlu1 %867  ;;  %v3155_v49 = vpop.permute.xlu0 %865  ;;  %v1029_v50 = vsel %vm1008_vm3, %v980_v55, %v3036_v53  ;;  %v1137_v20 = vrot.slane %v3219_v11, 1  ;;  %v1310_v44 = vsel %vm1282_vm5, %v1308_v32, %v1309_v15 }
  0xf2   : > { %v1139_v54 = vrot.slane %v1029_v50, 1  ;;  %v1316_v8 = vrot.slane %v1029_v50, 2  ;;  %v3872_v50 = vld [vmem:[#allocation7_spill] sm:$0xff] }
  0xf3   : > { %1377 = vrot.lane.b32.xlu1 %v1302_v4, %s2456_s27  ;;  %1375 = vrot.lane.b32.xlu0 %v1300_v9, %s2456_s27  ;;  %v3868_v4 = vld [vmem:[#allocation30_spill] sm:$0xff]  ;;  %v985_v32 = vsel %vm959_vm1, %v3872_v50, %v3114_v6  ;;  %v1318_v6 = vrot.slane %v3268_v59, 2 }
  0xf4   : > { %v978_v29 = vsel %vm959_vm1, %v3868_v4, %v3001_v36  ;;  %v1140_v42 = vsel %vm1105_vm4, %v1137_v20, %v1139_v54  ;;  %v3873_v4 = vld [vmem:[#allocation6_spill] sm:$0xff] }
  0xf5   : > { %v3164_v22 = vpop.permute.xlu1 %725  ;;  %v3166_v23 = vpop.permute.xlu0 %723  ;;  %v3229_v9 = vsel %vm1008_vm3, %v978_v29, %v3008_v33  ;;  %v1314_v33 = vrot.slane %v3219_v11, 2  ;;  %v986_v29 = vsel %vm959_vm1, %v3873_v4, %v3127_v40 }
  0xf6   : > { %v1136_v36 = vrot.slane %v3229_v9, 1  ;;  %v1313_v39 = vrot.slane %v3229_v9, 2 }
  0xf7   : > { %1204 = vrot.lane.b32.xlu1 %v1130_v45, %s2455_s25  ;;  %1202 = vrot.lane.b32.xlu0 %v1128_v0, %s2455_s25  ;;  %v1317_v63 = vsel %vm1282_vm5, %v1314_v33, %v1316_v8 }
  0xf8   : > { %v1138_v30 = vsel %vm1105_vm4, %v1136_v36, %v1137_v20  ;;  %v1315_v14 = vsel %vm1282_vm5, %v1313_v39, %v1314_v33  ;;  %v3874_v36 = vld [vmem:[#allocation5_spill] sm:$0xff] }
  0xf9   : > { %v3192_v28 = vpop.permute.xlu1 %869  ;;  %v3194_v41 = vpop.permute.xlu0 %727  ;;  %v984_v40 = vsel %vm959_vm1, %v3874_v36, %v3116_v2  ;;  %v3879_v36 = vld [vmem:[#allocation12_spill] sm:$0xff] }
  0xfa   : > { %v3307_v8 = vsel %vm1008_vm3, %v984_v40, %v3125_v35  ;;  %v989_v62 = vsel %vm959_vm1, %v3876_v18, %v3194_v41 }
  0xfb   : > { %1381 = vrot.lane.b32.xlu1 %v1307_v47, %s2456_s27  ;;  %1379 = vrot.lane.b32.xlu0 %v1305_v57, %s2456_s27  ;;  %v1032_v47 = vsel %vm1008_vm3, %v983_v51, %v3086_v7  ;;  %v3258_v57 = vsel %vm1008_vm3, %v982_v25, %v3088_v56  ;;  %v1146_v2 = vrot.slane %v3307_v8, 1 }
  0xfc   : > { %v1144_v56 = vrot.slane %v1032_v47, 1  ;;  %v1142_v21 = vrot.slane %v3258_v57, 1  ;;  %v1321_v55 = vrot.slane %v1032_v47, 2  ;;  %v1319_v16 = vrot.slane %v3258_v57, 2  ;;  %v3875_v47 = vld [vmem:[#allocation10_spill] sm:$0xff] }
  0xfd   : > { %v3203_v1 = vpop.permute.xlu1 %873  ;;  %v3205_v24 = vpop.permute.xlu0 %871  ;;  %v988_v39 = vsel %vm959_vm1, %v3875_v47, %v3164_v22  ;;  %v1323_v22 = vrot.slane %v3307_v8, 2 }
  0xfe   : > { %v1145_v54 = vsel %vm1105_vm4, %v1142_v21, %v1144_v56  ;;  %v1143_v20 = vsel %vm1105_vm4, %v1141_v10, %v1142_v21  ;;  %v1322_v25 = vsel %vm1282_vm5, %v1319_v16, %v1321_v55  ;;  %v1320_v52 = vsel %vm1282_vm5, %v1318_v6, %v1319_v16  ;;  %v3877_v10 = vld [vmem:[#allocation8_spill] sm:$0xff] }
  0xff   : > { %1208 = vrot.lane.b32.xlu1 %v1135_v61, %s2455_s25  ;;  %1206 = vrot.lane.b32.xlu0 %v1133_v19, %s2455_s25  ;;  %v987_v41 = vsel %vm959_vm1, %v3877_v10, %v3166_v23  ;;  %v3882_v10 = vld [vmem:[#allocation15_spill] sm:$0xff] }
 0x100   : > { %v3340_v55 = vsel %vm1008_vm3, %v987_v41, %v3192_v28 }
 0x101   : > { %v3231_v48 = vpop.permute.xlu1 %731  ;;  %v3233_v53 = vpop.permute.xlu0 %729  ;;  %v1151_v23 = vrot.slane %v3340_v55, 1 }
 0x103   : > { %1385 = vrot.lane.b32.xlu1 %v1312_v13, %s2456_s27  ;;  %1383 = vrot.lane.b32.xlu0 %v1310_v44, %s2456_s27  ;;  %v1035_v13 = vsel %vm1008_vm3, %v986_v29, %v3153_v27  ;;  %v3297_v44 = vsel %vm1008_vm3, %v985_v32, %v3155_v49 }
 0x104   : > { %v1149_v3 = vrot.slane %v1035_v13, 1  ;;  %v1147_v49 = vrot.slane %v3297_v44, 1  ;;  %v1326_v51 = vrot.slane %v1035_v13, 2  ;;  %v1324_v35 = vrot.slane %v3297_v44, 2  ;;  %v3878_v13 = vld [vmem:[#allocation13_spill] sm:$0xff] }
 0x105   : > { %v3242_v45 = vpop.permute.xlu1 %875  ;;  %v3244_v0 = vpop.permute.xlu0 %733  ;;  %v991_v6 = vsel %vm959_vm1, %v3878_v13, %v3231_v48  ;;  %v1328_v48 = vrot.slane %v3340_v55, 2 }
 0x106   : > { %v1150_v56 = vsel %vm1105_vm4, %v1147_v49, %v1149_v3  ;;  %v1148_v21 = vsel %vm1105_vm4, %v1146_v2, %v1147_v49  ;;  %v1327_v32 = vsel %vm1282_vm5, %v1324_v35, %v1326_v51  ;;  %v1325_v4 = vsel %vm1282_vm5, %v1323_v22, %v1324_v35  ;;  %v3880_v2 = vld [vmem:[#allocation11_spill] sm:$0xff] }
 0x107   : > { %1212 = vrot.lane.b32.xlu1 %v1140_v42, %s2455_s25  ;;  %1210 = vrot.lane.b32.xlu0 %v1138_v30, %s2455_s25  ;;  %v992_v40 = vsel %vm959_vm1, %v3879_v36, %v3244_v0  ;;  %v990_v0 = vsel %vm959_vm1, %v3880_v2, %v3233_v53  ;;  %v3885_v2 = vld [vmem:[#allocation18_spill] sm:$0xff] }
 0x108   : > { %v3373_v51 = vsel %vm1008_vm3, %v990_v0, %v3242_v45 }
 0x109   : > { %v3270_v15 = vpop.permute.xlu1 %879  ;;  %v3272_v7 = vpop.permute.xlu0 %877 }
 0x10b   : > { %1389 = vrot.lane.b32.xlu1 %v1317_v63, %s2456_s27  ;;  %1387 = vrot.lane.b32.xlu0 %v1315_v14, %s2456_s27  ;;  %v1038_v63 = vsel %vm1008_vm3, %v989_v62, %v3203_v1  ;;  %v3330_v14 = vsel %vm1008_vm3, %v988_v39, %v3205_v24  ;;  %v1156_v62 = vrot.slane %v3373_v51, 1 }
 0x10c   : > { %v1154_v50 = vrot.slane %v1038_v63, 1  ;;  %v1152_v24 = vrot.slane %v3330_v14, 1  ;;  %v1331_v29 = vrot.slane %v1038_v63, 2  ;;  %v1329_v28 = vrot.slane %v3330_v14, 2  ;;  %v3881_v63 = vld [vmem:[#allocation16_spill] sm:$0xff] }
 0x10d   : > { %v3281_v61 = vpop.permute.xlu1 %737  ;;  %v3283_v19 = vpop.permute.xlu0 %735 }
 0x10e   : > { %v1155_v3 = vsel %vm1105_vm4, %v1152_v24, %v1154_v50  ;;  %v1153_v49 = vsel %vm1105_vm4, %v1151_v23, %v1152_v24  ;;  %v1332_v39 = vsel %vm1282_vm5, %v1329_v28, %v1331_v29  ;;  %v1330_v18 = vsel %vm1282_vm5, %v1328_v48, %v1329_v28 }
 0x10f   : > { %1216 = vrot.lane.b32.xlu1 %v1145_v54, %s2455_s25  ;;  %1214 = vrot.lane.b32.xlu0 %v1143_v20, %s2455_s25  ;;  %v994_v22 = vsel %vm959_vm1, %v3881_v63, %v3281_v61  ;;  %v1333_v23 = vrot.slane %v3373_v51, 2  ;;  %v3883_v61 = vld [vmem:[#allocation14_spill] sm:$0xff] }
 0x110   : > { %v993_v29 = vsel %vm959_vm1, %v3883_v61, %v3283_v19  ;;  %v3888_v61 = vld [vmem:[#allocation21_spill] sm:$0xff] }
 0x111   : > { %v3309_v33 = vpop.permute.xlu1 %881  ;;  %v740_v27 = vpop.permute.xlu0 %739 }
 0x112   : > { %v995_v41 = vsel %vm959_vm1, %v3882_v10, %v740_v27  ;;  %v3401_v27 = vsel %vm1008_vm3, %v993_v29, %v3309_v33 }
 0x113   : > { %1393 = vrot.lane.b32.xlu1 %v1322_v25, %s2456_s27  ;;  %1391 = vrot.lane.b32.xlu0 %v1320_v52, %s2456_s27  ;;  %v1041_v25 = vsel %vm1008_vm3, %v992_v40, %v3270_v15  ;;  %v3363_v52 = vsel %vm1008_vm3, %v991_v6, %v3272_v7  ;;  %v1161_v40 = vrot.slane %v3401_v27, 1 }
 0x114   : > { %v1159_v47 = vrot.slane %v1041_v25, 1  ;;  %v1157_v7 = vrot.slane %v3363_v52, 1  ;;  %v1336_v53 = vrot.slane %v1041_v25, 2  ;;  %v3884_v25 = vld [vmem:[#allocation19_spill] sm:$0xff] }
 0x115   : > { %v886_v42 = vpop.permute.xlu1 %885  ;;  %v884_v30 = vpop.permute.xlu0 %883 }
 0x116   : > { %v1160_v50 = vsel %vm1105_vm4, %v1157_v7, %v1159_v47  ;;  %v1158_v24 = vsel %vm1105_vm4, %v1156_v62, %v1157_v7  ;;  %v1338_v62 = vrot.slane %v3401_v27, 2 }
 0x117   : > { %1220 = vrot.lane.b32.xlu1 %v1150_v56, %s2455_s25  ;;  %1218 = vrot.lane.b32.xlu0 %v1148_v21, %s2455_s25  ;;  %v1334_v56 = vrot.slane %v3363_v52, 2 }
 0x119   : > { %v744_v16 = vpop.permute.xlu1 %743  ;;  %v3342_v1 = vpop.permute.xlu0 %741  ;;  %v1337_v6 = vsel %vm1282_vm5, %v1334_v56, %v1336_v53  ;;  %v1335_v36 = vsel %vm1282_vm5, %v1333_v23, %v1334_v56 }
 0x11a   : > { %v997_v48 = vsel %vm959_vm1, %v3884_v25, %v744_v16  ;;  %v3886_v16 = vld [vmem:[#allocation17_spill] sm:$0xff] }
 0x11b   : > { %1397 = vrot.lane.b32.xlu1 %v1327_v32, %s2456_s27  ;;  %1395 = vrot.lane.b32.xlu0 %v1325_v4, %s2456_s27  ;;  %v1044_v32 = vsel %vm1008_vm3, %v995_v41, %v886_v42  ;;  %v3391_v4 = vsel %vm1008_vm3, %v994_v22, %v884_v30  ;;  %v996_v53 = vsel %vm959_vm1, %v3886_v16, %v3342_v1  ;;  %v3891_v16 = vld [vmem:[#allocation24_spill] sm:$0xff] }
 0x11c   : > { %v1164_v42 = vrot.slane %v1044_v32, 1  ;;  %v1162_v30 = vrot.slane %v3391_v4, 1  ;;  %v1341_v19 = vrot.slane %v1044_v32, 2  ;;  %v3887_v32 = vld [vmem:[#allocation22_spill] sm:$0xff] }
 0x11d   : > { %v888_v54 = vpop.permute.xlu1 %887  ;;  %v746_v20 = vpop.permute.xlu0 %745 }
 0x11e   : > { %v998_v0 = vsel %vm959_vm1, %v3885_v2, %v746_v20  ;;  %v1165_v47 = vsel %vm1105_vm4, %v1162_v30, %v1164_v42  ;;  %v1163_v7 = vsel %vm1105_vm4, %v1161_v40, %v1162_v30  ;;  %v3427_v20 = vsel %vm1008_vm3, %v996_v53, %v888_v54 }
 0x11f   : > { %1224 = vrot.lane.b32.xlu1 %v1155_v3, %s2455_s25  ;;  %1222 = vrot.lane.b32.xlu0 %v1153_v49, %s2455_s25  ;;  %v1339_v3 = vrot.slane %v3391_v4, 2  ;;  %v1166_v41 = vrot.slane %v3427_v20, 1  ;;  %v1343_v40 = vrot.slane %v3427_v20, 2 }
 0x121   : > { %v892_v35 = vpop.permute.xlu1 %891  ;;  %v890_v15 = vpop.permute.xlu0 %889  ;;  %v1340_v10 = vsel %vm1282_vm5, %v1338_v62, %v1339_v3 }
 0x123   : > { %1401 = vrot.lane.b32.xlu1 %v1332_v39, %s2456_s27  ;;  %1399 = vrot.lane.b32.xlu0 %v1330_v18, %s2456_s27  ;;  %v1047_v39 = vsel %vm1008_vm3, %v998_v0, %v892_v35  ;;  %v3418_v18 = vsel %vm1008_vm3, %v997_v48, %v890_v15  ;;  %v1342_v15 = vsel %vm1282_vm5, %v1339_v3, %v1341_v19  ;;  %v3889_v19 = vld [vmem:[#allocation20_spill] sm:$0xff] }
 0x124   : > { %v1169_v22 = vrot.slane %v1047_v39, 1  ;;  %v1167_v35 = vrot.slane %v3418_v18, 1  ;;  %v1344_v1 = vrot.slane %v3418_v18, 2 }
 0x125   : > { %v750_v45 = vpop.permute.xlu1 %749  ;;  %v748_v21 = vpop.permute.xlu0 %747 }
 0x126   : > { %v1000_v23 = vsel %vm959_vm1, %v3887_v32, %v750_v45  ;;  %v1170_v42 = vsel %vm1105_vm4, %v1167_v35, %v1169_v22  ;;  %v1168_v30 = vsel %vm1105_vm4, %v1166_v41, %v1167_v35  ;;  %v999_v45 = vsel %vm959_vm1, %v3889_v19, %v748_v21  ;;  %v3893_v19 = vld [vmem:[#allocation28_spill] sm:$0xff] }
 0x127   : > { %1228 = vrot.lane.b32.xlu1 %v1160_v50, %s2455_s25  ;;  %1226 = vrot.lane.b32.xlu0 %v1158_v24, %s2455_s25  ;;  %v1346_v50 = vrot.slane %v1047_v39, 2  ;;  %v1345_v2 = vsel %vm1282_vm5, %v1343_v40, %v1344_v1  ;;  %v3890_v39 = vld [vmem:[#allocation25_spill] sm:$0xff] }
 0x129   : > { %v894_v28 = vpop.permute.xlu1 %893  ;;  %v752_v13 = vpop.permute.xlu0 %751 }
 0x12a   : > { %v1001_v29 = vsel %vm959_vm1, %v3888_v61, %v752_v13  ;;  %v3452_v13 = vsel %vm1008_vm3, %v999_v45, %v894_v28 }
 0x12b   : > { %1405 = vrot.lane.b32.xlu1 %v1337_v6, %s2456_s27  ;;  %1403 = vrot.lane.b32.xlu0 %v1335_v36, %s2456_s27  ;;  %v1171_v0 = vrot.slane %v3452_v13, 1  ;;  %v1348_v41 = vrot.slane %v3452_v13, 2 }
 0x12d   : > { %v898_v33 = vpop.permute.xlu1 %897  ;;  %v896_v49 = vpop.permute.xlu0 %895 }
 0x12e   : > { %v1050_v6 = vsel %vm1008_vm3, %v1001_v29, %v898_v33  ;;  %v3444_v36 = vsel %vm1008_vm3, %v1000_v23, %v896_v49  ;;  %v1347_v49 = vsel %vm1282_vm5, %v1344_v1, %v1346_v50  ;;  %v3892_v50 = vld [vmem:[#allocation23_spill] sm:$0xff] }
 0x12f   : > { %1232 = vrot.lane.b32.xlu1 %v1165_v47, %s2455_s25  ;;  %1230 = vrot.lane.b32.xlu0 %v1163_v7, %s2455_s25  ;;  %v1174_v48 = vrot.slane %v1050_v6, 1  ;;  %v1172_v33 = vrot.slane %v3444_v36, 1  ;;  %v1351_v47 = vrot.slane %v1050_v6, 2  ;;  %v1349_v21 = vrot.slane %v3444_v36, 2 }
 0x131   : > { %v756_v56 = vpop.permute.xlu1 %755  ;;  %v754_v63 = vpop.permute.xlu0 %753  ;;  %v1175_v22 = vsel %vm1105_vm4, %v1172_v33, %v1174_v48  ;;  %v1173_v35 = vsel %vm1105_vm4, %v1171_v0, %v1172_v33  ;;  %v1352_v29 = vsel %vm1282_vm5, %v1349_v21, %v1351_v47  ;;  %v3895_v47 = vld [vmem:[#allocation26_spill] sm:$0xff] }
 0x132   : > { %v1003_v62 = vsel %vm959_vm1, %v3890_v39, %v756_v56  ;;  %v1002_v56 = vsel %vm959_vm1, %v3892_v50, %v754_v63 }
 0x133   : > { %1409 = vrot.lane.b32.xlu1 %v1342_v15, %s2456_s27  ;;  %1407 = vrot.lane.b32.xlu0 %v1340_v10, %s2456_s27 }
 0x135   : > { %v900_v54 = vpop.permute.xlu1 %899  ;;  %v758_v24 = vpop.permute.xlu0 %757 }
 0x136   : > { %v1004_v53 = vsel %vm959_vm1, %v3891_v16, %v758_v24  ;;  %v3477_v1 = vsel %vm1008_vm3, %v1002_v56, %v900_v54 }
 0x137   : > { %1236 = vrot.lane.b32.xlu1 %v1170_v42, %s2455_s25  ;;  %1234 = vrot.lane.b32.xlu0 %v1168_v30, %s2455_s25  ;;  %v1350_v42 = vsel %vm1282_vm5, %v1348_v41, %v1349_v21  ;;  %v1176_v30 = vrot.slane %v3477_v1, 1  ;;  %v1353_v0 = vrot.slane %v3477_v1, 2 }
 0x139   : > { %v904_v3 = vpop.permute.xlu1 %903  ;;  %v902_v25 = vpop.permute.xlu0 %901 }
 0x13a   : > { %v1053_v15 = vsel %vm1008_vm3, %v1004_v53, %v904_v3  ;;  %v3469_v10 = vsel %vm1008_vm3, %v1003_v62, %v902_v25  ;;  %v3894_v3 = vld [vmem:[#allocation27_spill] sm:$0xff] }
 0x13b   : > { %1413 = vrot.lane.b32.xlu1 %v1347_v49, %s2456_s27  ;;  %1411 = vrot.lane.b32.xlu0 %v1345_v2, %s2456_s27  ;;  %v1179_v23 = vrot.slane %v1053_v15, 1  ;;  %v1177_v61 = vrot.slane %v3469_v10, 1  ;;  %v1356_v6 = vrot.slane %v1053_v15, 2  ;;  %v1354_v63 = vrot.slane %v3469_v10, 2 }
 0x13d   : > { %v762_v28 = vpop.permute.xlu1 %761  ;;  %v760_v7 = vpop.permute.xlu0 %759  ;;  %v1180_v48 = vsel %vm1105_vm4, %v1177_v61, %v1179_v23  ;;  %v1178_v33 = vsel %vm1105_vm4, %v1176_v30, %v1177_v61 }
 0x13e   : > { %v1006_v45 = vsel %vm959_vm1, %v3893_v19, %v762_v28  ;;  %v1005_v21 = vsel %vm959_vm1, %v3895_v47, %v760_v7 }
 0x13f   : > { %1240 = vrot.lane.b32.xlu1 %v1175_v22, %s2455_s25  ;;  %1238 = vrot.lane.b32.xlu0 %v1173_v35, %s2455_s25  ;;  %v1357_v22 = vsel %vm1282_vm5, %v1354_v63, %v1356_v6  ;;  %v1355_v35 = vsel %vm1282_vm5, %v1353_v0, %v1354_v63 }
 0x141   : > { %v906_v24 = vpop.permute.xlu1 %905  ;;  %v764_v32 = vpop.permute.xlu0 %763 }
 0x142   : > { %v1007_v25 = vsel %vm959_vm1, %v3894_v3, %v764_v32  ;;  %v3502_v28 = vsel %vm1008_vm3, %v1005_v21, %v906_v24 }
 0x143   : > { %1417 = vrot.lane.b32.xlu1 %v1352_v29, %s2456_s27  ;;  %1415 = vrot.lane.b32.xlu0 %v1350_v42, %s2456_s27  ;;  %v1181_v7 = vrot.slane %v3502_v28, 1  ;;  %v1358_v30 = vrot.slane %v3502_v28, 2 }
 0x145   : > { %v910_v54 = vpop.permute.xlu1 %909  ;;  %v908_v40 = vpop.permute.xlu0 %907 }
 0x146   : > { %v1056_v49 = vsel %vm1008_vm3, %v1007_v25, %v910_v54  ;;  %v3494_v2 = vsel %vm1008_vm3, %v1006_v45, %v908_v40 }
 0x147   : > { %1244 = vrot.lane.b32.xlu1 %v1180_v48, %s2455_s25  ;;  %1242 = vrot.lane.b32.xlu0 %v1178_v33, %s2455_s25  ;;  %v1184_v16 = vrot.slane %v1056_v49, 1  ;;  %v1182_v53 = vrot.slane %v3494_v2, 1  ;;  %v1361_v15 = vrot.slane %v1056_v49, 2  ;;  %v1359_v41 = vrot.slane %v3494_v2, 2 }
 0x149   : > { %v1189_v39 = vpop.permute.xlu1 %1188  ;;  %v1187_v62 = vpop.permute.xlu0 %1186  ;;  %v1185_v61 = vsel %vm1105_vm4, %v1182_v53, %v1184_v16  ;;  %v1183_v29 = vsel %vm1105_vm4, %v1181_v7, %v1182_v53  ;;  %v1362_v6 = vsel %vm1282_vm5, %v1359_v41, %v1361_v15  ;;  %v1360_v63 = vsel %vm1282_vm5, %v1358_v30, %v1359_v41 }
 0x14a   : > { %v1461_v50 = vsel %vm1459_vm6, %v2986_v43, %v1189_v39  ;;  %v1460_v56 = vsel %vm1459_vm6, %v2997_v31, %v1187_v62 }
 0x14b   : > { %1421 = vrot.lane.b32.xlu1 %v1357_v22, %s2456_s27  ;;  %1419 = vrot.lane.b32.xlu0 %v1355_v35, %s2456_s27 }
 0x14d   : > { %v1366_v24 = vpop.permute.xlu1 %1365  ;;  %v1364_v32 = vpop.permute.xlu0 %1363 }
 0x14e   : > { %v1494_v23 = vsel %vm1492_vm7, %v1461_v50, %v1366_v24  ;;  %v1493_v42 = vsel %vm1492_vm7, %v1460_v56, %v1364_v32 }
 0x14f   : > { %1248 = vrot.lane.b32.xlu1 %v1185_v61, %s2455_s25  ;;  %1246 = vrot.lane.b32.xlu0 %v1183_v29, %s2455_s25 }
 0x150   : > { %2339 = vmatprep.mubr.msk.f32.mxu0 %vm1530_vm8, %v1493_v42 }
 0x151   : > { %2340 = vmatmul.mubr.msk.f32.vlgmr.msra.gmra.mrb[0].mxu0 %vm1530_vm8, %v1494_v23  ;;  %v1193_v43 = vpop.permute.xlu1 %1192  ;;  %v1191_v31 = vpop.permute.xlu0 %1190 }
 0x152   : > { %v1463_v54 = vsel %vm1459_vm6, %v3024_v38, %v1193_v43  ;;  %v1462_v40 = vsel %vm1459_vm6, %v3034_v37, %v1191_v31 }
 0x153   : > { %1425 = vrot.lane.b32.xlu1 %v1362_v6, %s2456_s27  ;;  %1423 = vrot.lane.b32.xlu0 %v1360_v63, %s2456_s27 }
 0x155   : > { %v1370_v19 = vpop.permute.xlu1 %1369  ;;  %v1368_v45 = vpop.permute.xlu0 %1367 }
 0x156   : > { %v1496_v3 = vsel %vm1492_vm7, %v1463_v54, %v1370_v19  ;;  %v1495_v25 = vsel %vm1492_vm7, %v1462_v40, %v1368_v45 }
 0x157   : > { %2342 = vmatprep.mubr.msk.f32.mxu0 %vm1530_vm8, %v1495_v25 }
 0x158   : > { %2343 = vmatmul.mubr.msk.f32.gmra.mrb[2].mxu0 %vm1530_vm8, %v1496_v3 }
 0x159   : > { %v1197_v48 = vpop.permute.xlu1 %1196  ;;  %v1195_v33 = vpop.permute.xlu0 %1194 }
 0x15a   : > { %v1465_v49 = vsel %vm1459_vm6, %v3063_v34, %v1197_v48  ;;  %v1464_v38 = vsel %vm1459_vm6, %v3073_v58, %v1195_v33 }
 0x15d   : > { %v1374_v0 = vpop.permute.xlu1 %1373  ;;  %v1372_v37 = vpop.permute.xlu0 %1371 }
 0x15e   : > { %v1498_v47 = vsel %vm1492_vm7, %v1465_v49, %v1374_v0  ;;  %v1497_v21 = vsel %vm1492_vm7, %v1464_v38, %v1372_v37 }
 0x15f   : > { %2345 = vmatprep.mubr.msk.f32.mxu0 %vm1530_vm8, %v1497_v21 }
 0x160   : > { %2346 = vmatmul.mubr.msk.f32.gmra.mrb[4].mxu0 %vm1530_vm8, %v1498_v47 }
 0x161   : > { %v1201_v39 = vpop.permute.xlu1 %1200  ;;  %v1199_v62 = vpop.permute.xlu0 %1198 }
 0x162   : > { %v1467_v16 = vsel %vm1459_vm6, %v3102_v46, %v1201_v39  ;;  %v1466_v34 = vsel %vm1459_vm6, %v3112_v5, %v1199_v62 }
 0x165   : > { %v1378_v53 = vpop.permute.xlu1 %1377  ;;  %v1376_v58 = vpop.permute.xlu0 %1375 }
 0x166   : > { %v1500_v22 = vsel %vm1492_vm7, %v1467_v16, %v1378_v53  ;;  %v1499_v35 = vsel %vm1492_vm7, %v1466_v34, %v1376_v58 }
 0x167   : > { %2348 = vmatprep.mubr.msk.f32.mxu0 %vm1530_vm8, %v1499_v35 }
 0x168   : > { %2349 = vmatmul.mubr.msk.f32.gmra.mrb[6].mxu0 %vm1530_vm8, %v1500_v22 }
 0x169   : > { %v1205_v7 = vpop.permute.xlu1 %1204  ;;  %v1203_v15 = vpop.permute.xlu0 %1202 }
 0x16a   : > { %v1469_v41 = vsel %vm1459_vm6, %v3141_v12, %v1205_v7  ;;  %v1468_v46 = vsel %vm1459_vm6, %v3151_v26, %v1203_v15 }
 0x16d   : > { %v1382_v50 = vpop.permute.xlu1 %1381  ;;  %v1380_v5 = vpop.permute.xlu0 %1379 }
 0x16e   : > { %v1502_v56 = vsel %vm1492_vm7, %v1469_v41, %v1382_v50  ;;  %v1501_v24 = vsel %vm1492_vm7, %v1468_v46, %v1380_v5 }
 0x16f   : > { %2351 = vmatprep.mubr.msk.f32.mxu0 %vm1530_vm8, %v1501_v24 }
 0x170   : > { %2352 = vmatmul.mubr.msk.f32.gmra.mrb[8].mxu0 %vm1530_vm8, %v1502_v56 }
 0x171   : > { %v1209_v32 = vpop.permute.xlu1 %1208  ;;  %v1207_v23 = vpop.permute.xlu0 %1206 }
 0x172   : > { %v1471_v61 = vsel %vm1459_vm6, %v3180_v60, %v1209_v32  ;;  %v1470_v12 = vsel %vm1459_vm6, %v3190_v17, %v1207_v23 }
 0x175   : > { %v1386_v29 = vpop.permute.xlu1 %1385  ;;  %v1384_v26 = vpop.permute.xlu0 %1383 }
 0x176   : > { %v1504_v42 = vsel %vm1492_vm7, %v1471_v61, %v1386_v29  ;;  %v1503_v30 = vsel %vm1492_vm7, %v1470_v12, %v1384_v26 }
 0x177   : > { %2354 = vmatprep.mubr.msk.f32.mxu0 %vm1530_vm8, %v1503_v30 }
 0x178   : > { %2355 = vmatmul.mubr.msk.f32.gmra.mrb[10].mxu0 %vm1530_vm8, %v1504_v42 }
 0x179   : > { %v1213_v43 = vpop.permute.xlu1 %1212  ;;  %v1211_v31 = vpop.permute.xlu0 %1210 }
 0x17a   : > { %v1473_v6 = vsel %vm1459_vm6, %v3219_v11, %v1213_v43  ;;  %v1472_v60 = vsel %vm1459_vm6, %v3229_v9, %v1211_v31 }
 0x17d   : > { %v1390_v63 = vpop.permute.xlu1 %1389  ;;  %v1388_v17 = vpop.permute.xlu0 %1387 }
 0x17e   : > { %v1506_v54 = vsel %vm1492_vm7, %v1473_v6, %v1390_v63  ;;  %v1505_v40 = vsel %vm1492_vm7, %v1472_v60, %v1388_v17 }
 0x17f   : > { %2357 = vmatprep.mubr.msk.f32.mxu0 %vm1530_vm8, %v1505_v40 }
 0x180   : > { %2358 = vmatmul.mubr.msk.f32.gmra.mrb[12].mxu0 %vm1530_vm8, %v1506_v54 }
 0x181   : > { %v1217_v19 = vpop.permute.xlu1 %1216  ;;  %v1215_v45 = vpop.permute.xlu0 %1214 }
 0x182   : > { %v1475_v3 = vsel %vm1459_vm6, %v3258_v57, %v1217_v19  ;;  %v1474_v11 = vsel %vm1459_vm6, %v3268_v59, %v1215_v45 }
 0x185   : > { %v1394_v25 = vpop.permute.xlu1 %1393  ;;  %v1392_v9 = vpop.permute.xlu0 %1391 }
 0x186   : > { %v1508_v48 = vsel %vm1492_vm7, %v1475_v3, %v1394_v25  ;;  %v1507_v33 = vsel %vm1492_vm7, %v1474_v11, %v1392_v9 }
 0x187   : > { %2360 = vmatprep.mubr.msk.f32.mxu0 %vm1530_vm8, %v1507_v33 }
 0x188   : > { %2361 = vmatmul.mubr.msk.f32.gmra.mrb[14].mxu0 %vm1530_vm8, %v1508_v48 }
 0x189   : > { %v1221_v49 = vpop.permute.xlu1 %1220  ;;  %v1219_v38 = vpop.permute.xlu0 %1218 }
 0x18a   : > { %v1477_v0 = vsel %vm1459_vm6, %v3297_v44, %v1221_v49  ;;  %v1476_v57 = vsel %vm1459_vm6, %v3307_v8, %v1219_v38 }
 0x18d   : > { %v1398_v37 = vpop.permute.xlu1 %1397  ;;  %v1396_v59 = vpop.permute.xlu0 %1395 }
 0x18e   : > { %v1510_v47 = vsel %vm1492_vm7, %v1477_v0, %v1398_v37  ;;  %v1509_v21 = vsel %vm1492_vm7, %v1476_v57, %v1396_v59 }
 0x18f   : > { %2363 = vmatprep.mubr.msk.f32.mxu1 %vm1530_vm8, %v1509_v21 }
 0x190   : > { %2364 = vmatmul.mubr.msk.f32.vlgmr.msra.gmra.mrb[0].mxu1 %vm1530_vm8, %v1510_v47 }
 0x191   : > { %v1225_v39 = vpop.permute.xlu1 %1224  ;;  %v1223_v62 = vpop.permute.xlu0 %1222 }
 0x192   : > { %v1479_v16 = vsel %vm1459_vm6, %v3330_v14, %v1225_v39  ;;  %v1478_v44 = vsel %vm1459_vm6, %v3340_v55, %v1223_v62 }
 0x195   : > { %v1402_v34 = vpop.permute.xlu1 %1401  ;;  %v1400_v8 = vpop.permute.xlu0 %1399 }
 0x196   : > { %v1512_v53 = vsel %vm1492_vm7, %v1479_v16, %v1402_v34  ;;  %v1511_v58 = vsel %vm1492_vm7, %v1478_v44, %v1400_v8 }
 0x197   : > { %2366 = vmatprep.mubr.msk.f32.mxu1 %vm1530_vm8, %v1511_v58 }
 0x198   : > { %2367 = vmatmul.mubr.msk.f32.gmra.mrb[2].mxu1 %vm1530_vm8, %v1512_v53 }
 0x199   : > { %v1229_v22 = vpop.permute.xlu1 %1228  ;;  %v1227_v35 = vpop.permute.xlu0 %1226 }
 0x19a   : > { %v1481_v7 = vsel %vm1459_vm6, %v3363_v52, %v1229_v22  ;;  %v1480_v14 = vsel %vm1459_vm6, %v3373_v51, %v1227_v35 }
 0x19d   : > { %v1406_v15 = vpop.permute.xlu1 %1405  ;;  %v1404_v55 = vpop.permute.xlu0 %1403 }
 0x19e   : > { %v1514_v41 = vsel %vm1492_vm7, %v1481_v7, %v1406_v15  ;;  %v1513_v46 = vsel %vm1492_vm7, %v1480_v14, %v1404_v55 }
 0x19f   : > { %2369 = vmatprep.mubr.msk.f32.mxu1 %vm1530_vm8, %v1513_v46 }
 0x1a0   : > { %2370 = vmatmul.mubr.msk.f32.gmra.mrb[4].mxu1 %vm1530_vm8, %v1514_v41 }
 0x1a1   : > { %v1233_v50 = vpop.permute.xlu1 %1232  ;;  %v1231_v5 = vpop.permute.xlu0 %1230 }
 0x1a2   : > { %v1483_v56 = vsel %vm1459_vm6, %v3391_v4, %v1233_v50  ;;  %v1482_v52 = vsel %vm1459_vm6, %v3401_v27, %v1231_v5 }
 0x1a5   : > { %v1410_v24 = vpop.permute.xlu1 %1409  ;;  %v1408_v51 = vpop.permute.xlu0 %1407 }
 0x1a6   : > { %v1516_v32 = vsel %vm1492_vm7, %v1483_v56, %v1410_v24  ;;  %v1515_v23 = vsel %vm1492_vm7, %v1482_v52, %v1408_v51 }
 0x1a7   : > { %2372 = vmatprep.mubr.msk.f32.mxu1 %vm1530_vm8, %v1515_v23 }
 0x1a8   : > { %2373 = vmatmul.mubr.msk.f32.gmra.mrb[6].mxu1 %vm1530_vm8, %v1516_v32 }
 0x1a9   : > { %v1237_v61 = vpop.permute.xlu1 %1236  ;;  %v1235_v12 = vpop.permute.xlu0 %1234 }
 0x1aa   : > { %v1485_v29 = vsel %vm1459_vm6, %v3418_v18, %v1237_v61  ;;  %v1484_v4 = vsel %vm1459_vm6, %v3427_v20, %v1235_v12 }
 0x1ad   : > { %v1414_v26 = vpop.permute.xlu1 %1413  ;;  %v1412_v27 = vpop.permute.xlu0 %1411 }
 0x1ae   : > { %v1518_v42 = vsel %vm1492_vm7, %v1485_v29, %v1414_v26  ;;  %v1517_v30 = vsel %vm1492_vm7, %v1484_v4, %v1412_v27 }
 0x1af   : > { %2375 = vmatprep.mubr.msk.f32.mxu1 %vm1530_vm8, %v1517_v30 }
 0x1b0   : > { %2376 = vmatmul.mubr.msk.f32.gmra.mrb[8].mxu1 %vm1530_vm8, %v1518_v42 }
 0x1b1   : > { %v1241_v43 = vpop.permute.xlu1 %1240  ;;  %v1239_v31 = vpop.permute.xlu0 %1238 }
 0x1b2   : > { %v1487_v6 = vsel %vm1459_vm6, %v3444_v36, %v1241_v43  ;;  %v1486_v18 = vsel %vm1459_vm6, %v3452_v13, %v1239_v31 }
 0x1b5   : > { %v1418_v60 = vpop.permute.xlu1 %1417  ;;  %v1416_v20 = vpop.permute.xlu0 %1415 }
 0x1b6   : > { %v1520_v63 = vsel %vm1492_vm7, %v1487_v6, %v1418_v60  ;;  %v1519_v17 = vsel %vm1492_vm7, %v1486_v18, %v1416_v20 }
 0x1b7   : > { %2378 = vmatprep.mubr.msk.f32.mxu1 %vm1530_vm8, %v1519_v17 }
 0x1b8   : > { %2379 = vmatmul.mubr.msk.f32.gmra.mrb[10].mxu1 %vm1530_vm8, %v1520_v63 }
 0x1b9   : > { %v1245_v54 = vpop.permute.xlu1 %1244  ;;  %v1243_v40 = vpop.permute.xlu0 %1242 }
 0x1ba   : > { %v1489_v19 = vsel %vm1459_vm6, %v3469_v10, %v1245_v54  ;;  %v1488_v36 = vsel %vm1459_vm6, %v3477_v1, %v1243_v40 }
 0x1bd   : > { %v1422_v45 = vpop.permute.xlu1 %1421  ;;  %v1420_v13 = vpop.permute.xlu0 %1419 }
 0x1be   : > { %v1522_v3 = vsel %vm1492_vm7, %v1489_v19, %v1422_v45  ;;  %v1521_v11 = vsel %vm1492_vm7, %v1488_v36, %v1420_v13 }
 0x1bf   : > { %2381 = vmatprep.mubr.msk.f32.mxu1 %vm1530_vm8, %v1521_v11 }
 0x1c0   : > { %2382 = vmatmul.mubr.msk.f32.gmra.mrb[12].mxu1 %vm1530_vm8, %v1522_v3 }
 0x1c1   : > { %v1249_v25 = vpop.permute.xlu1 %1248  ;;  %v1247_v9 = vpop.permute.xlu0 %1246 }
 0x1c2   : > { %v1491_v48 = vsel %vm1459_vm6, %v3494_v2, %v1249_v25  ;;  %v1490_v10 = vsel %vm1459_vm6, %v3502_v28, %v1247_v9 }
 0x1c5   : > { %v1426_v1 = vpop.permute.xlu1 %1425  ;;  %v1424_v33 = vpop.permute.xlu0 %1423 }
 0x1c6   : > { %v1524_v49 = vsel %vm1492_vm7, %v1491_v48, %v1426_v1  ;;  %v1523_v38 = vsel %vm1492_vm7, %v1490_v10, %v1424_v33 }
 0x1c7   : > { %2384 = vmatprep.mubr.msk.f32.mxu1 %vm1530_vm8, %v1523_v38 }
 0x1c8   : > { %2385 = vmatmul.mubr.msk.f32.gmra.mrb[14].mxu1 %vm1530_vm8, %v1524_v49 }
 0x224   : > { %v2341_v2 = vpop.f32.mrb[0].mxu0 }
 0x225   : > { %1857 = vst.msk [vmem:[%s3652_s30 + $0x8] sm:$0xff] %vm959_vm1, %v2341_v2  ;;  %v1889_v28 = vsel %vm959_vm1, %v2341_v2, 0.0  ;;  %v1958_v0 = vmul.f32 %v2341_v2, %v2341_v2  ;;  %v1697_v57 = vpop.f32.mrb[1].mxu0 }
 0x226   : > { %1856 = vst.msk [vmem:[%s3652_s30] sm:$0xff] %vm959_vm1, %v1697_v57  ;;  %v1888_v37 = vsel %vm959_vm1, %v1697_v57, 0.0  ;;  %v1957_v59 = vmul.f32 %v1697_v57, %v1697_v57 }
 0x227   : > { %v1990_v47 = vsel %vm959_vm1, %v1958_v0, 0.0  ;;  %v1890_v21 = vadd.f32 %v1889_v28, %v1888_v37 }
 0x228   : > { %v1989_v39 = vsel %vm959_vm1, %v1957_v59, 0.0 }
 0x229   : > { %v1991_v62 = vadd.f32 %v1990_v47, %v1989_v39 }
 0x22b   : > { %v2344_v16 = vpop.f32.mrb[2].mxu0 }
 0x22c   : > { %1859 = vst.msk [vmem:[%s3652_s30 + $0x18] sm:$0xff] %vm959_vm1, %v2344_v16  ;;  %v1707_v44 = vpop.f32.mrb[3].mxu0  ;;  %v1960_v34 = vmul.f32 %v2344_v16, %v2344_v16  ;;  %v1893_v22 = vsel %vm959_vm1, %v2344_v16, 0.0 }
 0x22d   : > { %1858 = vst.msk [vmem:[%s3652_s30 + $0x10] sm:$0xff] %vm959_vm1, %v1707_v44  ;;  %v1891_v8 = vsel %vm959_vm1, %v1707_v44, 0.0  ;;  %v1959_v53 = vmul.f32 %v1707_v44, %v1707_v44 }
 0x22e   : > { %v1892_v58 = vadd.f32 %v1891_v8, %v1890_v21  ;;  %v1994_v15 = vsel %vm959_vm1, %v1960_v34, 0.0 }
 0x22f   : > { %v1992_v35 = vsel %vm959_vm1, %v1959_v53, 0.0 }
 0x230   : > { %v1993_v7 = vadd.f32 %v1992_v35, %v1991_v62  ;;  %v1894_v14 = vadd.f32 %v1893_v22, %v1892_v58 }
 0x232   : > { %v1995_v55 = vadd.f32 %v1994_v15, %v1993_v7 }
 0x233   : > { %v2347_v41 = vpop.f32.mrb[4].mxu0 }
 0x234   : > { %1861 = vst.msk [vmem:[%s3652_s30 + $0x28] sm:$0xff] %vm959_vm1, %v2347_v41  ;;  %v1717_v46 = vpop.f32.mrb[5].mxu0  ;;  %v1962_v50 = vmul.f32 %v2347_v41, %v2347_v41  ;;  %v1897_v24 = vsel %vm959_vm1, %v2347_v41, 0.0 }
 0x235   : > { %1860 = vst.msk [vmem:[%s3652_s30 + $0x20] sm:$0xff] %vm959_vm1, %v1717_v46  ;;  %v1895_v5 = vsel %vm959_vm1, %v1717_v46, 0.0  ;;  %v1961_v56 = vmul.f32 %v1717_v46, %v1717_v46 }
 0x236   : > { %v1896_v52 = vadd.f32 %v1895_v5, %v1894_v14  ;;  %v1998_v61 = vsel %vm959_vm1, %v1962_v50, 0.0 }
 0x237   : > { %v1996_v51 = vsel %vm959_vm1, %v1961_v56, 0.0 }
 0x238   : > { %v1997_v32 = vadd.f32 %v1996_v51, %v1995_v55  ;;  %v1898_v23 = vadd.f32 %v1897_v24, %v1896_v52 }
 0x23a   : > { %v1999_v12 = vadd.f32 %v1998_v61, %v1997_v32 }
 0x23b   : > { %v2350_v29 = vpop.f32.mrb[6].mxu0 }
 0x23c   : > { %1863 = vst.msk [vmem:[%s3652_s30 + $0x38] sm:$0xff] %vm959_vm1, %v2350_v29  ;;  %v1727_v4 = vpop.f32.mrb[7].mxu0  ;;  %v1964_v26 = vmul.f32 %v2350_v29, %v2350_v29  ;;  %v1901_v43 = vsel %vm959_vm1, %v2350_v29, 0.0 }
 0x23d   : > { %1862 = vst.msk [vmem:[%s3652_s30 + $0x30] sm:$0xff] %vm959_vm1, %v1727_v4  ;;  %v1899_v27 = vsel %vm959_vm1, %v1727_v4, 0.0  ;;  %v1963_v42 = vmul.f32 %v1727_v4, %v1727_v4 }
 0x23e   : > { %v1900_v30 = vadd.f32 %v1899_v27, %v1898_v23  ;;  %v2002_v60 = vsel %vm959_vm1, %v1964_v26, 0.0 }
 0x23f   : > { %v2000_v31 = vsel %vm959_vm1, %v1963_v42, 0.0 }
 0x240   : > { %v2001_v6 = vadd.f32 %v2000_v31, %v1999_v12  ;;  %v1902_v18 = vadd.f32 %v1901_v43, %v1900_v30 }
 0x242   : > { %v2003_v20 = vadd.f32 %v2002_v60, %v2001_v6 }
 0x243   : > { %v2353_v63 = vpop.f32.mrb[8].mxu0 }
 0x244   : > { %1865 = vst.msk [vmem:[%s3652_s30 + $0x48] sm:$0xff] %vm959_vm1, %v2353_v63  ;;  %v1737_v17 = vpop.f32.mrb[9].mxu0  ;;  %v1966_v54 = vmul.f32 %v2353_v63, %v2353_v63  ;;  %v1905_v45 = vsel %vm959_vm1, %v2353_v63, 0.0 }
 0x245   : > { %1864 = vst.msk [vmem:[%s3652_s30 + $0x40] sm:$0xff] %vm959_vm1, %v1737_v17  ;;  %v1903_v40 = vsel %vm959_vm1, %v1737_v17, 0.0  ;;  %v1965_v19 = vmul.f32 %v1737_v17, %v1737_v17 }
 0x246   : > { %v1904_v36 = vadd.f32 %v1903_v40, %v1902_v18  ;;  %v2006_v25 = vsel %vm959_vm1, %v1966_v54, 0.0 }
 0x247   : > { %v2004_v13 = vsel %vm959_vm1, %v1965_v19, 0.0 }
 0x248   : > { %v2005_v3 = vadd.f32 %v2004_v13, %v2003_v20  ;;  %v1906_v11 = vadd.f32 %v1905_v45, %v1904_v36 }
 0x24a   : > { %v2007_v9 = vadd.f32 %v2006_v25, %v2005_v3 }
 0x24b   : > { %v2356_v48 = vpop.f32.mrb[10].mxu0 }
 0x24c   : > { %1867 = vst.msk [vmem:[%s3652_s30 + $0x58] sm:$0xff] %vm959_vm1, %v2356_v48  ;;  %v1747_v10 = vpop.f32.mrb[11].mxu0  ;;  %v1968_v1 = vmul.f32 %v2356_v48, %v2356_v48  ;;  %v1909_v2 = vsel %vm959_vm1, %v2356_v48, 0.0 }
 0x24d   : > { %1866 = vst.msk [vmem:[%s3652_s30 + $0x50] sm:$0xff] %vm959_vm1, %v1747_v10  ;;  %v1907_v33 = vsel %vm959_vm1, %v1747_v10, 0.0  ;;  %v1967_v49 = vmul.f32 %v1747_v10, %v1747_v10 }
 0x24e   : > { %v1908_v38 = vadd.f32 %v1907_v33, %v1906_v11  ;;  %v2010_v37 = vsel %vm959_vm1, %v1968_v1, 0.0 }
 0x24f   : > { %v2008_v28 = vsel %vm959_vm1, %v1967_v49, 0.0 }
 0x250   : > { %v2009_v0 = vadd.f32 %v2008_v28, %v2007_v9  ;;  %v1910_v57 = vadd.f32 %v1909_v2, %v1908_v38 }
 0x252   : > { %v2011_v59 = vadd.f32 %v2010_v37, %v2009_v0 }
 0x253   : > { %v2359_v47 = vpop.f32.mrb[12].mxu0 }
 0x254   : > { %1869 = vst.msk [vmem:[%s3652_s30 + $0x68] sm:$0xff] %vm959_vm1, %v2359_v47  ;;  %v1757_v21 = vpop.f32.mrb[13].mxu0  ;;  %v1970_v39 = vmul.f32 %v2359_v47, %v2359_v47  ;;  %v1913_v34 = vsel %vm959_vm1, %v2359_v47, 0.0 }
 0x255   : > { %1868 = vst.msk [vmem:[%s3652_s30 + $0x60] sm:$0xff] %vm959_vm1, %v1757_v21  ;;  %v1911_v62 = vsel %vm959_vm1, %v1757_v21, 0.0  ;;  %v1969_v16 = vmul.f32 %v1757_v21, %v1757_v21 }
 0x256   : > { %v1912_v44 = vadd.f32 %v1911_v62, %v1910_v57  ;;  %v2014_v22 = vsel %vm959_vm1, %v1970_v39, 0.0 }
 0x257   : > { %v2012_v8 = vsel %vm959_vm1, %v1969_v16, 0.0 }
 0x258   : > { %v2013_v53 = vadd.f32 %v2012_v8, %v2011_v59  ;;  %v1914_v58 = vadd.f32 %v1913_v34, %v1912_v44 }
 0x25a   : > { %v2015_v35 = vadd.f32 %v2014_v22, %v2013_v53 }
 0x25b   : > { %v2362_v7 = vpop.f32.mrb[14].mxu0 }
 0x25c   : > { %1871 = vst.msk [vmem:[%s3652_s30 + $0x78] sm:$0xff] %vm959_vm1, %v2362_v7  ;;  %v1767_v14 = vpop.f32.mrb[15].mxu0  ;;  %v1972_v15 = vmul.f32 %v2362_v7, %v2362_v7  ;;  %v1917_v50 = vsel %vm959_vm1, %v2362_v7, 0.0 }
 0x25d   : > { %1870 = vst.msk [vmem:[%s3652_s30 + $0x70] sm:$0xff] %vm959_vm1, %v1767_v14  ;;  %v1915_v55 = vsel %vm959_vm1, %v1767_v14, 0.0  ;;  %v1971_v41 = vmul.f32 %v1767_v14, %v1767_v14 }
 0x25e   : > { %v1916_v46 = vadd.f32 %v1915_v55, %v1914_v58  ;;  %v2018_v24 = vsel %vm959_vm1, %v1972_v15, 0.0 }
 0x25f   : > { %v2016_v5 = vsel %vm959_vm1, %v1971_v41, 0.0 }
 0x260   : > { %v1918_v56 = vadd.f32 %v1917_v50, %v1916_v46  ;;  %v2017_v52 = vadd.f32 %v2016_v5, %v2015_v35 }
 0x262   : > { %v2019_v51 = vadd.f32 %v2018_v24, %v2017_v52 }
 0x263   : > { %v2365_v32 = vpop.f32.mrb[0].mxu1 }
 0x264   : > { %1873 = vst.msk [vmem:[%s3652_s30 + $0x88] sm:$0xff] %vm959_vm1, %v2365_v32  ;;  %v1777_v23 = vpop.f32.mrb[1].mxu1  ;;  %v1974_v61 = vmul.f32 %v2365_v32, %v2365_v32  ;;  %v1921_v26 = vsel %vm959_vm1, %v2365_v32, 0.0 }
 0x265   : > { %1872 = vst.msk [vmem:[%s3652_s30 + $0x80] sm:$0xff] %vm959_vm1, %v1777_v23  ;;  %v1919_v12 = vsel %vm959_vm1, %v1777_v23, 0.0  ;;  %v1973_v29 = vmul.f32 %v1777_v23, %v1777_v23 }
 0x266   : > { %v1920_v4 = vadd.f32 %v1919_v12, %v1918_v56  ;;  %v2022_v43 = vsel %vm959_vm1, %v1974_v61, 0.0 }
 0x267   : > { %v2020_v27 = vsel %vm959_vm1, %v1973_v29, 0.0 }
 0x268   : > { %v2021_v42 = vadd.f32 %v2020_v27, %v2019_v51  ;;  %v1922_v30 = vadd.f32 %v1921_v26, %v1920_v4 }
 0x26a   : > { %v2023_v31 = vadd.f32 %v2022_v43, %v2021_v42 }
 0x26b   : > { %v2368_v6 = vpop.f32.mrb[2].mxu1 }
 0x26c   : > { %1875 = vst.msk [vmem:[%s3652_s30 + $0x98] sm:$0xff] %vm959_vm1, %v2368_v6  ;;  %v1787_v18 = vpop.f32.mrb[3].mxu1  ;;  %v1976_v60 = vmul.f32 %v2368_v6, %v2368_v6  ;;  %v1925_v54 = vsel %vm959_vm1, %v2368_v6, 0.0 }
 0x26d   : > { %1874 = vst.msk [vmem:[%s3652_s30 + $0x90] sm:$0xff] %vm959_vm1, %v1787_v18  ;;  %v1923_v20 = vsel %vm959_vm1, %v1787_v18, 0.0  ;;  %v1975_v63 = vmul.f32 %v1787_v18, %v1787_v18 }
 0x26e   : > { %v1924_v17 = vadd.f32 %v1923_v20, %v1922_v30  ;;  %v2026_v45 = vsel %vm959_vm1, %v1976_v60, 0.0 }
 0x26f   : > { %v2024_v40 = vsel %vm959_vm1, %v1975_v63, 0.0 }
 0x270   : > { %v2025_v19 = vadd.f32 %v2024_v40, %v2023_v31  ;;  %v1926_v36 = vadd.f32 %v1925_v54, %v1924_v17 }
 0x272   : > { %v2027_v13 = vadd.f32 %v2026_v45, %v2025_v19 }
 0x273   : > { %v2371_v3 = vpop.f32.mrb[4].mxu1 }
 0x274   : > { %1877 = vst.msk [vmem:[%s3652_s30 + $0xa8] sm:$0xff] %vm959_vm1, %v2371_v3  ;;  %v1797_v11 = vpop.f32.mrb[5].mxu1  ;;  %v1978_v25 = vmul.f32 %v2371_v3, %v2371_v3  ;;  %v1929_v1 = vsel %vm959_vm1, %v2371_v3, 0.0 }
 0x275   : > { %1876 = vst.msk [vmem:[%s3652_s30 + $0xa0] sm:$0xff] %vm959_vm1, %v1797_v11  ;;  %v1927_v9 = vsel %vm959_vm1, %v1797_v11, 0.0  ;;  %v1977_v48 = vmul.f32 %v1797_v11, %v1797_v11 }
 0x276   : > { %v1928_v10 = vadd.f32 %v1927_v9, %v1926_v36  ;;  %v2030_v2 = vsel %vm959_vm1, %v1978_v25, 0.0 }
 0x277   : > { %v2028_v33 = vsel %vm959_vm1, %v1977_v48, 0.0 }
 0x278   : > { %v2029_v49 = vadd.f32 %v2028_v33, %v2027_v13  ;;  %v1930_v38 = vadd.f32 %v1929_v1, %v1928_v10 }
 0x27a   : > { %v2031_v28 = vadd.f32 %v2030_v2, %v2029_v49 }
 0x27b   : > { %v2374_v0 = vpop.f32.mrb[6].mxu1 }
 0x27c   : > { %1879 = vst.msk [vmem:[%s3652_s30 + $0xb8] sm:$0xff] %vm959_vm1, %v2374_v0  ;;  %v1807_v57 = vpop.f32.mrb[7].mxu1  ;;  %v1980_v37 = vmul.f32 %v2374_v0, %v2374_v0  ;;  %v1933_v39 = vsel %vm959_vm1, %v2374_v0, 0.0 }
 0x27d   : > { %1878 = vst.msk [vmem:[%s3652_s30 + $0xb0] sm:$0xff] %vm959_vm1, %v1807_v57  ;;  %v1931_v59 = vsel %vm959_vm1, %v1807_v57, 0.0  ;;  %v1979_v47 = vmul.f32 %v1807_v57, %v1807_v57 }
 0x27e   : > { %v1932_v21 = vadd.f32 %v1931_v59, %v1930_v38  ;;  %v2034_v34 = vsel %vm959_vm1, %v1980_v37, 0.0 }
 0x27f   : > { %v2032_v62 = vsel %vm959_vm1, %v1979_v47, 0.0 }
 0x280   : > { %v2033_v16 = vadd.f32 %v2032_v62, %v2031_v28  ;;  %v1934_v44 = vadd.f32 %v1933_v39, %v1932_v21 }
 0x282   : > { %v2035_v8 = vadd.f32 %v2034_v34, %v2033_v16 }
 0x283   : > { %v2377_v53 = vpop.f32.mrb[8].mxu1 }
 0x284   : > { %1881 = vst.msk [vmem:[%s3652_s30 + $0xc8] sm:$0xff] %vm959_vm1, %v2377_v53  ;;  %v1817_v58 = vpop.f32.mrb[9].mxu1  ;;  %v1982_v22 = vmul.f32 %v2377_v53, %v2377_v53  ;;  %v1937_v15 = vsel %vm959_vm1, %v2377_v53, 0.0 }
 0x285   : > { %1880 = vst.msk [vmem:[%s3652_s30 + $0xc0] sm:$0xff] %vm959_vm1, %v1817_v58  ;;  %v1935_v35 = vsel %vm959_vm1, %v1817_v58, 0.0  ;;  %v1981_v7 = vmul.f32 %v1817_v58, %v1817_v58 }
 0x286   : > { %v1936_v14 = vadd.f32 %v1935_v35, %v1934_v44  ;;  %v2038_v50 = vsel %vm959_vm1, %v1982_v22, 0.0 }
 0x287   : > { %v2036_v55 = vsel %vm959_vm1, %v1981_v7, 0.0 }
 0x288   : > { %v2037_v41 = vadd.f32 %v2036_v55, %v2035_v8  ;;  %v1938_v46 = vadd.f32 %v1937_v15, %v1936_v14 }
 0x28a   : > { %v2039_v5 = vadd.f32 %v2038_v50, %v2037_v41 }
 0x28b   : > { %v2380_v56 = vpop.f32.mrb[10].mxu1 }
 0x28c   : > { %1883 = vst.msk [vmem:[%s3652_s30 + $0xd8] sm:$0xff] %vm959_vm1, %v2380_v56  ;;  %v1827_v52 = vpop.f32.mrb[11].mxu1  ;;  %v1984_v24 = vmul.f32 %v2380_v56, %v2380_v56  ;;  %v1941_v61 = vsel %vm959_vm1, %v2380_v56, 0.0 }
 0x28d   : > { %1882 = vst.msk [vmem:[%s3652_s30 + $0xd0] sm:$0xff] %vm959_vm1, %v1827_v52  ;;  %v1939_v51 = vsel %vm959_vm1, %v1827_v52, 0.0  ;;  %v1983_v32 = vmul.f32 %v1827_v52, %v1827_v52 }
 0x28e   : > { %v1940_v23 = vadd.f32 %v1939_v51, %v1938_v46  ;;  %v2042_v26 = vsel %vm959_vm1, %v1984_v24, 0.0 }
 0x28f   : > { %v2040_v12 = vsel %vm959_vm1, %v1983_v32, 0.0 }
 0x290   : > { %v2041_v29 = vadd.f32 %v2040_v12, %v2039_v5  ;;  %v1942_v4 = vadd.f32 %v1941_v61, %v1940_v23 }
 0x292   : > { %v2043_v27 = vadd.f32 %v2042_v26, %v2041_v29 }
 0x293   : > { %v2383_v42 = vpop.f32.mrb[12].mxu1 }
 0x294   : > { %1885 = vst.msk [vmem:[%s3652_s30 + $0xe8] sm:$0xff] %vm959_vm1, %v2383_v42  ;;  %v1837_v30 = vpop.f32.mrb[13].mxu1  ;;  %v1986_v43 = vmul.f32 %v2383_v42, %v2383_v42  ;;  %v1945_v60 = vsel %vm959_vm1, %v2383_v42, 0.0 }
 0x295   : > { %1884 = vst.msk [vmem:[%s3652_s30 + $0xe0] sm:$0xff] %vm959_vm1, %v1837_v30  ;;  %v1943_v31 = vsel %vm959_vm1, %v1837_v30, 0.0  ;;  %v1985_v6 = vmul.f32 %v1837_v30, %v1837_v30 }
 0x296   : > { %v1944_v18 = vadd.f32 %v1943_v31, %v1942_v4  ;;  %v2046_v54 = vsel %vm959_vm1, %v1986_v43, 0.0 }
 0x297   : > { %v2044_v20 = vsel %vm959_vm1, %v1985_v6, 0.0 }
 0x298   : > { %v2045_v63 = vadd.f32 %v2044_v20, %v2043_v27  ;;  %v1946_v17 = vadd.f32 %v1945_v60, %v1944_v18 }
 0x29a   : > { %v2047_v40 = vadd.f32 %v2046_v54, %v2045_v63 }
 0x29b   : > { %v2386_v19 = vpop.f32.mrb[14].mxu1 }
 0x29c   : > { %1887 = vst.msk [vmem:[%s3652_s30 + $0xf8] sm:$0xff] %vm959_vm1, %v2386_v19  ;;  %v1847_v36 = vpop.f32.mrb[15].mxu1  ;;  %v1988_v45 = vmul.f32 %v2386_v19, %v2386_v19  ;;  %v1949_v25 = vsel %vm959_vm1, %v2386_v19, 0.0 }
 0x29d   : > { %1886 = vst.msk [vmem:[%s3652_s30 + $0xf0] sm:$0xff] %vm959_vm1, %v1847_v36  ;;  %v1947_v13 = vsel %vm959_vm1, %v1847_v36, 0.0  ;;  %v1987_v3 = vmul.f32 %v1847_v36, %v1847_v36 }
 0x29e   : > { %v1948_v11 = vadd.f32 %v1947_v13, %v1946_v17  ;;  %v2050_v1 = vsel %vm959_vm1, %v1988_v45, 0.0 }
 0x29f   : > { %v2048_v9 = vsel %vm959_vm1, %v1987_v3, 0.0 }
 0x2a0   : > { %v1950_v48 = vadd.f32 %v1949_v25, %v1948_v11  ;;  %v2049_v10 = vadd.f32 %v2048_v9, %v2047_v40 }
 0x2a2   : > { %v2051_v33 = vadd.f32 %v2050_v1, %v2049_v10  ;;  %v1951_v37 = vrot.slane %v1950_v48, 4 }
 0x2a4   : > { %v2052_v49 = vrot.slane %v2051_v33, 4  ;;  %v1952_v59 = vadd.f32 %v1951_v37, %v1950_v48 }
 0x2a6   : > { %v2053_v38 = vadd.f32 %v2052_v49, %v2051_v33  ;;  %v1953_v47 = vrot.slane %v1952_v59, 2 }
 0x2a8   : > { %v2054_v2 = vrot.slane %v2053_v38, 2  ;;  %v1954_v21 = vadd.f32 %v1953_v47, %v1952_v59 }
 0x2aa   : > { %v2055_v28 = vadd.f32 %v2054_v2, %v2053_v38  ;;  %v1955_v39 = vrot.slane %v1954_v21, 1 }
 0x2ac   : > { %v2056_v0 = vrot.slane %v2055_v28, 1  ;;  %v1956_v62 = vadd.f32 %v1955_v39, %v1954_v21 }
 0x2ae   : > { %v2057_v57 = vadd.f32 %v2056_v0, %v2055_v28 }
 0x2b0   : > { %2059 = vrot.lane.b32.xlu0 %v2057_v57, %s2453_s26 }
 0x322   : > { %v2060_v16 = vpop.permute.xlu0 %2059 }
 0x323   : > { %v2062_v44 = vsel %vm959_vm1, %v1956_v62, %v2060_v16 }
 0x324   : > { %2064 = vst.msk [vmem:[%s409_s7] sm:$0x1] %vm2063_vm9, %v2062_v44 }
 0x325 PF: > { %s16_s20 = sadd.s32 1, %s2451_s20   ;;  %s3896_s18 = smov %s2447_s19 }
 0x326   : > { %p13_p5 = scmp.ge.s32.totalorder %s16_s20, 4   ;;  %s3897_s19 = smov %s3899_s21 }
 0x328   :  { %15 = sbr.rel (!%p13_p5) target bundleno = 2 (0x2), region = 84 }

// kernel: basic_block_forward.4
= control target key start
LH: loop header
LB: loop body
LE: loop exit
PB: predicated region body
PF: predicated region fallthrough
CT: control target
= control target key end

     0   :  { %s2787_s27 = smov 0   ;;  %s2789_s28 = smov 0   ;;  %s4432_s0 = inlined_call_operand.vmem [shape: f32[2,16,16,4], index: 0, kind: input, shape index: {}, may-alias: {0,1,2}]   ;;  %s4433_s1 = inlined_call_operand.vmem [shape: f32[2,16,16,4], index: 1, kind: input, shape index: {}, may-alias: {0,1,2}]   ;;  %s4434_s2 = inlined_call_operand.vmem [shape: f32[2,16,16,4], index: 2, kind: input, shape index: {}, may-alias: {0,1,2}]   ;;  %s4435_s3 = inlined_call_operand.vmem [shape: f32[36,4], index: 3, kind: input, shape index: {}]   ;;  %s4436_s4 = inlined_call_operand.vmem [shape: f32[1,4], index: 4, kind: input, shape index: {}]   ;;  %s4437_s5 = inlined_call_operand.vmem [shape: f32[1,4], index: 5, kind: input, shape index: {}]   ;;  %s4438_s6 = inlined_call_operand.vmem [shape: f32[1,4], index: 6, kind: input, shape index: {}]   ;;  %s4439_s7 = inlined_call_operand.vmem [shape: f32[2,16,16,4], index: 7, kind: output, shape index: {0}]   ;;  %s4440_s8 = inlined_call_operand.vmem [shape: f32[2,1,1,8], index: 8, kind: output, shape index: {1}]  }
   0x1   :  { %s2791_s29 = smov 0  }
   0x2 LB: > { %s31_s30 = sadd.s32 1, %s2732_s28  ;;  %p2524_p0 = scmp.ge.s32.totalorder %s2736_s29, 1  ;;  %s2736_s29 = sphi %s2791_s29, %s19_s29   ;;  %s2732_s28 = sphi %s2789_s28, %s4587_s28   ;;  %s2728_s27 = sphi %s2787_s27, %s4586_s27  }
   0x3   : > { %p33_p1 = scmp.ge.s32.totalorder %s31_s30, 2  ;;  %p353_p2 = scmp.lt.s32.totalorder %s2736_s29, 3 }
   0x5   : > { %s4589_s30 = smov (%p33_p1, %s31_s30), 0  ;;  %p354_p3 = pnand %p2524_p0, %p353_p2 }
   0x7   : > { %357 = sbr.rel (%p354_p3) target bundleno = 812 (0x32c), region = 48 }
   0xe   : > { %p433_p4 = scmp.lt.s32.totalorder %s2728_s27, 1  ;;  %v2813_v0 = vld [vmem:[%s4436_s4] ss:$0 sm:$0xff]  ;;  %vm776_vm0 = vcmask 1040384   ;;  %s2738_s19 = smov 4  }
   0xf   : > { %v2824_v1 = vld [vmem:[%s4437_s5] ss:$0 sm:$0xff]  ;;  %s2739_s20 = smov 8  }
  0x10   : > { %s4591_s27 = smov (!%p433_p4, %s2728_s27), 1  ;;  %v2838_v11 = vld [vmem:[%s4438_s6] ss:$0 sm:$0xff] }
  0x11   : > { %s2808_s9 = sshll.u32 %s4591_s27, 8  ;;  %s490_s11 = scalar_lea.vmem %s4440_s8, %s4591_s27 }
  0x12   : > { %s2819_s14 = scalar_lea.vmem %s4433_s1, %s2808_s9  ;;  %s2970_s23 = scalar_lea.vmem %s4432_s0, %s2808_s9 }
  0x13   : > { %v525_v2 = vld [vmem:[%s2819_s14 + $0x8] sm:$0xff]  ;;  %v524_v3 = vld [vmem:[%s2819_s14] sm:$0xff]  ;;  %v526_v4 = vld [vmem:[%s2819_s14 + $0x10] sm:$0xff]  ;;  %s2574_s24 = sadd.s32 240, %s2808_s9  ;;  %s4287_s26 = scalar_lea.vmem %s4439_s7, %s2808_s9 }
  0x14   : > { %v557_v5 = vmul.f32 %v2813_v0, %v525_v2  ;;  %v556_v6 = vmul.f32 %v2813_v0, %v524_v3  ;;  %v558_v7 = vmul.f32 %v2813_v0, %v526_v4  ;;  %v527_v8 = vld [vmem:[%s2819_s14 + $0x18] sm:$0xff]  ;;  %v528_v9 = vld [vmem:[%s2819_s14 + $0x20] sm:$0xff]  ;;  %v529_v10 = vld [vmem:[%s2819_s14 + $0x28] sm:$0xff]  ;;  %s469_s10 = scalar_lea.vmem %s4434_s2, %s2574_s24 }
  0x15   : > { %v559_v12 = vmul.f32 %v2813_v0, %v527_v8  ;;  %v560_v13 = vmul.f32 %v2813_v0, %v528_v9  ;;  %v530_v14 = vld [vmem:[%s2819_s14 + $0x30] sm:$0xff]  ;;  %v561_v18 = vmul.f32 %v2813_v0, %v529_v10  ;;  %v531_v22 = vld [vmem:[%s2819_s14 + $0x38] sm:$0xff]  ;;  %v532_v41 = vld [vmem:[%s2819_s14 + $0x40] sm:$0xff] }
  0x16   : > { %v589_v15 = vadd.f32 %v2824_v1, %v557_v5  ;;  %v588_v16 = vadd.f32 %v2824_v1, %v556_v6  ;;  %v590_v17 = vadd.f32 %v2824_v1, %v558_v7  ;;  %v562_v21 = vmul.f32 %v2813_v0, %v530_v14  ;;  %v533_v46 = vld [vmem:[%s2819_s14 + $0x48] sm:$0xff]  ;;  %v534_v55 = vld [vmem:[%s2819_s14 + $0x50] sm:$0xff]  ;;  %v535_v59 = vld [vmem:[%s2819_s14 + $0x58] sm:$0xff] }
  0x17   : > { %v591_v19 = vadd.f32 %v2824_v1, %v559_v12  ;;  %v592_v20 = vadd.f32 %v2824_v1, %v560_v13  ;;  %v593_v29 = vadd.f32 %v2824_v1, %v561_v18  ;;  %v563_v30 = vmul.f32 %v2813_v0, %v531_v22  ;;  %v536_v62 = vld [vmem:[%s2819_s14 + $0x60] sm:$0xff]  ;;  %v537_v63 = vld [vmem:[%s2819_s14 + $0x68] sm:$0xff]  ;;  %v538_v4 = vld [vmem:[%s2819_s14 + $0x70] sm:$0xff] }
  0x18   : > { %vm621_vm1 = vcmp.gt.f32.partialorder %v589_v15, 0.0  ;;  %v653_v23 = vmul.f32 %v2838_v11, %v589_v15  ;;  %vm620_vm2 = vcmp.gt.f32.partialorder %v588_v16, 0.0  ;;  %v652_v24 = vmul.f32 %v2838_v11, %v588_v16  ;;  %v539_v14 = vld [vmem:[%s2819_s14 + $0x78] sm:$0xff] }
  0x19   : > { %vm622_vm3 = vcmp.gt.f32.partialorder %v590_v17, 0.0  ;;  %v654_v25 = vmul.f32 %v2838_v11, %v590_v17  ;;  %vm623_vm4 = vcmp.gt.f32.partialorder %v591_v19, 0.0  ;;  %v655_v26 = vmul.f32 %v2838_v11, %v591_v19 }
  0x1a   : > { %v685_v27 = vsel %vm621_vm1, %v589_v15, %v653_v23  ;;  %v684_v28 = vsel %vm620_vm2, %v588_v16, %v652_v24  ;;  %v656_v38 = vmul.f32 %v2838_v11, %v592_v20  ;;  %vm624_vm5 = vcmp.gt.f32.partialorder %v592_v20, 0.0  ;;  %v540_v15 = vld [vmem:[%s2819_s14 + $0x80] sm:$0xff]  ;;  %v541_v16 = vld [vmem:[%s2819_s14 + $0x88] sm:$0xff] }
  0x1b   : > { %v781_v31 = vrot.slane %v685_v27, 7  ;;  %v780_v32 = vrot.slane %v684_v28, 7  ;;  %v686_v33 = vsel %vm622_vm3, %v590_v17, %v654_v25  ;;  %v687_v34 = vsel %vm623_vm4, %v591_v19, %v655_v26 }
  0x1c   : > { %v783_v35 = vrot.slane %v686_v33, 7  ;;  %v784_v39 = vrot.slane %v687_v34, 7  ;;  %vm625_vm6 = vcmp.gt.f32.partialorder %v593_v29, 0.0  ;;  %v657_v40 = vmul.f32 %v2838_v11, %v593_v29 }
  0x1d   : > { %v2858_v36 = vsel %vm776_vm0, %v781_v31, 0.0  ;;  %v2861_v37 = vsel %vm776_vm0, 0.0, %v780_v32  ;;  %v2874_v43 = vsel %vm776_vm0, %v780_v32, %v781_v31  ;;  %v594_v44 = vadd.f32 %v2824_v1, %v562_v21 }
  0x1e   : > { %955 = vrot.lane.b32.xlu1 %v2858_v36, %s2738_s19  ;;  %951 = vrot.lane.b32.xlu0 %v2861_v37, %s2738_s19  ;;  %v2871_v42 = vsel %vm776_vm0, 0.0, %v783_v35  ;;  %v595_v45 = vadd.f32 %v2824_v1, %v563_v30  ;;  %v688_v47 = vsel %vm624_vm5, %v592_v20, %v656_v38  ;;  %v689_v48 = vsel %vm625_vm6, %v593_v29, %v657_v40  ;;  %v542_v30 = vld [vmem:[%s2819_s14 + $0x90] sm:$0xff] }
  0x1f   : > { %v564_v49 = vmul.f32 %v2813_v0, %v532_v41  ;;  %v2885_v50 = vsel %vm776_vm0, %v784_v39, 0.0  ;;  %v658_v51 = vmul.f32 %v2838_v11, %v594_v44  ;;  %v2889_v52 = vsel %vm776_vm0, %v783_v35, %v784_v39 }
  0x20   : > { %vm626_vm7 = vcmp.gt.f32.partialorder %v594_v44, 0.0  ;;  %v659_v53 = vmul.f32 %v2838_v11, %v595_v45  ;;  %v565_v54 = vmul.f32 %v2813_v0, %v533_v46  ;;  %v786_v56 = vrot.slane %v688_v47, 7 }
  0x21   : > { %v787_v57 = vrot.slane %v689_v48, 7  ;;  %vm627_vm8 = vcmp.gt.f32.partialorder %v595_v45, 0.0  ;;  %v596_v58 = vadd.f32 %v2824_v1, %v564_v49  ;;  %v2900_v60 = vsel %vm626_vm7, %v594_v44, %v658_v51  ;;  %v543_v48 = vld [vmem:[%s2819_s14 + $0x98] sm:$0xff] }
  0x22   : > { %1097 = vrot.lane.b32.xlu1 %v2871_v42, %s2739_s20  ;;  %953 = vrot.lane.b32.xlu0 %v2874_v43, %s2738_s19  ;;  %v566_v61 = vmul.f32 %v2813_v0, %v534_v55  ;;  %v2905_v2 = vsel %vm627_vm8, %v595_v45, %v659_v53  ;;  %v2908_v3 = vadd.f32 %v2824_v1, %v565_v54  ;;  %v2912_v5 = vsel %vm776_vm0, 0.0, %v786_v56  ;;  %v544_v54 = vld [vmem:[%s2819_s14 + $0xa0] sm:$0xff]  ;;  %v495_v55 = vld [vmem:[%s2970_s23 + $0x8] sm:$0xff] }
  0x23   : > { %v2915_v6 = vsel %vm776_vm0, %v787_v57, 0.0  ;;  %v2918_v7 = vsel %vm776_vm0, %v786_v56, %v787_v57  ;;  %v567_v8 = vmul.f32 %v2813_v0, %v535_v59  ;;  %v789_v9 = vrot.slane %v2900_v60, 7 }
  0x24   : > { %v660_v10 = vmul.f32 %v2838_v11, %v596_v58  ;;  %v568_v12 = vmul.f32 %v2813_v0, %v536_v62  ;;  %v569_v13 = vmul.f32 %v2813_v0, %v537_v63  ;;  %v790_v17 = vrot.slane %v2905_v2, 7 }
  0x25   : > { %vm628_vm9 = vcmp.gt.f32.partialorder %v596_v58, 0.0  ;;  %v2934_v18 = vadd.f32 %v2824_v1, %v566_v61  ;;  %v570_v19 = vmul.f32 %v2813_v0, %v538_v4  ;;  %vm629_vm10 = vcmp.gt.f32.partialorder %v2908_v3, 0.0 }
  0x26   : > { %1101 = vrot.lane.b32.xlu1 %v2885_v50, %s2739_s20  ;;  %1099 = vrot.lane.b32.xlu0 %v2889_v52, %s2739_s20  ;;  %v661_v20 = vmul.f32 %v2838_v11, %v2908_v3  ;;  %v600_v21 = vadd.f32 %v2824_v1, %v568_v12  ;;  %v601_v22 = vadd.f32 %v2824_v1, %v569_v13  ;;  %v2949_v27 = vsel %vm776_vm0, 0.0, %v789_v9  ;;  %v494_v12 = vld [vmem:[%s2970_s23] sm:$0xff]  ;;  %v545_v13 = vld [vmem:[%s2819_s14 + $0xa8] sm:$0xff]  ;;  %s2741_s23 = smov 24  }
  0x27   : > { %v602_v23 = vadd.f32 %v2824_v1, %v570_v19  ;;  %v571_v24 = vmul.f32 %v2813_v0, %v539_v14  ;;  %v572_v25 = vmul.f32 %v2813_v0, %v540_v15  ;;  %v573_v26 = vmul.f32 %v2813_v0, %v541_v16 }
  0x28   : > { %v2951_v28 = vsel %vm628_vm9, %v596_v58, %v660_v10  ;;  %vm632_vm11 = vcmp.gt.f32.partialorder %v600_v21, 0.0  ;;  %v664_v29 = vmul.f32 %v2838_v11, %v600_v21  ;;  %vm633_vm12 = vcmp.gt.f32.partialorder %v601_v22, 0.0 }
  0x29   : > { %v665_v31 = vmul.f32 %v2838_v11, %v601_v22  ;;  %vm634_vm13 = vcmp.gt.f32.partialorder %v602_v23, 0.0  ;;  %v666_v32 = vmul.f32 %v2838_v11, %v602_v23  ;;  %v603_v34 = vadd.f32 %v2824_v1, %v571_v24 }
  0x2a   : > { %959 = vrot.lane.b32.xlu1 %v2889_v52, %s2738_s19  ;;  %957 = vrot.lane.b32.xlu0 %v2871_v42, %s2738_s19  ;;  %v2961_v33 = vsel %vm632_vm11, %v600_v21, %v664_v29  ;;  %v604_v35 = vadd.f32 %v2824_v1, %v572_v25  ;;  %v605_v38 = vadd.f32 %v2824_v1, %v573_v26  ;;  %vm630_vm14 = vcmp.gt.f32.partialorder %v2934_v18, 0.0  ;;  %v546_v26 = vld [vmem:[%s2819_s14 + $0xb0] sm:$0xff] }
  0x2b   : > { %v662_v39 = vmul.f32 %v2838_v11, %v2934_v18  ;;  %v2974_v40 = vsel %vm633_vm12, %v601_v22, %v665_v31  ;;  %v2976_v41 = vsel %vm634_vm13, %v602_v23, %v666_v32  ;;  %v574_v44 = vmul.f32 %v2813_v0, %v542_v30 }
  0x2c   : > { %v4456_v45 = vrot.slane %v2961_v33, 7  ;;  %v4455_v46 = vrot.slane %v2974_v40, 7  ;;  %vm635_vm15 = vcmp.gt.f32.partialorder %v603_v34, 0.0  ;;  %v667_v47 = vmul.f32 %v2838_v11, %v603_v34 }
  0x2d   : > { %v2989_v49 = vsel %vm776_vm0, %v790_v17, 0.0  ;;  %v2992_v51 = vadd.f32 %v2824_v1, %v567_v8  ;;  %vm636_vm1 = vcmp.gt.f32.partialorder %v604_v35, 0.0  ;;  %v668_v53 = vmul.f32 %v2838_v11, %v604_v35 }
  0x2e   : > { %1103 = vrot.lane.b32.xlu1 %v2912_v5, %s2739_s20  ;;  %961 = vrot.lane.b32.xlu0 %v2885_v50, %s2738_s19  ;;  %v3002_v56 = vsel %vm776_vm0, %v4456_v45, %v4455_v46  ;;  %v4454_v57 = vrot.slane %v2976_v41, 7  ;;  %v3005_v58 = vsel %vm635_vm15, %v603_v34, %v667_v47  ;;  %vm637_vm2 = vcmp.gt.f32.partialorder %v605_v38, 0.0  ;;  %v717_v46 = vld [vmem:[%s469_s10 + $0x8] sm:$0xff] }
  0x2f   : > { %4496 = vst [vmem:[#allocation2_spill] sm:$0xff] %v3002_v56  ;;  %v4453_v59 = vrot.slane %v3005_v58, 7  ;;  %v3008_v61 = vsel %vm636_vm1, %v604_v35, %v668_v53  ;;  %v669_v62 = vmul.f32 %v2838_v11, %v605_v38  ;;  %v606_v63 = vadd.f32 %v2824_v1, %v574_v44 }
  0x30   : > { %v3015_v2 = vsel %vm776_vm0, %v789_v9, %v790_v17  ;;  %v575_v4 = vmul.f32 %v2813_v0, %v543_v48  ;;  %v576_v8 = vmul.f32 %v2813_v0, %v544_v54  ;;  %v503_v10 = vmul.f32 %v2813_v0, %v495_v55  ;;  %v547_v55 = vld [vmem:[%s2819_s14 + $0xb8] sm:$0xff] }
  0x31   : > { %v3029_v60 = vsel %vm629_vm10, %v2908_v3, %v661_v20  ;;  %v3036_v9 = vsel %vm776_vm0, %v4454_v57, %v4453_v59  ;;  %v3038_v14 = vsel %vm637_vm2, %v605_v38, %v669_v62  ;;  %vm638_vm3 = vcmp.gt.f32.partialorder %v606_v63, 0.0 }
  0x32   : > { %1107 = vrot.lane.b32.xlu1 %v2915_v6, %s2739_s20  ;;  %1105 = vrot.lane.b32.xlu0 %v2918_v7, %s2739_s20  ;;  %4497 = vst [vmem:[#allocation3_spill] sm:$0xff] %v3036_v9  ;;  %v4450_v15 = vrot.slane %v3008_v61, 7  ;;  %v4447_v16 = vrot.slane %v3038_v14, 7  ;;  %v670_v17 = vmul.f32 %v2838_v11, %v606_v63  ;;  %v607_v3 = vadd.f32 %v2824_v1, %v575_v4 }
  0x33   : > { %v608_v19 = vadd.f32 %v2824_v1, %v576_v8  ;;  %v511_v20 = vadd.f32 %v2824_v1, %v503_v10  ;;  %v502_v21 = vmul.f32 %v2813_v0, %v494_v12  ;;  %v577_v22 = vmul.f32 %v2813_v0, %v545_v13  ;;  %v548_v12 = vld [vmem:[%s2819_s14 + $0xc0] sm:$0xff]  ;;  %v549_v13 = vld [vmem:[%s2819_s14 + $0xc8] sm:$0xff] }
  0x34   : > { %v792_v23 = vrot.slane %v2951_v28, 7  ;;  %v3054_v24 = vsel %vm776_vm0, %v4450_v15, %v4447_v16  ;;  %v3056_v25 = vsel %vm638_vm3, %v606_v63, %v670_v17  ;;  %vm639_vm4 = vcmp.gt.f32.partialorder %v607_v3, 0.0 }
  0x35   : > { %4498 = vst [vmem:[#allocation4_spill] sm:$0xff] %v3054_v24  ;;  %v793_v29 = vrot.slane %v3029_v60, 7  ;;  %v671_v28 = vmul.f32 %v2838_v11, %v607_v3  ;;  %vm640_vm5 = vcmp.gt.f32.partialorder %v608_v19, 0.0  ;;  %v672_v30 = vmul.f32 %v2838_v11, %v608_v19 }
  0x36   : > { %965 = vrot.lane.b32.xlu1 %v2918_v7, %s2738_s19  ;;  %963 = vrot.lane.b32.xlu0 %v2912_v5, %s2738_s19  ;;  %vm513_vm6 = vcmp.gt.f32.partialorder %v511_v20, 0.0  ;;  %v521_v31 = vmul.f32 %v2838_v11, %v511_v20  ;;  %v510_v32 = vadd.f32 %v2824_v1, %v502_v21  ;;  %v609_v34 = vadd.f32 %v2824_v1, %v577_v22 }
  0x37   : > { %v3072_v35 = vsel %vm630_vm14, %v2934_v18, %v662_v39  ;;  %v3074_v38 = vsel %vm639_vm4, %v607_v3, %v671_v28  ;;  %v3076_v44 = vsel %vm640_vm5, %v608_v19, %v672_v30  ;;  %v578_v47 = vmul.f32 %v2813_v0, %v546_v26 }
  0x38   : > { %v4446_v48 = vrot.slane %v3056_v25, 7  ;;  %v4445_v53 = vrot.slane %v3074_v38, 7  ;;  %v523_v54 = vsel %vm513_vm6, %v511_v20, %v521_v31  ;;  %vm512_vm7 = vcmp.gt.f32.partialorder %v510_v32, 0.0 }
  0x39   : > { %vm631_vm8 = vcmp.gt.f32.partialorder %v2992_v51, 0.0  ;;  %v663_v18 = vmul.f32 %v2838_v11, %v2992_v51  ;;  %v520_v39 = vmul.f32 %v2838_v11, %v510_v32  ;;  %vm641_vm9 = vcmp.gt.f32.partialorder %v609_v34, 0.0 }
  0x3a   : > { %1109 = vrot.lane.b32.xlu1 %v2949_v27, %s2739_s20  ;;  %967 = vrot.lane.b32.xlu0 %v2915_v6, %s2738_s19  ;;  %v673_v62 = vmul.f32 %v2838_v11, %v609_v34  ;;  %v3092_v63 = vsel %vm776_vm0, 0.0, %v792_v23  ;;  %v3099_v4 = vsel %vm776_vm0, %v4446_v48, %v4445_v53  ;;  %v3101_v8 = vmul.f32 0.0, %v523_v54 }
  0x3b   : > { %4499 = vst [vmem:[#allocation5_spill] sm:$0xff] %v3092_v63  ;;  %4500 = vst [vmem:[#allocation6_spill] sm:$0xff] %v3099_v4  ;;  %v610_v10 = vadd.f32 %v2824_v1, %v578_v47  ;;  %v4442_v60 = vrot.slane %v3076_v44, 7  ;;  %v522_v17 = vsel %vm512_vm7, %v510_v32, %v520_v39  ;;  %v579_v19 = vmul.f32 %v2813_v0, %v547_v55  ;;  %v550_v32 = vld [vmem:[%s2819_s14 + $0xd0] sm:$0xff] }
  0x3c   : > { %v3108_v3 = vsel %vm641_vm9, %v609_v34, %v673_v62  ;;  %v3111_v20 = vmul.f32 0.0, %v522_v17  ;;  %v4457_v26 = vrot.slane %v3072_v35, 7  ;;  %v580_v30 = vmul.f32 %v2813_v0, %v548_v12 }
  0x3d   : > { %v4441_v21 = vrot.slane %v3108_v3, 7  ;;  %vm642_vm10 = vcmp.gt.f32.partialorder %v610_v10, 0.0  ;;  %v674_v22 = vmul.f32 %v2838_v11, %v610_v10  ;;  %v611_v28 = vadd.f32 %v2824_v1, %v579_v19 }
  0x3e   : > { %1113 = vrot.lane.b32.xlu1 %v2989_v49, %s2739_s20  ;;  %1111 = vrot.lane.b32.xlu0 %v3015_v2, %s2739_s20  ;;  %v581_v31 = vmul.f32 %v2813_v0, %v549_v13  ;;  %v4444_v34 = vrot.slane %v3101_v8, 7  ;;  %v4443_v47 = vrot.slane %v3111_v20, 7  ;;  %v3136_v39 = vsel %vm776_vm0, %v793_v29, 0.0 }
  0x3f   : > { %v3131_v54 = vsel %vm776_vm0, %v4442_v60, %v4441_v21  ;;  %v3133_v55 = vsel %vm642_vm10, %v610_v10, %v674_v22  ;;  %vm643_vm11 = vcmp.gt.f32.partialorder %v611_v28, 0.0  ;;  %v675_v62 = vmul.f32 %v2838_v11, %v611_v28  ;;  %v551_v22 = vld [vmem:[%s2819_s14 + $0xd8] sm:$0xff]  ;;  %v552_v21 = vld [vmem:[%s2819_s14 + $0xe0] sm:$0xff]  ;;  %v553_v60 = vld [vmem:[%s2819_s14 + $0xe8] sm:$0xff] }
  0x40   : > { %4501 = vst [vmem:[#allocation7_spill] sm:$0xff] %v3131_v54  ;;  %v612_v12 = vadd.f32 %v2824_v1, %v580_v30  ;;  %v3141_v13 = vsel %vm776_vm0, %v792_v23, %v793_v29  ;;  %v3148_v17 = vsel %vm776_vm0, %v4443_v47, %v4444_v34  ;;  %v613_v10 = vadd.f32 %v2824_v1, %v581_v31 }
  0x41   : > { %v582_v19 = vmul.f32 %v2813_v0, %v550_v32  ;;  %v4449_v23 = vrot.slane %v3133_v55, 7  ;;  %v3160_v29 = vsel %vm643_vm11, %v611_v28, %v675_v62  ;;  %v583_v53 = vmul.f32 %v2813_v0, %v551_v22  ;;  %v554_v62 = vld [vmem:[%s2819_s14 + $0xf0] sm:$0xff] }
  0x42   : > { %971 = vrot.lane.b32.xlu1 %v3015_v2, %s2738_s19  ;;  %969 = vrot.lane.b32.xlu0 %v2949_v27, %s2738_s19  ;;  %vm644_vm12 = vcmp.gt.f32.partialorder %v612_v12, 0.0  ;;  %v676_v30 = vmul.f32 %v2838_v11, %v612_v12  ;;  %v4448_v31 = vrot.slane %v3160_v29, 7  ;;  %vm645_vm13 = vcmp.gt.f32.partialorder %v613_v10, 0.0 }
  0x43   : > { %v677_v32 = vmul.f32 %v2838_v11, %v613_v10  ;;  %v614_v47 = vadd.f32 %v2824_v1, %v582_v19  ;;  %v584_v48 = vmul.f32 %v2813_v0, %v552_v21  ;;  %v585_v28 = vmul.f32 %v2813_v0, %v553_v60 }
  0x44   : > { %v3167_v34 = vsel %vm644_vm12, %v612_v12, %v676_v30  ;;  %v695_v16 = vsel %vm631_vm8, %v2992_v51, %v663_v18  ;;  %v3181_v19 = vsel %vm776_vm0, %v4449_v23, %v4448_v31  ;;  %v615_v60 = vadd.f32 %v2824_v1, %v583_v53 }
  0x45   : > { %4502 = vst [vmem:[#allocation8_spill] sm:$0xff] %v3181_v19  ;;  %v4452_v12 = vrot.slane %v3167_v34, 7  ;;  %v3184_v22 = vsel %vm645_vm13, %v613_v10, %v677_v32  ;;  %vm646_vm14 = vcmp.gt.f32.partialorder %v614_v47, 0.0  ;;  %v678_v18 = vmul.f32 %v2838_v11, %v614_v47  ;;  %v555_v32 = vld [vmem:[%s2819_s14 + $0xf8] sm:$0xff] }
  0x46   : > { %1115 = vrot.lane.b32.xlu1 %v3092_v63, %s2739_s20  ;;  %973 = vrot.lane.b32.xlu0 %v2989_v49, %s2738_s19  ;;  %v4451_v51 = vrot.slane %v3184_v22, 7  ;;  %v616_v21 = vadd.f32 %v2824_v1, %v584_v48  ;;  %v617_v10 = vadd.f32 %v2824_v1, %v585_v28  ;;  %v586_v30 = vmul.f32 %v2813_v0, %v554_v62  ;;  %v716_v48 = vld [vmem:[%s469_s10] sm:$0xff] }
  0x47   : > { %v3203_v31 = vsel %vm776_vm0, 0.0, %v4457_v26  ;;  %v3212_v53 = vsel %vm646_vm14, %v614_v47, %v678_v18  ;;  %vm647_vm15 = vcmp.gt.f32.partialorder %v615_v60, 0.0  ;;  %v796_v28 = vrot.slane %v695_v16, 7 }
  0x48   : > { %4503 = vst [vmem:[#allocation9_spill] sm:$0xff] %v3203_v31  ;;  %v3210_v23 = vsel %vm776_vm0, %v4452_v12, %v4451_v51  ;;  %v679_v62 = vmul.f32 %v2838_v11, %v615_v60  ;;  %vm648_vm1 = vcmp.gt.f32.partialorder %v616_v21, 0.0  ;;  %v680_v15 = vmul.f32 %v2838_v11, %v616_v21 }
  0x49   : > { %4504 = vst [vmem:[#allocation10_spill] sm:$0xff] %v3210_v23  ;;  %vm649_vm2 = vcmp.gt.f32.partialorder %v617_v10, 0.0  ;;  %v681_v51 = vmul.f32 %v2838_v11, %v617_v10  ;;  %v618_v47 = vadd.f32 %v2824_v1, %v586_v30  ;;  %v587_v18 = vmul.f32 %v2813_v0, %v555_v32 }
  0x4a   : > { %1119 = vrot.lane.b32.xlu1 %v3136_v39, %s2739_s20  ;;  %1117 = vrot.lane.b32.xlu0 %v3141_v13, %s2739_s20  ;;  %v3224_v12 = vsel %vm647_vm15, %v615_v60, %v679_v62  ;;  %v3226_v59 = vsel %vm648_vm1, %v616_v21, %v680_v15  ;;  %v718_v57 = vmul.f32 %v2813_v0, %v716_v48  ;;  %v3242_v15 = vsel %vm776_vm0, %v796_v28, 0.0 }
  0x4b   : > { %v4465_v45 = vrot.slane %v3224_v12, 7  ;;  %v4464_v26 = vrot.slane %v3226_v59, 7  ;;  %vm650_vm3 = vcmp.gt.f32.partialorder %v618_v47, 0.0  ;;  %v682_v32 = vmul.f32 %v2838_v11, %v618_v47  ;;  %4505 = vst [vmem:[#allocation11_spill] sm:$0xff] %v3242_v15 }
  0x4c   : > { %v619_v16 = vadd.f32 %v2824_v1, %v587_v18  ;;  %v720_v60 = vadd.f32 %v2824_v1, %v718_v57  ;;  %v4508_v57 = vrot.slane %v3072_v35, 7  ;;  %vm1241_vm7 = vcmask 31744  }
  0x4d   : > { %v3264_v18 = vsel %vm650_vm3, %v618_v47, %v682_v32  ;;  %vm1909_vm8 = vcmask 1043456   ;;  %vm1290_vm9 = vcmask 64512   ;;  %vm1387_vm10 = vcmask 1046528  }
  0x4e   : > { %977 = vrot.lane.b32.xlu1 %v3141_v13, %s2738_s19  ;;  %975 = vrot.lane.b32.xlu0 %v3092_v63, %s2738_s19  ;;  %v3231_v63 = vsel %vm649_vm2, %v617_v10, %v681_v51  ;;  %v4506_v51 = vrot.slane %v3212_v53, 7  ;;  %v719_v10 = vmul.f32 %v2813_v0, %v717_v46  ;;  %v3255_v48 = vsel %vm776_vm0, %v4508_v57, %v796_v28 }
  0x4f   : > { %v4459_v30 = vrot.slane %v3231_v63, 7  ;;  %4509 = vst [vmem:[#allocation13_spill] sm:$0xff] %v3255_v48  ;;  %vm651_vm4 = vcmp.gt.f32.partialorder %v619_v16, 0.0  ;;  %vm722_vm5 = vcmp.gt.f32.partialorder %v720_v60, 0.0  ;;  %v724_v0 = vmul.f32 %v2838_v11, %v720_v60 }
  0x50   : > { %v3249_v21 = vsel %vm776_vm0, %v4506_v51, %v4465_v45  ;;  %v683_v51 = vmul.f32 %v2838_v11, %v619_v16  ;;  %v721_v46 = vadd.f32 %v2824_v1, %v719_v10  ;;  %v4463_v47 = vrot.slane %v3264_v18, 7 }
  0x51   : > { %4507 = vst [vmem:[#allocation12_spill] sm:$0xff] %v3249_v21  ;;  %v3262_v62 = vsel %vm776_vm0, %v4464_v26, %v4459_v30  ;;  %v726_v28 = vsel %vm722_vm5, %v720_v60, %v724_v0  ;;  %vm1741_vm11 = vcmask 97280   ;;  %vm1774_vm12 = vcmask 195584  }
  0x52   : > { %1121 = vrot.lane.b32.xlu1 %v3203_v31, %s2739_s20  ;;  %979 = vrot.lane.b32.xlu0 %v3136_v39, %s2738_s19  ;;  %4510 = vst [vmem:[#allocation14_spill] sm:$0xff] %v3262_v62  ;;  %v3273_v35 = vsel %vm651_vm4, %v619_v16, %v683_v51  ;;  %vm723_vm6 = vcmp.gt.f32.partialorder %v721_v46, 0.0  ;;  %v725_v57 = vmul.f32 %v2838_v11, %v721_v46  ;;  %v3278_v30 = vmul.f32 0.0, %v726_v28 }
  0x53   : > { %v4462_v32 = vrot.slane %v3273_v35, 7  ;;  %v4511_v11 = vrot.slane %v2961_v33, 7  ;;  %v4513_v33 = vrot.slane %v2974_v40, 7  ;;  %v4517_v40 = vrot.slane %v3005_v58, 7 }
  0x54   : > { %v727_v10 = vsel %vm723_vm6, %v721_v46, %v725_v57  ;;  %v4461_v51 = vrot.slane %v3278_v30, 7  ;;  %v4515_v57 = vrot.slane %v2976_v41, 7  ;;  %v4519_v41 = vrot.slane %v3008_v61, 7 }
  0x55   : > { %v3285_v1 = vsel %vm776_vm0, %v4463_v47, %v4462_v32  ;;  %v3291_v16 = vmul.f32 0.0, %v727_v10  ;;  %v3296_v60 = vsel %vm776_vm0, 0.0, %v4511_v11  ;;  %v3314_v28 = vsel %vm776_vm0, %v4513_v33, 0.0 }
  0x56   : > { %1125 = vrot.lane.b32.xlu1 %v3242_v15, %s2739_s20  ;;  %1123 = vrot.lane.b32.xlu0 %v3255_v48, %s2739_s20  ;;  %4512 = vst [vmem:[#allocation15_spill] sm:$0xff] %v3296_v60  ;;  %4514 = vst [vmem:[#allocation16_spill] sm:$0xff] %v3314_v28  ;;  %v3327_v10 = vsel %vm776_vm0, 0.0, %v4515_v57  ;;  %v3336_v11 = vsel %vm776_vm0, %v4517_v40, 0.0  ;;  %v3349_v33 = vsel %vm776_vm0, 0.0, %v4519_v41  ;;  %v4521_v58 = vrot.slane %v3038_v14, 7 }
  0x57   : > { %v4460_v0 = vrot.slane %v3291_v16, 7  ;;  %4516 = vst [vmem:[#allocation17_spill] sm:$0xff] %v3327_v10  ;;  %4518 = vst [vmem:[#allocation18_spill] sm:$0xff] %v3336_v11  ;;  %v4523_v61 = vrot.slane %v3056_v25, 7  ;;  %v4525_v14 = vrot.slane %v3074_v38, 7  ;;  %v4527_v25 = vrot.slane %v3076_v44, 7 }
  0x58   : > { %4520 = vst [vmem:[#allocation19_spill] sm:$0xff] %v3349_v33  ;;  %v3358_v57 = vsel %vm776_vm0, %v4521_v58, 0.0  ;;  %v4529_v38 = vrot.slane %v3108_v3, 7  ;;  %v4531_v3 = vrot.slane %v3133_v55, 7  ;;  %v4533_v47 = vrot.slane %v3160_v29, 7 }
  0x59   : > { %v3309_v46 = vsel %vm776_vm0, %v4461_v51, %v4460_v0  ;;  %4522 = vst [vmem:[#allocation20_spill] sm:$0xff] %v3358_v57  ;;  %v3371_v40 = vsel %vm776_vm0, 0.0, %v4523_v61  ;;  %v3380_v41 = vsel %vm776_vm0, %v4525_v14, 0.0  ;;  %v3393_v58 = vsel %vm776_vm0, 0.0, %v4527_v25 }
  0x5a   : > { %983 = vrot.lane.b32.xlu1 %v3255_v48, %s2738_s19  ;;  %981 = vrot.lane.b32.xlu0 %v3203_v31, %s2738_s19  ;;  %4524 = vst [vmem:[#allocation21_spill] sm:$0xff] %v3371_v40  ;;  %4526 = vst [vmem:[#allocation22_spill] sm:$0xff] %v3380_v41  ;;  %v3402_v61 = vsel %vm776_vm0, %v4529_v38, 0.0  ;;  %v3423_v38 = vsel %vm776_vm0, 0.0, %v4531_v3  ;;  %v3436_v26 = vsel %vm776_vm0, %v4533_v47, 0.0  ;;  %v4535_v29 = vrot.slane %v3167_v34, 7 }
  0x5b   : > { %4528 = vst [vmem:[#allocation23_spill] sm:$0xff] %v3393_v58  ;;  %4530 = vst [vmem:[#allocation24_spill] sm:$0xff] %v3402_v61  ;;  %v4550_v31 = vrot.slane %v3101_v8, 7  ;;  %v4551_v48 = vrot.slane %v3278_v30, 7  ;;  %vm1812_vm13 = vcmask 293888   ;;  %vm2345_vm14 = vcmask 57344  }
  0x5c   : > { %4532 = vst [vmem:[#allocation25_spill] sm:$0xff] %v3423_v38  ;;  %4534 = vst [vmem:[#allocation26_spill] sm:$0xff] %v3436_v26  ;;  %v3457_v47 = vsel %vm776_vm0, 0.0, %v4535_v29 }
  0x5d   : > { %4536 = vst [vmem:[#allocation27_spill] sm:$0xff] %v3457_v47 }
  0x5e   : > { %1127 = vrot.lane.b32.xlu1 %v3296_v60, %s2739_s20  ;;  %985 = vrot.lane.b32.xlu0 %v3242_v15, %s2738_s19  ;;  %v901_v15 = vsel %vm776_vm0, %v4550_v31, 0.0  ;;  %v1811_v31 = vld [vmem:[%s4435_s3 + $0x20] sm:$0xf] }
  0x62   : > { %1131 = vrot.lane.b32.xlu1 %v3314_v28, %s2739_s20  ;;  %1129 = vrot.lane.b32.xlu0 %v3002_v56, %s2739_s20 }
  0x66   : > { %989 = vrot.lane.b32.xlu1 %v3002_v56, %s2738_s19  ;;  %987 = vrot.lane.b32.xlu0 %v3296_v60, %s2738_s19 }
  0x6a   : > { %1133 = vrot.lane.b32.xlu1 %v3327_v10, %s2739_s20  ;;  %991 = vrot.lane.b32.xlu0 %v3314_v28, %s2738_s19 }
  0x6e   : > { %1137 = vrot.lane.b32.xlu1 %v3336_v11, %s2739_s20  ;;  %1135 = vrot.lane.b32.xlu0 %v3036_v9, %s2739_s20 }
  0x72   : > { %995 = vrot.lane.b32.xlu1 %v3036_v9, %s2738_s19  ;;  %993 = vrot.lane.b32.xlu0 %v3327_v10, %s2738_s19 }
  0x76   : > { %1139 = vrot.lane.b32.xlu1 %v3349_v33, %s2739_s20  ;;  %997 = vrot.lane.b32.xlu0 %v3336_v11, %s2738_s19 }
  0x7a   : > { %1143 = vrot.lane.b32.xlu1 %v3358_v57, %s2739_s20  ;;  %1141 = vrot.lane.b32.xlu0 %v3054_v24, %s2739_s20 }
  0x7e   : > { %1001 = vrot.lane.b32.xlu1 %v3054_v24, %s2738_s19  ;;  %999 = vrot.lane.b32.xlu0 %v3349_v33, %s2738_s19 }
  0x82   : > { %1145 = vrot.lane.b32.xlu1 %v3371_v40, %s2739_s20  ;;  %1003 = vrot.lane.b32.xlu0 %v3358_v57, %s2738_s19 }
  0x86   : > { %1149 = vrot.lane.b32.xlu1 %v3380_v41, %s2739_s20  ;;  %1147 = vrot.lane.b32.xlu0 %v3099_v4, %s2739_s20 }
  0x8a   : > { %1007 = vrot.lane.b32.xlu1 %v3099_v4, %s2738_s19  ;;  %1005 = vrot.lane.b32.xlu0 %v3371_v40, %s2738_s19 }
  0x8e   : > { %1151 = vrot.lane.b32.xlu1 %v3393_v58, %s2739_s20  ;;  %1009 = vrot.lane.b32.xlu0 %v3380_v41, %s2738_s19 }
  0x90   : > { %v3404_v14 = vpop.permute.xlu1 %955  ;;  %v3406_v0 = vpop.permute.xlu0 %951 }
  0x91   : > { %v1244_v30 = vsel %vm1241_vm7, %v901_v15, %v3404_v14  ;;  %v4553_v14 = vrot.slane %v3291_v16, 7 }
  0x92   : > { %1155 = vrot.lane.b32.xlu1 %v3402_v61, %s2739_s20  ;;  %1153 = vrot.lane.b32.xlu0 %v3131_v54, %s2739_s20 }
  0x94   : > { %v3412_v44 = vpop.permute.xlu1 %1097  ;;  %v3414_v25 = vpop.permute.xlu0 %953 }
  0x96   : > { %1013 = vrot.lane.b32.xlu1 %v3131_v54, %s2738_s19  ;;  %1011 = vrot.lane.b32.xlu0 %v3393_v58, %s2738_s19 }
  0x98   : > { %v3425_v51 = vpop.permute.xlu1 %1101  ;;  %v3427_v32 = vpop.permute.xlu0 %1099 }
  0x9a   : > { %1157 = vrot.lane.b32.xlu1 %v3423_v38, %s2739_s20  ;;  %1015 = vrot.lane.b32.xlu0 %v3402_v61, %s2738_s19 }
  0x9c   : > { %v3438_v45 = vpop.permute.xlu1 %959  ;;  %v3440_v55 = vpop.permute.xlu0 %957 }
  0x9e   : > { %1161 = vrot.lane.b32.xlu1 %v3436_v26, %s2739_s20  ;;  %1159 = vrot.lane.b32.xlu0 %v3181_v19, %s2739_s20 }
  0xa0   : > { %v3446_v3 = vpop.permute.xlu1 %1103  ;;  %v3448_v58 = vpop.permute.xlu0 %961 }
  0xa2   : > { %1019 = vrot.lane.b32.xlu1 %v3181_v19, %s2738_s19  ;;  %1017 = vrot.lane.b32.xlu0 %v3423_v38, %s2738_s19  ;;  %v4537_v19 = vrot.slane %v3184_v22, 7 }
  0xa4   : > { %v3459_v61 = vpop.permute.xlu1 %1107  ;;  %v3461_v54 = vpop.permute.xlu0 %1105  ;;  %v3470_v40 = vsel %vm776_vm0, %v4537_v19, 0.0  ;;  %v4539_v19 = vrot.slane %v3212_v53, 7 }
  0xa5   : > { %4538 = vst [vmem:[#allocation28_spill] sm:$0xff] %v3470_v40 }
  0xa6   : > { %1163 = vrot.lane.b32.xlu1 %v3457_v47, %s2739_s20  ;;  %1021 = vrot.lane.b32.xlu0 %v3436_v26, %s2738_s19  ;;  %v3491_v22 = vsel %vm776_vm0, 0.0, %v4539_v19 }
  0xa7   : > { %4540 = vst [vmem:[#allocation29_spill] sm:$0xff] %v3491_v22 }
  0xa8   : > { %v3472_v38 = vpop.permute.xlu1 %965  ;;  %v3474_v34 = vpop.permute.xlu0 %963 }
  0xaa   : > { %1167 = vrot.lane.b32.xlu1 %v3470_v40, %s2739_s20  ;;  %1165 = vrot.lane.b32.xlu0 %v3210_v23, %s2739_s20 }
  0xac   : > { %v3480_v29 = vpop.permute.xlu1 %1109  ;;  %v3482_v41 = vpop.permute.xlu0 %967 }
  0xae   : > { %1025 = vrot.lane.b32.xlu1 %v3210_v23, %s2738_s19  ;;  %1023 = vrot.lane.b32.xlu0 %v3457_v47, %s2738_s19  ;;  %v4541_v23 = vrot.slane %v3224_v12, 7 }
  0xb0   : > { %v3493_v26 = vpop.permute.xlu1 %1113  ;;  %v3495_v4 = vpop.permute.xlu0 %1111  ;;  %v3504_v33 = vsel %vm776_vm0, %v4541_v23, 0.0  ;;  %v4543_v23 = vrot.slane %v3226_v59, 7 }
  0xb1   : > { %4542 = vst [vmem:[#allocation30_spill] sm:$0xff] %v3504_v33 }
  0xb2   : > { %1169 = vrot.lane.b32.xlu1 %v3491_v22, %s2739_s20  ;;  %1027 = vrot.lane.b32.xlu0 %v3470_v40, %s2738_s19  ;;  %v3525_v12 = vsel %vm776_vm0, 0.0, %v4543_v23 }
  0xb3   : > { %4544 = vst [vmem:[#allocation31_spill] sm:$0xff] %v3525_v12 }
  0xb4   : > { %v3506_v47 = vpop.permute.xlu1 %971  ;;  %v3508_v53 = vpop.permute.xlu0 %969 }
  0xb6   : > { %1173 = vrot.lane.b32.xlu1 %v3504_v33, %s2739_s20  ;;  %1171 = vrot.lane.b32.xlu0 %v3249_v21, %s2739_s20 }
  0xb8   : > { %v3514_v19 = vpop.permute.xlu1 %1115  ;;  %v3516_v57 = vpop.permute.xlu0 %973 }
  0xba   : > { %1031 = vrot.lane.b32.xlu1 %v3249_v21, %s2738_s19  ;;  %1029 = vrot.lane.b32.xlu0 %v3491_v22, %s2738_s19  ;;  %v4545_v21 = vrot.slane %v3231_v63, 7  ;;  %v4547_v63 = vrot.slane %v3264_v18, 7  ;;  %v4548_v18 = vrot.slane %v3273_v35, 7  ;;  %v1810_v35 = vld [vmem:[%s4435_s3 + $0x18] sm:$0xff] }
  0xbc   : > { %v3527_v40 = vpop.permute.xlu1 %1119  ;;  %v3529_v24 = vpop.permute.xlu0 %1117  ;;  %v3538_v10 = vsel %vm776_vm0, %v4545_v21, 0.0  ;;  %v899_v21 = vsel %vm776_vm0, 0.0, %v4547_v63  ;;  %v917_v63 = vsel %vm776_vm0, %v4548_v18, 0.0 }
  0xbd   : > { %4546 = vst [vmem:[#allocation32_spill] sm:$0xff] %v3538_v10 }
  0xbe   : > { %1175 = vrot.lane.b32.xlu1 %v3525_v12, %s2739_s20  ;;  %1033 = vrot.lane.b32.xlu0 %v3504_v33, %s2738_s19 }
  0xc0   : > { %v3540_v22 = vpop.permute.xlu1 %977  ;;  %v3542_v59 = vpop.permute.xlu0 %975 }
  0xc2   : > { %1179 = vrot.lane.b32.xlu1 %v3538_v10, %s2739_s20  ;;  %1177 = vrot.lane.b32.xlu0 %v3262_v62, %s2739_s20 }
  0xc4   : > { %v3548_v23 = vpop.permute.xlu1 %1121  ;;  %v3550_v11 = vpop.permute.xlu0 %979 }
  0xc6   : > { %1037 = vrot.lane.b32.xlu1 %v3262_v62, %s2738_s19  ;;  %1035 = vrot.lane.b32.xlu0 %v3525_v12, %s2738_s19  ;;  %v1807_v62 = vld [vmem:[%s4435_s3] sm:$0xff]  ;;  %v1808_v12 = vld [vmem:[%s4435_s3 + $0x8] sm:$0xff] }
  0xc7   : > { %v2672_v60 = vpack.c.bf16 %v1808_v12, %v1807_v62 }
  0xc8   : > { %v3559_v33 = vpop.permute.xlu1 %1125  ;;  %v3561_v9 = vpop.permute.xlu0 %1123 }
  0xc9   : > { %2673 = vmatprep.subr.bf16.mxu0 %v2672_v60  ;;  %2680 = vmatprep.subr.bf16.mxu1 %v2672_v60 }
  0xca   : > { %1181 = vrot.lane.b32.xlu1 %v899_v21, %s2739_s20  ;;  %1039 = vrot.lane.b32.xlu0 %v3538_v10, %s2738_s19  ;;  %v1809_v10 = vld [vmem:[%s4435_s3 + $0x10] sm:$0xff] }
  0xcb   : > { %2675 = vmatpush3.bf16.msra.mxu0 %v2672_v60  ;;  %v2676_v62 = vpack.c.bf16 %v1810_v35, %v1809_v10  ;;  %2683 = vmatpush3.bf16.msra.mxu1 %v2672_v60  ;;  %v900_v60 = vsel %vm776_vm0, 0.0, %v4551_v48  ;;  %v4552_v10 = vrot.slane %v3111_v20, 7  ;;  %v1243_v48 = vsel %vm1241_vm7, %v3148_v17, %v3414_v25 }
  0xcc   : > { %v3575_v28 = vpop.permute.xlu1 %983  ;;  %v3577_v56 = vpop.permute.xlu0 %981  ;;  %v1293_v20 = vsel %vm1290_vm9, %v1244_v30, %v3425_v51  ;;  %v918_v17 = vsel %vm776_vm0, %v4553_v14, 0.0 }
  0xcd   : > { %2677 = vmatprep.subr.bf16.mxu0 %v2676_v62  ;;  %2681 = vmatprep.subr.bf16.mxu1 %v2676_v62  ;;  %v883_v35 = vsel %vm776_vm0, 0.0, %v4552_v10  ;;  %v1246_v10 = vsel %vm1241_vm7, %v2874_v43, %v3438_v45  ;;  %vm1564_vm0 = vcmask 1045504  }
  0xce   : > { %1185 = vrot.lane.b32.xlu1 %v917_v63, %s2739_s20  ;;  %1183 = vrot.lane.b32.xlu0 %v3285_v1, %s2739_s20  ;;  %v1242_v15 = vsel %vm1241_vm7, %v883_v35, %v3406_v0  ;;  %v1568_v0 = vrot.slane %v1293_v20, 2  ;;  %v1247_v35 = vsel %vm1241_vm7, %v2858_v36, %v3448_v58  ;;  %v1245_v36 = vsel %vm1241_vm7, %v2861_v37, %v3440_v55 }
  0xcf   : > { %2679 = vmatpush3.bf16.msra.mxu0 %v2676_v62  ;;  %2684 = vmatpush3.bf16.msra.mxu1 %v2676_v62  ;;  %v3631_v51 = vsel %vm1290_vm9, %v1242_v15, %v3412_v44  ;;  %v1296_v30 = vsel %vm1290_vm9, %v1247_v35, %v3459_v61  ;;  %v3669_v45 = vsel %vm1290_vm9, %v1245_v36, %v3446_v3 }
  0xd0   : > { %v3588_v12 = vpop.permute.xlu1 %1127  ;;  %v3590_v18 = vpop.permute.xlu0 %985  ;;  %2622 = vmatprep.subr.msk.mxu0 %vm1909_vm8, %v1811_v31  ;;  %2682 = vmatprep.subr.msk.mxu1 %vm1909_vm8, %v1811_v31  ;;  %v1388_v16 = vrot.slane %v3631_v51, 1  ;;  %v1565_v43 = vrot.slane %v3631_v51, 2  ;;  %v1396_v61 = vrot.slane %v1296_v30, 1  ;;  %v1393_v37 = vrot.slane %v3669_v45, 1 }
  0xd1   : > { %4549 = vst [vmem:[#allocation33_spill] sm:$0xff] %v3588_v12  ;;  %v1573_v55 = vrot.slane %v1296_v30, 2 }
  0xd2   : > { %1043 = vrot.lane.b32.xlu1 %v3285_v1, %s2738_s19  ;;  %1041 = vrot.lane.b32.xlu0 %v899_v21, %s2738_s19  ;;  %v3620_v1 = vsel %vm1290_vm9, %v1243_v48, %v3427_v32  ;;  %v1391_v21 = vrot.slane %v1293_v20, 1  ;;  %v3659_v48 = vsel %vm1290_vm9, %v1246_v10, %v3461_v54 }
  0xd3   : > { %2623 = vmatpush3.msk.msra.mxu0 %vm1909_vm8, %v1811_v31  ;;  %2685 = vmatpush3.msk.msra.mxu1 %vm1909_vm8, %v1811_v31  ;;  %v1566_v62 = vrot.slane %v3620_v1, 2  ;;  %v1394_v20 = vrot.slane %v3659_v48, 1  ;;  %v1571_v3 = vrot.slane %v3659_v48, 2 }
  0xd4   : > { %v3604_v12 = vpop.permute.xlu1 %1131  ;;  %v3606_v8 = vpop.permute.xlu0 %1129 }
  0xd5   : > { %v1569_v15 = vsel %vm1564_vm0, %v1566_v62, %v1568_v0  ;;  %v1567_v14 = vsel %vm1564_vm0, %v1565_v43, %v1566_v62  ;;  %v1397_v0 = vsel %vm1387_vm10, %v1394_v20, %v1396_v61  ;;  %v1395_v62 = vsel %vm1387_vm10, %v1393_v37, %v1394_v20 }
  0xd6   : > { %1187 = vrot.lane.b32.xlu1 %v900_v60, %s2739_s20  ;;  %1045 = vrot.lane.b32.xlu0 %v917_v63, %s2738_s19  ;;  %v1389_v63 = vrot.slane %v3620_v1, 1  ;;  %v1252_v61 = vsel %vm1241_vm7, %v2918_v7, %v3506_v47  ;;  %v1253_v20 = vsel %vm1241_vm7, %v2915_v6, %v3516_v57  ;;  %v1251_v6 = vsel %vm1241_vm7, %v2912_v5, %v3508_v53 }
  0xd7   : > { %v1302_v37 = vsel %vm1290_vm9, %v1253_v20, %v3527_v40  ;;  %v3747_v57 = vsel %vm1290_vm9, %v1251_v6, %v3514_v19  ;;  %v1258_v20 = vsel %vm1241_vm7, %v3141_v13, %v3575_v28  ;;  %v4554_v28 = vld [vmem:[#allocation5_spill] sm:$0xff] }
  0xd8   : > { %v3633_v25 = vpop.permute.xlu1 %989  ;;  %v3635_v32 = vpop.permute.xlu0 %987  ;;  %v1390_v31 = vsel %vm1387_vm10, %v1388_v16, %v1389_v63  ;;  %v1250_v16 = vsel %vm1241_vm7, %v2885_v50, %v3482_v41  ;;  %v1248_v50 = vsel %vm1241_vm7, %v2871_v42, %v3474_v34  ;;  %v1403_v5 = vrot.slane %v3747_v57, 1 }
  0xd9   : > { %v1299_v10 = vsel %vm1290_vm9, %v1250_v16, %v3493_v26  ;;  %v3708_v41 = vsel %vm1290_vm9, %v1248_v50, %v3480_v29  ;;  %v1583_v53 = vrot.slane %v1302_v37, 2  ;;  %v3815_v6 = vsel %vm1290_vm9, %v1258_v20, %v3606_v8 }
  0xda   : > { %1191 = vrot.lane.b32.xlu1 %v918_v17, %s2739_s20  ;;  %1189 = vrot.lane.b32.xlu0 %v3309_v46, %s2739_s20  ;;  %v1392_v46 = vsel %vm1387_vm10, %v1389_v63, %v1391_v21  ;;  %s2740_s20 = smov 12   ;;  %v1249_v63 = vsel %vm1241_vm7, %v2889_v52, %v3472_v38  ;;  %v1570_v52 = vrot.slane %v3669_v45, 2  ;;  %v1398_v42 = vrot.slane %v3708_v41, 1 }
  0xdb   : > { %v3698_v35 = vsel %vm1290_vm9, %v1249_v63, %v3495_v4  ;;  %v1401_v4 = vrot.slane %v1299_v10, 1  ;;  %v1578_v34 = vrot.slane %v1299_v10, 2  ;;  %v1575_v7 = vrot.slane %v3708_v41, 2 }
  0xdc   : > { %v3643_v44 = vpop.permute.xlu1 %1133  ;;  %v3645_v60 = vpop.permute.xlu0 %991  ;;  %v1572_v30 = vsel %vm1564_vm0, %v1570_v52, %v1571_v3  ;;  %v1576_v29 = vrot.slane %v3698_v35, 2  ;;  %v1255_v10 = vsel %vm1241_vm7, %v3015_v2, %v3540_v22  ;;  %v1256_v52 = vsel %vm1241_vm7, %v2989_v49, %v3550_v11 }
  0xdd   : > { %v1580_v2 = vrot.slane %v3747_v57, 2  ;;  %v1254_v49 = vsel %vm1241_vm7, %v2949_v27, %v3542_v59 }
  0xde   : > { %1470 = vrot.lane.b32.xlu1 %v1392_v46, %s2740_s20  ;;  %1468 = vrot.lane.b32.xlu0 %v1390_v31, %s2740_s20  ;;  %v1399_v46 = vrot.slane %v3698_v35, 1  ;;  %v1574_v31 = vsel %vm1564_vm0, %v1571_v3, %v1573_v55  ;;  %v3737_v55 = vsel %vm1290_vm9, %v1252_v61, %v3529_v24  ;;  %v1406_v24 = vrot.slane %v1302_v37, 1 }
  0xdf   : > { %v1404_v3 = vrot.slane %v3737_v55, 1  ;;  %v1579_v63 = vsel %vm1564_vm0, %v1576_v29, %v1578_v34  ;;  %v1577_v16 = vsel %vm1564_vm0, %v1575_v7, %v1576_v29  ;;  %v1581_v19 = vrot.slane %v3737_v55, 2 }
  0xe0   : > { %v3671_v58 = vpop.permute.xlu1 %1137  ;;  %v3673_v54 = vpop.permute.xlu0 %1135  ;;  %v3786_v11 = vsel %vm1290_vm9, %v1254_v49, %v3548_v23 }
  0xe1   : > { %v1407_v50 = vsel %vm1387_vm10, %v1404_v3, %v1406_v24  ;;  %v1582_v34 = vsel %vm1564_vm0, %v1580_v2, %v1581_v19  ;;  %v1408_v27 = vrot.slane %v3786_v11, 1  ;;  %v1585_v13 = vrot.slane %v3786_v11, 2 }
  0xe2   : > { %1647 = vrot.lane.b32.xlu1 %v1569_v15, %s2741_s23  ;;  %1645 = vrot.lane.b32.xlu0 %v1567_v14, %s2741_s23  ;;  %v1402_v15 = vsel %vm1387_vm10, %v1399_v46, %v1401_v4  ;;  %v1400_v14 = vsel %vm1387_vm10, %v1398_v42, %v1399_v46  ;;  %v1405_v4 = vsel %vm1387_vm10, %v1403_v5, %v1404_v3 }
  0xe3   : > { %v1305_v46 = vsel %vm1290_vm9, %v1256_v52, %v3559_v33  ;;  %v1584_v42 = vsel %vm1564_vm0, %v1581_v19, %v1583_v53  ;;  %v1591_v19 = vrot.slane %v3815_v6, 2 }
  0xe4   : > { %v3682_v17 = vpop.permute.xlu1 %995  ;;  %v3684_v21 = vpop.permute.xlu0 %993  ;;  %v1588_v59 = vrot.slane %v1305_v46, 2 }
  0xe6   : > { %1474 = vrot.lane.b32.xlu1 %v1397_v0, %s2740_s20  ;;  %1472 = vrot.lane.b32.xlu0 %v1395_v62, %s2740_s20 }
  0xe8   : > { %v3710_v38 = vpop.permute.xlu1 %1139  ;;  %v3712_v26 = vpop.permute.xlu0 %997 }
  0xea   : > { %1651 = vrot.lane.b32.xlu1 %v1574_v31, %s2741_s23  ;;  %1649 = vrot.lane.b32.xlu0 %v1572_v30, %s2741_s23  ;;  %v3776_v31 = vsel %vm1290_vm9, %v1255_v10, %v3561_v9  ;;  %v1411_v9 = vrot.slane %v1305_v46, 1  ;;  %v4557_v46 = vld [vmem:[#allocation11_spill] sm:$0xff] }
  0xeb   : > { %v1409_v30 = vrot.slane %v3776_v31, 1  ;;  %v1586_v23 = vrot.slane %v3776_v31, 2  ;;  %v1262_v2 = vsel %vm1241_vm7, %v4557_v46, %v3645_v60 }
  0xec   : > { %v3721_v43 = vpop.permute.xlu1 %1143  ;;  %v3723_v36 = vpop.permute.xlu0 %1141 }
  0xed   : > { %v1410_v37 = vsel %vm1387_vm10, %v1408_v27, %v1409_v30  ;;  %v1587_v5 = vsel %vm1564_vm0, %v1585_v13, %v1586_v23  ;;  %v4559_v13 = vld [vmem:[#allocation2_spill] sm:$0xff] }
  0xee   : > { %1478 = vrot.lane.b32.xlu1 %v1402_v15, %s2740_s20  ;;  %1476 = vrot.lane.b32.xlu0 %v1400_v14, %s2740_s20  ;;  %v1259_v15 = vsel %vm1241_vm7, %v3136_v39, %v3590_v18  ;;  %v1412_v14 = vsel %vm1387_vm10, %v1409_v30, %v1411_v9  ;;  %v1257_v39 = vsel %vm1241_vm7, %v4554_v28, %v3577_v56  ;;  %v4555_v18 = vld [vmem:[#allocation33_spill] sm:$0xff] }
  0xef   : > { %v1308_v7 = vsel %vm1290_vm9, %v1259_v15, %v3604_v12  ;;  %v3825_v24 = vsel %vm1290_vm9, %v1257_v39, %v4555_v18  ;;  %v1311_v30 = vsel %vm1290_vm9, %v1262_v2, %v3671_v58  ;;  %v1264_v28 = vsel %vm1241_vm7, %v4559_v13, %v3682_v17  ;;  %v4560_v39 = vld [vmem:[#allocation16_spill] sm:$0xff] }
  0xf0   : > { %v3749_v47 = vpop.permute.xlu1 %1001  ;;  %v3751_v40 = vpop.permute.xlu0 %999  ;;  %v1416_v8 = vrot.slane %v1308_v7, 1  ;;  %v1413_v56 = vrot.slane %v3825_v24, 1  ;;  %v1593_v53 = vrot.slane %v1308_v7, 2  ;;  %v1265_v18 = vsel %vm1241_vm7, %v4560_v39, %v3712_v26 }
  0xf2   : > { %1655 = vrot.lane.b32.xlu1 %v1579_v63, %s2741_s23  ;;  %1653 = vrot.lane.b32.xlu0 %v1577_v16, %s2741_s23  ;;  %v1414_v63 = vrot.slane %v3815_v6, 1  ;;  %v1589_v16 = vsel %vm1564_vm0, %v1586_v23, %v1588_v59  ;;  %v1594_v20 = vsel %vm1564_vm0, %v1591_v19, %v1593_v53 }
  0xf4   : > { %v3760_v0 = vpop.permute.xlu1 %1145  ;;  %v3762_v62 = vpop.permute.xlu0 %1003  ;;  %v1417_v49 = vsel %vm1387_vm10, %v1414_v63, %v1416_v8  ;;  %v1415_v9 = vsel %vm1387_vm10, %v1413_v56, %v1414_v63  ;;  %v4561_v56 = vld [vmem:[#allocation15_spill] sm:$0xff] }
  0xf5   : > { %v1263_v26 = vsel %vm1241_vm7, %v4561_v56, %v3684_v21  ;;  %v4566_v56 = vld [vmem:[#allocation20_spill] sm:$0xff] }
  0xf6   : > { %1482 = vrot.lane.b32.xlu1 %v1407_v50, %s2740_s20  ;;  %1480 = vrot.lane.b32.xlu0 %v1405_v4, %s2740_s20  ;;  %v4556_v50 = vld [vmem:[#allocation13_spill] sm:$0xff]  ;;  %v3903_v53 = vsel %vm1290_vm9, %v1263_v26, %v3710_v38 }
  0xf7   : > { %v1261_v4 = vsel %vm1241_vm7, %v4556_v50, %v3633_v25  ;;  %v1590_v25 = vrot.slane %v3825_v24, 2  ;;  %v1423_v21 = vrot.slane %v3903_v53, 1 }
  0xf8   : > { %v3788_v22 = vpop.permute.xlu1 %1149  ;;  %v3790_v33 = vpop.permute.xlu0 %1147 }
  0xf9   : > { %v1592_v15 = vsel %vm1564_vm0, %v1590_v25, %v1591_v19 }
  0xfa   : > { %1659 = vrot.lane.b32.xlu1 %v1584_v42, %s2741_s23  ;;  %1657 = vrot.lane.b32.xlu0 %v1582_v34, %s2741_s23  ;;  %v3854_v42 = vsel %vm1290_vm9, %v1261_v4, %v3673_v54  ;;  %v4558_v34 = vld [vmem:[#allocation9_spill] sm:$0xff]  ;;  %v1421_v54 = vrot.slane %v1311_v30, 1 }
  0xfb   : > { %v1260_v60 = vsel %vm1241_vm7, %v4558_v34, %v3635_v32  ;;  %v1419_v23 = vrot.slane %v3854_v42, 1  ;;  %v4563_v34 = vld [vmem:[#allocation18_spill] sm:$0xff] }
  0xfc   : > { %v3799_v29 = vpop.permute.xlu1 %1007  ;;  %v3801_v61 = vpop.permute.xlu0 %1005  ;;  %v3864_v27 = vsel %vm1290_vm9, %v1260_v60, %v3643_v44  ;;  %v1596_v44 = vrot.slane %v3854_v42, 2  ;;  %v1268_v60 = vsel %vm1241_vm7, %v4563_v34, %v3762_v62 }
  0xfd   : > { %v1418_v32 = vrot.slane %v3864_v27, 1  ;;  %v1422_v8 = vsel %vm1387_vm10, %v1419_v23, %v1421_v54  ;;  %v1595_v17 = vrot.slane %v3864_v27, 2 }
  0xfe   : > { %1486 = vrot.lane.b32.xlu1 %v1412_v14, %s2740_s20  ;;  %1484 = vrot.lane.b32.xlu0 %v1410_v37, %s2740_s20  ;;  %v1598_v14 = vrot.slane %v1311_v30, 2  ;;  %v4562_v30 = vld [vmem:[#allocation3_spill] sm:$0xff] }
  0xff   : > { %v1420_v63 = vsel %vm1387_vm10, %v1418_v32, %v1419_v23  ;;  %v1597_v46 = vsel %vm1564_vm0, %v1595_v17, %v1596_v44  ;;  %v1267_v25 = vsel %vm1241_vm7, %v4562_v30, %v3749_v47  ;;  %v1600_v47 = vrot.slane %v3903_v53, 2  ;;  %v4564_v32 = vld [vmem:[#allocation17_spill] sm:$0xff] }
 0x100   : > { %v3827_v3 = vpop.permute.xlu1 %1151  ;;  %v3829_v12 = vpop.permute.xlu0 %1009  ;;  %v1599_v4 = vsel %vm1564_vm0, %v1596_v44, %v1598_v14  ;;  %v1266_v62 = vsel %vm1241_vm7, %v4564_v32, %v3751_v40  ;;  %v4569_v32 = vld [vmem:[#allocation22_spill] sm:$0xff] }
 0x101   : > { %v3942_v14 = vsel %vm1290_vm9, %v1266_v62, %v3760_v0  ;;  %v1271_v26 = vsel %vm1241_vm7, %v4566_v56, %v3829_v12 }
 0x102   : > { %1663 = vrot.lane.b32.xlu1 %v1589_v16, %s2741_s23  ;;  %1661 = vrot.lane.b32.xlu0 %v1587_v5, %s2741_s23  ;;  %v1314_v16 = vsel %vm1290_vm9, %v1265_v18, %v3721_v43  ;;  %v3893_v5 = vsel %vm1290_vm9, %v1264_v28, %v3723_v36  ;;  %v1428_v40 = vrot.slane %v3942_v14, 1 }
 0x103   : > { %v1426_v36 = vrot.slane %v1314_v16, 1  ;;  %v1424_v50 = vrot.slane %v3893_v5, 1  ;;  %v1603_v2 = vrot.slane %v1314_v16, 2  ;;  %v1601_v38 = vrot.slane %v3893_v5, 2  ;;  %v4565_v16 = vld [vmem:[#allocation4_spill] sm:$0xff] }
 0x104   : > { %v3838_v10 = vpop.permute.xlu1 %1155  ;;  %v3840_v52 = vpop.permute.xlu0 %1153  ;;  %v1270_v17 = vsel %vm1241_vm7, %v4565_v16, %v3799_v29  ;;  %v1605_v29 = vrot.slane %v3942_v14, 2 }
 0x105   : > { %v1427_v54 = vsel %vm1387_vm10, %v1424_v50, %v1426_v36  ;;  %v1425_v23 = vsel %vm1387_vm10, %v1423_v21, %v1424_v50  ;;  %v1604_v28 = vsel %vm1564_vm0, %v1601_v38, %v1603_v2  ;;  %v1602_v39 = vsel %vm1564_vm0, %v1600_v47, %v1601_v38  ;;  %v4567_v21 = vld [vmem:[#allocation19_spill] sm:$0xff] }
 0x106   : > { %1490 = vrot.lane.b32.xlu1 %v1417_v49, %s2740_s20  ;;  %1488 = vrot.lane.b32.xlu0 %v1415_v9, %s2740_s20  ;;  %v1269_v12 = vsel %vm1241_vm7, %v4567_v21, %v3801_v61  ;;  %v4572_v21 = vld [vmem:[#allocation24_spill] sm:$0xff] }
 0x107   : > { %v3975_v2 = vsel %vm1290_vm9, %v1269_v12, %v3827_v3 }
 0x108   : > { %v3866_v59 = vpop.permute.xlu1 %1013  ;;  %v3868_v58 = vpop.permute.xlu0 %1011  ;;  %v1433_v61 = vrot.slane %v3975_v2, 1 }
 0x10a   : > { %1667 = vrot.lane.b32.xlu1 %v1594_v20, %s2741_s23  ;;  %1665 = vrot.lane.b32.xlu0 %v1592_v15, %s2741_s23  ;;  %v1317_v20 = vsel %vm1290_vm9, %v1268_v60, %v3788_v22  ;;  %v3932_v15 = vsel %vm1290_vm9, %v1267_v25, %v3790_v33 }
 0x10b   : > { %v1431_v13 = vrot.slane %v1317_v20, 1  ;;  %v1429_v33 = vrot.slane %v3932_v15, 1  ;;  %v1608_v18 = vrot.slane %v1317_v20, 2  ;;  %v1606_v0 = vrot.slane %v3932_v15, 2  ;;  %v4568_v20 = vld [vmem:[#allocation6_spill] sm:$0xff] }
 0x10c   : > { %v3877_v37 = vpop.permute.xlu1 %1157  ;;  %v3879_v7 = vpop.permute.xlu0 %1015  ;;  %v1273_v47 = vsel %vm1241_vm7, %v4568_v20, %v3866_v59  ;;  %v1610_v59 = vrot.slane %v3975_v2, 2 }
 0x10d   : > { %v1432_v36 = vsel %vm1387_vm10, %v1429_v33, %v1431_v13  ;;  %v1430_v50 = vsel %vm1387_vm10, %v1428_v40, %v1429_v33  ;;  %v1609_v25 = vsel %vm1564_vm0, %v1606_v0, %v1608_v18  ;;  %v1607_v34 = vsel %vm1564_vm0, %v1605_v29, %v1606_v0  ;;  %v4570_v40 = vld [vmem:[#allocation21_spill] sm:$0xff] }
 0x10e   : > { %1494 = vrot.lane.b32.xlu1 %v1422_v8, %s2740_s20  ;;  %1492 = vrot.lane.b32.xlu0 %v1420_v63, %s2740_s20  ;;  %v1274_v62 = vsel %vm1241_vm7, %v4569_v32, %v3879_v7  ;;  %v1272_v7 = vsel %vm1241_vm7, %v4570_v40, %v3868_v58  ;;  %v4575_v40 = vld [vmem:[#allocation26_spill] sm:$0xff] }
 0x10f   : > { %v4008_v18 = vsel %vm1290_vm9, %v1272_v7, %v3877_v37 }
 0x110   : > { %v3905_v19 = vpop.permute.xlu1 %1161  ;;  %v3907_v43 = vpop.permute.xlu0 %1159 }
 0x112   : > { %1671 = vrot.lane.b32.xlu1 %v1599_v4, %s2741_s23  ;;  %1669 = vrot.lane.b32.xlu0 %v1597_v46, %s2741_s23  ;;  %v1320_v4 = vsel %vm1290_vm9, %v1271_v26, %v3838_v10  ;;  %v3965_v46 = vsel %vm1290_vm9, %v1270_v17, %v3840_v52  ;;  %v1438_v26 = vrot.slane %v4008_v18, 1 }
 0x113   : > { %v1436_v30 = vrot.slane %v1320_v4, 1  ;;  %v1434_v52 = vrot.slane %v3965_v46, 1  ;;  %v1613_v60 = vrot.slane %v1320_v4, 2  ;;  %v1611_v3 = vrot.slane %v3965_v46, 2  ;;  %v4571_v4 = vld [vmem:[#allocation7_spill] sm:$0xff] }
 0x114   : > { %v3916_v49 = vpop.permute.xlu1 %1019  ;;  %v3918_v9 = vpop.permute.xlu0 %1017 }
 0x115   : > { %v1437_v13 = vsel %vm1387_vm10, %v1434_v52, %v1436_v30  ;;  %v1435_v33 = vsel %vm1387_vm10, %v1433_v61, %v1434_v52  ;;  %v1614_v17 = vsel %vm1564_vm0, %v1611_v3, %v1613_v60  ;;  %v1612_v56 = vsel %vm1564_vm0, %v1610_v59, %v1611_v3 }
 0x116   : > { %1498 = vrot.lane.b32.xlu1 %v1427_v54, %s2740_s20  ;;  %1496 = vrot.lane.b32.xlu0 %v1425_v23, %s2740_s20  ;;  %v1276_v29 = vsel %vm1241_vm7, %v4571_v4, %v3916_v49  ;;  %v1615_v61 = vrot.slane %v4008_v18, 2  ;;  %v4573_v49 = vld [vmem:[#allocation23_spill] sm:$0xff] }
 0x117   : > { %v1275_v60 = vsel %vm1241_vm7, %v4573_v49, %v3918_v9  ;;  %v4578_v49 = vld [vmem:[#allocation28_spill] sm:$0xff] }
 0x118   : > { %v3944_v44 = vpop.permute.xlu1 %1163  ;;  %v1022_v22 = vpop.permute.xlu0 %1021 }
 0x119   : > { %v1277_v12 = vsel %vm1241_vm7, %v4572_v21, %v1022_v22  ;;  %v4036_v22 = vsel %vm1290_vm9, %v1275_v60, %v3944_v44 }
 0x11a   : > { %1675 = vrot.lane.b32.xlu1 %v1604_v28, %s2741_s23  ;;  %1673 = vrot.lane.b32.xlu0 %v1602_v39, %s2741_s23  ;;  %v1323_v28 = vsel %vm1290_vm9, %v1274_v62, %v3905_v19  ;;  %v3998_v39 = vsel %vm1290_vm9, %v1273_v47, %v3907_v43  ;;  %v1443_v62 = vrot.slane %v4036_v22, 1 }
 0x11b   : > { %v1441_v16 = vrot.slane %v1323_v28, 1  ;;  %v1439_v43 = vrot.slane %v3998_v39, 1  ;;  %v1618_v58 = vrot.slane %v1323_v28, 2  ;;  %v4574_v28 = vld [vmem:[#allocation8_spill] sm:$0xff] }
 0x11c   : > { %v1168_v8 = vpop.permute.xlu1 %1167  ;;  %v1166_v63 = vpop.permute.xlu0 %1165 }
 0x11d   : > { %v1442_v30 = vsel %vm1387_vm10, %v1439_v43, %v1441_v16  ;;  %v1440_v52 = vsel %vm1387_vm10, %v1438_v26, %v1439_v43  ;;  %v1620_v26 = vrot.slane %v4036_v22, 2 }
 0x11e   : > { %1502 = vrot.lane.b32.xlu1 %v1432_v36, %s2740_s20  ;;  %1500 = vrot.lane.b32.xlu0 %v1430_v50, %s2740_s20  ;;  %v1616_v36 = vrot.slane %v3998_v39, 2 }
 0x120   : > { %v1026_v38 = vpop.permute.xlu1 %1025  ;;  %v3977_v10 = vpop.permute.xlu0 %1023  ;;  %v1619_v47 = vsel %vm1564_vm0, %v1616_v36, %v1618_v58  ;;  %v1617_v32 = vsel %vm1564_vm0, %v1615_v61, %v1616_v36 }
 0x121   : > { %v1279_v59 = vsel %vm1241_vm7, %v4574_v28, %v1026_v38  ;;  %v4576_v38 = vld [vmem:[#allocation25_spill] sm:$0xff] }
 0x122   : > { %1679 = vrot.lane.b32.xlu1 %v1609_v25, %s2741_s23  ;;  %1677 = vrot.lane.b32.xlu0 %v1607_v34, %s2741_s23  ;;  %v1326_v25 = vsel %vm1290_vm9, %v1277_v12, %v1168_v8  ;;  %v4026_v34 = vsel %vm1290_vm9, %v1276_v29, %v1166_v63  ;;  %v1278_v58 = vsel %vm1241_vm7, %v4576_v38, %v3977_v10  ;;  %v4581_v38 = vld [vmem:[#allocation30_spill] sm:$0xff] }
 0x123   : > { %v1446_v8 = vrot.slane %v1326_v25, 1  ;;  %v1444_v63 = vrot.slane %v4026_v34, 1  ;;  %v1623_v9 = vrot.slane %v1326_v25, 2  ;;  %v4577_v25 = vld [vmem:[#allocation10_spill] sm:$0xff] }
 0x124   : > { %v1170_v54 = vpop.permute.xlu1 %1169  ;;  %v1028_v23 = vpop.permute.xlu0 %1027 }
 0x125   : > { %v1280_v7 = vsel %vm1241_vm7, %v4575_v40, %v1028_v23  ;;  %v1447_v16 = vsel %vm1387_vm10, %v1444_v63, %v1446_v8  ;;  %v1445_v43 = vsel %vm1387_vm10, %v1443_v62, %v1444_v63  ;;  %v4062_v23 = vsel %vm1290_vm9, %v1278_v58, %v1170_v54 }
 0x126   : > { %1506 = vrot.lane.b32.xlu1 %v1437_v13, %s2740_s20  ;;  %1504 = vrot.lane.b32.xlu0 %v1435_v33, %s2740_s20  ;;  %v1621_v13 = vrot.slane %v4026_v34, 2  ;;  %v1448_v12 = vrot.slane %v4062_v23, 1  ;;  %v1625_v62 = vrot.slane %v4062_v23, 2 }
 0x128   : > { %v1174_v0 = vpop.permute.xlu1 %1173  ;;  %v1172_v19 = vpop.permute.xlu0 %1171  ;;  %v1622_v21 = vsel %vm1564_vm0, %v1620_v26, %v1621_v13 }
 0x12a   : > { %1683 = vrot.lane.b32.xlu1 %v1614_v17, %s2741_s23  ;;  %1681 = vrot.lane.b32.xlu0 %v1612_v56, %s2741_s23  ;;  %v1329_v17 = vsel %vm1290_vm9, %v1280_v7, %v1174_v0  ;;  %v4053_v56 = vsel %vm1290_vm9, %v1279_v59, %v1172_v19  ;;  %v1624_v19 = vsel %vm1564_vm0, %v1621_v13, %v1623_v9  ;;  %v4579_v9 = vld [vmem:[#allocation27_spill] sm:$0xff] }
 0x12b   : > { %v1451_v29 = vrot.slane %v1329_v17, 1  ;;  %v1449_v0 = vrot.slane %v4053_v56, 1  ;;  %v1626_v10 = vrot.slane %v4053_v56, 2 }
 0x12c   : > { %v1032_v37 = vpop.permute.xlu1 %1031  ;;  %v1030_v50 = vpop.permute.xlu0 %1029 }
 0x12d   : > { %v1282_v61 = vsel %vm1241_vm7, %v4577_v25, %v1032_v37  ;;  %v1452_v8 = vsel %vm1387_vm10, %v1449_v0, %v1451_v29  ;;  %v1450_v63 = vsel %vm1387_vm10, %v1448_v12, %v1449_v0  ;;  %v1281_v37 = vsel %vm1241_vm7, %v4579_v9, %v1030_v50  ;;  %v4583_v9 = vld [vmem:[#allocation14_spill] sm:$0xff] }
 0x12e   : > { %1510 = vrot.lane.b32.xlu1 %v1442_v30, %s2740_s20  ;;  %1508 = vrot.lane.b32.xlu0 %v1440_v52, %s2740_s20  ;;  %v1628_v30 = vrot.slane %v1329_v17, 2  ;;  %v1627_v40 = vsel %vm1564_vm0, %v1625_v62, %v1626_v10  ;;  %v4580_v17 = vld [vmem:[#allocation12_spill] sm:$0xff] }
 0x130   : > { %v1176_v3 = vpop.permute.xlu1 %1175  ;;  %v1034_v20 = vpop.permute.xlu0 %1033 }
 0x131   : > { %v1283_v60 = vsel %vm1241_vm7, %v4578_v49, %v1034_v20  ;;  %v4087_v20 = vsel %vm1290_vm9, %v1281_v37, %v1176_v3 }
 0x132   : > { %1687 = vrot.lane.b32.xlu1 %v1619_v47, %s2741_s23  ;;  %1685 = vrot.lane.b32.xlu0 %v1617_v32, %s2741_s23  ;;  %v1453_v7 = vrot.slane %v4087_v20, 1  ;;  %v1630_v12 = vrot.slane %v4087_v20, 2 }
 0x134   : > { %v1180_v44 = vpop.permute.xlu1 %1179  ;;  %v1178_v33 = vpop.permute.xlu0 %1177 }
 0x135   : > { %v1332_v47 = vsel %vm1290_vm9, %v1283_v60, %v1180_v44  ;;  %v4079_v32 = vsel %vm1290_vm9, %v1282_v61, %v1178_v33  ;;  %v1629_v33 = vsel %vm1564_vm0, %v1626_v10, %v1628_v30  ;;  %v4582_v30 = vld [vmem:[#allocation29_spill] sm:$0xff] }
 0x136   : > { %1514 = vrot.lane.b32.xlu1 %v1447_v16, %s2740_s20  ;;  %1512 = vrot.lane.b32.xlu0 %v1445_v43, %s2740_s20  ;;  %v1456_v59 = vrot.slane %v1332_v47, 1  ;;  %v1454_v44 = vrot.slane %v4079_v32, 1  ;;  %v1633_v16 = vrot.slane %v1332_v47, 2  ;;  %v1631_v50 = vrot.slane %v4079_v32, 2 }
 0x138   : > { %v1038_v36 = vpop.permute.xlu1 %1037  ;;  %v1036_v4 = vpop.permute.xlu0 %1035  ;;  %v1457_v29 = vsel %vm1387_vm10, %v1454_v44, %v1456_v59  ;;  %v1455_v0 = vsel %vm1387_vm10, %v1453_v7, %v1454_v44  ;;  %v1634_v60 = vsel %vm1564_vm0, %v1631_v50, %v1633_v16  ;;  %v4585_v16 = vld [vmem:[#allocation31_spill] sm:$0xff] }
 0x139   : > { %v1285_v26 = vsel %vm1241_vm7, %v4580_v17, %v1038_v36  ;;  %v1284_v36 = vsel %vm1241_vm7, %v4582_v30, %v1036_v4 }
 0x13a   : > { %1691 = vrot.lane.b32.xlu1 %v1624_v19, %s2741_s23  ;;  %1689 = vrot.lane.b32.xlu0 %v1622_v21, %s2741_s23 }
 0x13c   : > { %v1182_v54 = vpop.permute.xlu1 %1181  ;;  %v1040_v52 = vpop.permute.xlu0 %1039 }
 0x13d   : > { %v1286_v58 = vsel %vm1241_vm7, %v4581_v38, %v1040_v52  ;;  %v4112_v10 = vsel %vm1290_vm9, %v1284_v36, %v1182_v54 }
 0x13e   : > { %1518 = vrot.lane.b32.xlu1 %v1452_v8, %s2740_s20  ;;  %1516 = vrot.lane.b32.xlu0 %v1450_v63, %s2740_s20  ;;  %v1632_v8 = vsel %vm1564_vm0, %v1630_v12, %v1631_v50  ;;  %v1458_v63 = vrot.slane %v4112_v10, 1  ;;  %v1635_v7 = vrot.slane %v4112_v10, 2 }
 0x140   : > { %v1186_v13 = vpop.permute.xlu1 %1185  ;;  %v1184_v28 = vpop.permute.xlu0 %1183 }
 0x141   : > { %v1335_v19 = vsel %vm1290_vm9, %v1286_v58, %v1186_v13  ;;  %v4104_v21 = vsel %vm1290_vm9, %v1285_v26, %v1184_v28  ;;  %v4584_v13 = vld [vmem:[#allocation32_spill] sm:$0xff] }
 0x142   : > { %1695 = vrot.lane.b32.xlu1 %v1629_v33, %s2741_s23  ;;  %1693 = vrot.lane.b32.xlu0 %v1627_v40, %s2741_s23  ;;  %v1461_v61 = vrot.slane %v1335_v19, 1  ;;  %v1459_v49 = vrot.slane %v4104_v21, 1  ;;  %v1638_v47 = vrot.slane %v1335_v19, 2  ;;  %v1636_v4 = vrot.slane %v4104_v21, 2 }
 0x144   : > { %v1044_v3 = vpop.permute.xlu1 %1043  ;;  %v1042_v43 = vpop.permute.xlu0 %1041  ;;  %v1462_v59 = vsel %vm1387_vm10, %v1459_v49, %v1461_v61  ;;  %v1460_v44 = vsel %vm1387_vm10, %v1458_v63, %v1459_v49 }
 0x145   : > { %v1288_v37 = vsel %vm1241_vm7, %v4583_v9, %v1044_v3  ;;  %v1287_v50 = vsel %vm1241_vm7, %v4585_v16, %v1042_v43 }
 0x146   : > { %1522 = vrot.lane.b32.xlu1 %v1457_v29, %s2740_s20  ;;  %1520 = vrot.lane.b32.xlu0 %v1455_v0, %s2740_s20  ;;  %v1639_v29 = vsel %vm1564_vm0, %v1636_v4, %v1638_v47  ;;  %v1637_v0 = vsel %vm1564_vm0, %v1635_v7, %v1636_v4 }
 0x148   : > { %v1188_v52 = vpop.permute.xlu1 %1187  ;;  %v1046_v25 = vpop.permute.xlu0 %1045 }
 0x149   : > { %v1289_v28 = vsel %vm1241_vm7, %v4584_v13, %v1046_v25  ;;  %v4137_v3 = vsel %vm1290_vm9, %v1287_v50, %v1188_v52 }
 0x14a   : > { %1699 = vrot.lane.b32.xlu1 %v1634_v60, %s2741_s23  ;;  %1697 = vrot.lane.b32.xlu0 %v1632_v8, %s2741_s23  ;;  %v1463_v43 = vrot.slane %v4137_v3, 1  ;;  %v1640_v63 = vrot.slane %v4137_v3, 2 }
 0x14c   : > { %v1192_v54 = vpop.permute.xlu1 %1191  ;;  %v1190_v62 = vpop.permute.xlu0 %1189 }
 0x14d   : > { %v1338_v33 = vsel %vm1290_vm9, %v1289_v28, %v1192_v54  ;;  %v4129_v40 = vsel %vm1290_vm9, %v1288_v37, %v1190_v62 }
 0x14e   : > { %1526 = vrot.lane.b32.xlu1 %v1462_v59, %s2740_s20  ;;  %1524 = vrot.lane.b32.xlu0 %v1460_v44, %s2740_s20  ;;  %v1466_v38 = vrot.slane %v1338_v33, 1  ;;  %v1464_v58 = vrot.slane %v4129_v40, 1  ;;  %v1643_v19 = vrot.slane %v1338_v33, 2  ;;  %v1641_v12 = vrot.slane %v4129_v40, 2 }
 0x150   : > { %v1471_v17 = vpop.permute.xlu1 %1470  ;;  %v1469_v26 = vpop.permute.xlu0 %1468  ;;  %v1467_v49 = vsel %vm1387_vm10, %v1464_v58, %v1466_v38  ;;  %v1465_v60 = vsel %vm1387_vm10, %v1463_v43, %v1464_v58  ;;  %v1644_v47 = vsel %vm1564_vm0, %v1641_v12, %v1643_v19  ;;  %v1642_v4 = vsel %vm1564_vm0, %v1640_v63, %v1641_v12 }
 0x151   : > { %v1743_v30 = vsel %vm1741_vm11, %v3620_v1, %v1471_v17  ;;  %v1742_v36 = vsel %vm1741_vm11, %v3631_v51, %v1469_v26 }
 0x152   : > { %1703 = vrot.lane.b32.xlu1 %v1639_v29, %s2741_s23  ;;  %1701 = vrot.lane.b32.xlu0 %v1637_v0, %s2741_s23 }
 0x154   : > { %v1648_v52 = vpop.permute.xlu1 %1647  ;;  %v1646_v25 = vpop.permute.xlu0 %1645 }
 0x155   : > { %v1776_v61 = vsel %vm1774_vm12, %v1743_v30, %v1648_v52  ;;  %v1775_v8 = vsel %vm1774_vm12, %v1742_v36, %v1646_v25 }
 0x156   : > { %1530 = vrot.lane.b32.xlu1 %v1467_v49, %s2740_s20  ;;  %1528 = vrot.lane.b32.xlu0 %v1465_v60, %s2740_s20 }
 0x157   : > { %2624 = vmatprep.mubr.msk.f32.mxu0 %vm1812_vm13, %v1775_v8 }
 0x158   : > { %2625 = vmatmul.mubr.msk.f32.vlgmr.msra.gmra.mrb[0].mxu0 %vm1812_vm13, %v1776_v61  ;;  %v1475_v1 = vpop.permute.xlu1 %1474  ;;  %v1473_v51 = vpop.permute.xlu0 %1472 }
 0x159   : > { %v1745_v54 = vsel %vm1741_vm11, %v3659_v48, %v1475_v1  ;;  %v1744_v62 = vsel %vm1741_vm11, %v3669_v45, %v1473_v51 }
 0x15a   : > { %1707 = vrot.lane.b32.xlu1 %v1644_v47, %s2741_s23  ;;  %1705 = vrot.lane.b32.xlu0 %v1642_v4, %s2741_s23 }
 0x15c   : > { %v1652_v9 = vpop.permute.xlu1 %1651  ;;  %v1650_v37 = vpop.permute.xlu0 %1649 }
 0x15d   : > { %v1778_v13 = vsel %vm1774_vm12, %v1745_v54, %v1652_v9  ;;  %v1777_v28 = vsel %vm1774_vm12, %v1744_v62, %v1650_v37 }
 0x15e   : > { %2627 = vmatprep.mubr.msk.f32.mxu0 %vm1812_vm13, %v1777_v28 }
 0x15f   : > { %2628 = vmatmul.mubr.msk.f32.gmra.mrb[2].mxu0 %vm1812_vm13, %v1778_v13 }
 0x160   : > { %v1479_v59 = vpop.permute.xlu1 %1478  ;;  %v1477_v44 = vpop.permute.xlu0 %1476 }
 0x161   : > { %v1747_v33 = vsel %vm1741_vm11, %v3698_v35, %v1479_v59  ;;  %v1746_v48 = vsel %vm1741_vm11, %v3708_v41, %v1477_v44 }
 0x164   : > { %v1656_v7 = vpop.permute.xlu1 %1655  ;;  %v1654_v45 = vpop.permute.xlu0 %1653 }
 0x165   : > { %v1780_v16 = vsel %vm1774_vm12, %v1747_v33, %v1656_v7  ;;  %v1779_v50 = vsel %vm1774_vm12, %v1746_v48, %v1654_v45 }
 0x166   : > { %2630 = vmatprep.mubr.msk.f32.mxu0 %vm1812_vm13, %v1779_v50 }
 0x167   : > { %2631 = vmatmul.mubr.msk.f32.gmra.mrb[4].mxu0 %vm1812_vm13, %v1780_v16 }
 0x168   : > { %v1483_v17 = vpop.permute.xlu1 %1482  ;;  %v1481_v26 = vpop.permute.xlu0 %1480 }
 0x169   : > { %v1749_v38 = vsel %vm1741_vm11, %v3737_v55, %v1483_v17  ;;  %v1748_v35 = vsel %vm1741_vm11, %v3747_v57, %v1481_v26 }
 0x16c   : > { %v1660_v58 = vpop.permute.xlu1 %1659  ;;  %v1658_v41 = vpop.permute.xlu0 %1657 }
 0x16d   : > { %v1782_v29 = vsel %vm1774_vm12, %v1749_v38, %v1660_v58  ;;  %v1781_v0 = vsel %vm1774_vm12, %v1748_v35, %v1658_v41 }
 0x16e   : > { %2633 = vmatprep.mubr.msk.f32.mxu0 %vm1812_vm13, %v1781_v0 }
 0x16f   : > { %2634 = vmatmul.mubr.msk.f32.gmra.mrb[6].mxu0 %vm1812_vm13, %v1782_v29 }
 0x170   : > { %v1487_v43 = vpop.permute.xlu1 %1486  ;;  %v1485_v19 = vpop.permute.xlu0 %1484 }
 0x171   : > { %v1751_v12 = vsel %vm1741_vm11, %v3776_v31, %v1487_v43  ;;  %v1750_v55 = vsel %vm1741_vm11, %v3786_v11, %v1485_v19 }
 0x174   : > { %v1664_v30 = vpop.permute.xlu1 %1663  ;;  %v1662_v57 = vpop.permute.xlu0 %1661 }
 0x175   : > { %v1784_v36 = vsel %vm1774_vm12, %v1751_v12, %v1664_v30  ;;  %v1783_v52 = vsel %vm1774_vm12, %v1750_v55, %v1662_v57 }
 0x176   : > { %2636 = vmatprep.mubr.msk.f32.mxu0 %vm1812_vm13, %v1783_v52 }
 0x177   : > { %2637 = vmatmul.mubr.msk.f32.gmra.mrb[8].mxu0 %vm1812_vm13, %v1784_v36 }
 0x178   : > { %v1491_v25 = vpop.permute.xlu1 %1490  ;;  %v1489_v61 = vpop.permute.xlu0 %1488 }
 0x179   : > { %v1753_v49 = vsel %vm1741_vm11, %v3815_v6, %v1491_v25  ;;  %v1752_v31 = vsel %vm1741_vm11, %v3825_v24, %v1489_v61 }
 0x17c   : > { %v1668_v60 = vpop.permute.xlu1 %1667  ;;  %v1666_v11 = vpop.permute.xlu0 %1665 }
 0x17d   : > { %v1786_v8 = vsel %vm1774_vm12, %v1753_v49, %v1668_v60  ;;  %v1785_v63 = vsel %vm1774_vm12, %v1752_v31, %v1666_v11 }
 0x17e   : > { %2639 = vmatprep.mubr.msk.f32.mxu0 %vm1812_vm13, %v1785_v63 }
 0x17f   : > { %2640 = vmatmul.mubr.msk.f32.gmra.mrb[10].mxu0 %vm1812_vm13, %v1786_v8 }
 0x180   : > { %v1495_v1 = vpop.permute.xlu1 %1494  ;;  %v1493_v51 = vpop.permute.xlu0 %1492 }
 0x181   : > { %v1755_v47 = vsel %vm1741_vm11, %v3854_v42, %v1495_v1  ;;  %v1754_v6 = vsel %vm1741_vm11, %v3864_v27, %v1493_v51 }
 0x184   : > { %v1672_v4 = vpop.permute.xlu1 %1671  ;;  %v1670_v24 = vpop.permute.xlu0 %1669 }
 0x185   : > { %v1788_v54 = vsel %vm1774_vm12, %v1755_v47, %v1672_v4  ;;  %v1787_v62 = vsel %vm1774_vm12, %v1754_v6, %v1670_v24 }
 0x186   : > { %2642 = vmatprep.mubr.msk.f32.mxu0 %vm1812_vm13, %v1787_v62 }
 0x187   : > { %2643 = vmatmul.mubr.msk.f32.gmra.mrb[12].mxu0 %vm1812_vm13, %v1788_v54 }
 0x188   : > { %v1499_v9 = vpop.permute.xlu1 %1498  ;;  %v1497_v37 = vpop.permute.xlu0 %1496 }
 0x189   : > { %v1757_v13 = vsel %vm1741_vm11, %v3893_v5, %v1499_v9  ;;  %v1756_v42 = vsel %vm1741_vm11, %v3903_v53, %v1497_v37 }
 0x18c   : > { %v1676_v28 = vpop.permute.xlu1 %1675  ;;  %v1674_v27 = vpop.permute.xlu0 %1673 }
 0x18d   : > { %v1790_v59 = vsel %vm1774_vm12, %v1757_v13, %v1676_v28  ;;  %v1789_v44 = vsel %vm1774_vm12, %v1756_v42, %v1674_v27 }
 0x18e   : > { %2645 = vmatprep.mubr.msk.f32.mxu0 %vm1812_vm13, %v1789_v44 }
 0x18f   : > { %2646 = vmatmul.mubr.msk.f32.gmra.mrb[14].mxu0 %vm1812_vm13, %v1790_v59 }
 0x190   : > { %v1503_v33 = vpop.permute.xlu1 %1502  ;;  %v1501_v48 = vpop.permute.xlu0 %1500 }
 0x191   : > { %v1759_v7 = vsel %vm1741_vm11, %v3932_v15, %v1503_v33  ;;  %v1758_v5 = vsel %vm1741_vm11, %v3942_v14, %v1501_v48 }
 0x194   : > { %v1680_v45 = vpop.permute.xlu1 %1679  ;;  %v1678_v53 = vpop.permute.xlu0 %1677 }
 0x195   : > { %v1792_v16 = vsel %vm1774_vm12, %v1759_v7, %v1680_v45  ;;  %v1791_v50 = vsel %vm1774_vm12, %v1758_v5, %v1678_v53 }
 0x196   : > { %2648 = vmatprep.mubr.msk.f32.mxu1 %vm1812_vm13, %v1791_v50 }
 0x197   : > { %2649 = vmatmul.mubr.msk.f32.vlgmr.msra.gmra.mrb[0].mxu1 %vm1812_vm13, %v1792_v16 }
 0x198   : > { %v1507_v17 = vpop.permute.xlu1 %1506  ;;  %v1505_v26 = vpop.permute.xlu0 %1504 }
 0x199   : > { %v1761_v38 = vsel %vm1741_vm11, %v3965_v46, %v1507_v17  ;;  %v1760_v15 = vsel %vm1741_vm11, %v3975_v2, %v1505_v26 }
 0x19c   : > { %v1684_v35 = vpop.permute.xlu1 %1683  ;;  %v1682_v14 = vpop.permute.xlu0 %1681 }
 0x19d   : > { %v1794_v58 = vsel %vm1774_vm12, %v1761_v38, %v1684_v35  ;;  %v1793_v41 = vsel %vm1774_vm12, %v1760_v15, %v1682_v14 }
 0x19e   : > { %2651 = vmatprep.mubr.msk.f32.mxu1 %vm1812_vm13, %v1793_v41 }
 0x19f   : > { %2652 = vmatmul.mubr.msk.f32.gmra.mrb[2].mxu1 %vm1812_vm13, %v1794_v58 }
 0x1a0   : > { %v1511_v29 = vpop.permute.xlu1 %1510  ;;  %v1509_v0 = vpop.permute.xlu0 %1508 }
 0x1a1   : > { %v1763_v43 = vsel %vm1741_vm11, %v3998_v39, %v1511_v29  ;;  %v1762_v46 = vsel %vm1741_vm11, %v4008_v18, %v1509_v0 }
 0x1a4   : > { %v1688_v19 = vpop.permute.xlu1 %1687  ;;  %v1686_v2 = vpop.permute.xlu0 %1685 }
 0x1a5   : > { %v1796_v12 = vsel %vm1774_vm12, %v1763_v43, %v1688_v19  ;;  %v1795_v55 = vsel %vm1774_vm12, %v1762_v46, %v1686_v2 }
 0x1a6   : > { %2654 = vmatprep.mubr.msk.f32.mxu1 %vm1812_vm13, %v1795_v55 }
 0x1a7   : > { %2655 = vmatmul.mubr.msk.f32.gmra.mrb[4].mxu1 %vm1812_vm13, %v1796_v12 }
 0x1a8   : > { %v1515_v30 = vpop.permute.xlu1 %1514  ;;  %v1513_v57 = vpop.permute.xlu0 %1512 }
 0x1a9   : > { %v1765_v36 = vsel %vm1741_vm11, %v4026_v34, %v1515_v30  ;;  %v1764_v39 = vsel %vm1741_vm11, %v4036_v22, %v1513_v57 }
 0x1ac   : > { %v1692_v52 = vpop.permute.xlu1 %1691  ;;  %v1690_v18 = vpop.permute.xlu0 %1689 }
 0x1ad   : > { %v1798_v25 = vsel %vm1774_vm12, %v1765_v36, %v1692_v52  ;;  %v1797_v61 = vsel %vm1774_vm12, %v1764_v39, %v1690_v18 }
 0x1ae   : > { %2657 = vmatprep.mubr.msk.f32.mxu1 %vm1812_vm13, %v1797_v61 }
 0x1af   : > { %2658 = vmatmul.mubr.msk.f32.gmra.mrb[6].mxu1 %vm1812_vm13, %v1798_v25 }
 0x1b0   : > { %v1519_v49 = vpop.permute.xlu1 %1518  ;;  %v1517_v31 = vpop.permute.xlu0 %1516 }
 0x1b1   : > { %v1767_v60 = vsel %vm1741_vm11, %v4053_v56, %v1519_v49  ;;  %v1766_v34 = vsel %vm1741_vm11, %v4062_v23, %v1517_v31 }
 0x1b4   : > { %v1696_v11 = vpop.permute.xlu1 %1695  ;;  %v1694_v22 = vpop.permute.xlu0 %1693 }
 0x1b5   : > { %v1800_v8 = vsel %vm1774_vm12, %v1767_v60, %v1696_v11  ;;  %v1799_v63 = vsel %vm1774_vm12, %v1766_v34, %v1694_v22 }
 0x1b6   : > { %2660 = vmatprep.mubr.msk.f32.mxu1 %vm1812_vm13, %v1799_v63 }
 0x1b7   : > { %2661 = vmatmul.mubr.msk.f32.gmra.mrb[8].mxu1 %vm1812_vm13, %v1800_v8 }
 0x1b8   : > { %v1523_v1 = vpop.permute.xlu1 %1522  ;;  %v1521_v51 = vpop.permute.xlu0 %1520 }
 0x1b9   : > { %v1769_v47 = vsel %vm1741_vm11, %v4079_v32, %v1523_v1  ;;  %v1768_v56 = vsel %vm1741_vm11, %v4087_v20, %v1521_v51 }
 0x1bc   : > { %v1700_v6 = vpop.permute.xlu1 %1699  ;;  %v1698_v23 = vpop.permute.xlu0 %1697 }
 0x1bd   : > { %v1802_v4 = vsel %vm1774_vm12, %v1769_v47, %v1700_v6  ;;  %v1801_v24 = vsel %vm1774_vm12, %v1768_v56, %v1698_v23 }
 0x1be   : > { %2663 = vmatprep.mubr.msk.f32.mxu1 %vm1812_vm13, %v1801_v24 }
 0x1bf   : > { %2664 = vmatmul.mubr.msk.f32.gmra.mrb[10].mxu1 %vm1812_vm13, %v1802_v4 }
 0x1c0   : > { %v1527_v54 = vpop.permute.xlu1 %1526  ;;  %v1525_v62 = vpop.permute.xlu0 %1524 }
 0x1c1   : > { %v1771_v9 = vsel %vm1741_vm11, %v4104_v21, %v1527_v54  ;;  %v1770_v32 = vsel %vm1741_vm11, %v4112_v10, %v1525_v62 }
 0x1c4   : > { %v1704_v37 = vpop.permute.xlu1 %1703  ;;  %v1702_v20 = vpop.permute.xlu0 %1701 }
 0x1c5   : > { %v1804_v13 = vsel %vm1774_vm12, %v1771_v9, %v1704_v37  ;;  %v1803_v42 = vsel %vm1774_vm12, %v1770_v32, %v1702_v20 }
 0x1c6   : > { %2666 = vmatprep.mubr.msk.f32.mxu1 %vm1812_vm13, %v1803_v42 }
 0x1c7   : > { %2667 = vmatmul.mubr.msk.f32.gmra.mrb[12].mxu1 %vm1812_vm13, %v1804_v13 }
 0x1c8   : > { %v1531_v28 = vpop.permute.xlu1 %1530  ;;  %v1529_v27 = vpop.permute.xlu0 %1528 }
 0x1c9   : > { %v1773_v59 = vsel %vm1741_vm11, %v4129_v40, %v1531_v28  ;;  %v1772_v21 = vsel %vm1741_vm11, %v4137_v3, %v1529_v27 }
 0x1cc   : > { %v1708_v10 = vpop.permute.xlu1 %1707  ;;  %v1706_v44 = vpop.permute.xlu0 %1705 }
 0x1cd   : > { %v1806_v33 = vsel %vm1774_vm12, %v1773_v59, %v1708_v10  ;;  %v1805_v48 = vsel %vm1774_vm12, %v1772_v21, %v1706_v44 }
 0x1ce   : > { %2669 = vmatprep.mubr.msk.f32.mxu1 %vm1812_vm13, %v1805_v48 }
 0x1cf   : > { %2670 = vmatmul.mubr.msk.f32.gmra.mrb[14].mxu1 %vm1812_vm13, %v1806_v33 }
 0x22b   : > { %v2626_v40 = vpop.f32.mrb[0].mxu0 }
 0x22c   : > { %2139 = vst.msk [vmem:[%s4287_s26 + $0x8] sm:$0xff] %vm1241_vm7, %v2626_v40  ;;  %v2171_v3 = vsel %vm1241_vm7, %v2626_v40, 0.0  ;;  %v2240_v7 = vmul.f32 %v2626_v40, %v2626_v40  ;;  %v1979_v5 = vpop.f32.mrb[1].mxu0 }
 0x22d   : > { %2138 = vst.msk [vmem:[%s4287_s26] sm:$0xff] %vm1241_vm7, %v1979_v5  ;;  %v2170_v45 = vsel %vm1241_vm7, %v1979_v5, 0.0  ;;  %v2239_v53 = vmul.f32 %v1979_v5, %v1979_v5 }
 0x22e   : > { %v2272_v16 = vsel %vm1241_vm7, %v2240_v7, 0.0  ;;  %v2172_v50 = vadd.f32 %v2171_v3, %v2170_v45 }
 0x22f   : > { %v2271_v17 = vsel %vm1241_vm7, %v2239_v53, 0.0 }
 0x230   : > { %v2273_v26 = vadd.f32 %v2272_v16, %v2271_v17 }
 0x232   : > { %v2629_v38 = vpop.f32.mrb[2].mxu0 }
 0x233   : > { %2141 = vst.msk [vmem:[%s4287_s26 + $0x18] sm:$0xff] %vm1241_vm7, %v2629_v38  ;;  %v1989_v15 = vpop.f32.mrb[3].mxu0  ;;  %v2242_v35 = vmul.f32 %v2629_v38, %v2629_v38  ;;  %v2175_v29 = vsel %vm1241_vm7, %v2629_v38, 0.0 }
 0x234   : > { %2140 = vst.msk [vmem:[%s4287_s26 + $0x10] sm:$0xff] %vm1241_vm7, %v1989_v15  ;;  %v2173_v14 = vsel %vm1241_vm7, %v1989_v15, 0.0  ;;  %v2241_v58 = vmul.f32 %v1989_v15, %v1989_v15 }
 0x235   : > { %v2174_v41 = vadd.f32 %v2173_v14, %v2172_v50  ;;  %v2276_v19 = vsel %vm1241_vm7, %v2242_v35, 0.0 }
 0x236   : > { %v2274_v0 = vsel %vm1241_vm7, %v2241_v58, 0.0 }
 0x237   : > { %v2275_v43 = vadd.f32 %v2274_v0, %v2273_v26  ;;  %v2176_v46 = vadd.f32 %v2175_v29, %v2174_v41 }
 0x239   : > { %v2277_v2 = vadd.f32 %v2276_v19, %v2275_v43 }
 0x23a   : > { %v2632_v12 = vpop.f32.mrb[4].mxu0 }
 0x23b   : > { %2143 = vst.msk [vmem:[%s4287_s26 + $0x28] sm:$0xff] %vm1241_vm7, %v2632_v12  ;;  %v1999_v55 = vpop.f32.mrb[5].mxu0  ;;  %v2244_v30 = vmul.f32 %v2632_v12, %v2632_v12  ;;  %v2179_v52 = vsel %vm1241_vm7, %v2632_v12, 0.0 }
 0x23c   : > { %2142 = vst.msk [vmem:[%s4287_s26 + $0x20] sm:$0xff] %vm1241_vm7, %v1999_v55  ;;  %v2177_v57 = vsel %vm1241_vm7, %v1999_v55, 0.0  ;;  %v2243_v36 = vmul.f32 %v1999_v55, %v1999_v55 }
 0x23d   : > { %v2178_v39 = vadd.f32 %v2177_v57, %v2176_v46  ;;  %v2280_v49 = vsel %vm1241_vm7, %v2244_v30, 0.0 }
 0x23e   : > { %v2278_v18 = vsel %vm1241_vm7, %v2243_v36, 0.0 }
 0x23f   : > { %v2279_v25 = vadd.f32 %v2278_v18, %v2277_v2  ;;  %v2180_v61 = vadd.f32 %v2179_v52, %v2178_v39 }
 0x241   : > { %v2281_v31 = vadd.f32 %v2280_v49, %v2279_v25 }
 0x242   : > { %v2635_v60 = vpop.f32.mrb[6].mxu0 }
 0x243   : > { %2145 = vst.msk [vmem:[%s4287_s26 + $0x38] sm:$0xff] %vm1241_vm7, %v2635_v60  ;;  %v2009_v34 = vpop.f32.mrb[7].mxu0  ;;  %v2246_v11 = vmul.f32 %v2635_v60, %v2635_v60  ;;  %v2183_v1 = vsel %vm1241_vm7, %v2635_v60, 0.0 }
 0x244   : > { %2144 = vst.msk [vmem:[%s4287_s26 + $0x30] sm:$0xff] %vm1241_vm7, %v2009_v34  ;;  %v2181_v22 = vsel %vm1241_vm7, %v2009_v34, 0.0  ;;  %v2245_v8 = vmul.f32 %v2009_v34, %v2009_v34 }
 0x245   : > { %v2182_v63 = vadd.f32 %v2181_v22, %v2180_v61  ;;  %v2284_v6 = vsel %vm1241_vm7, %v2246_v11, 0.0 }
 0x246   : > { %v2282_v51 = vsel %vm1241_vm7, %v2245_v8, 0.0 }
 0x247   : > { %v2283_v47 = vadd.f32 %v2282_v51, %v2281_v31  ;;  %v2184_v56 = vadd.f32 %v2183_v1, %v2182_v63 }
 0x249   : > { %v2285_v23 = vadd.f32 %v2284_v6, %v2283_v47 }
 0x24a   : > { %v2638_v4 = vpop.f32.mrb[8].mxu0 }
 0x24b   : > { %2147 = vst.msk [vmem:[%s4287_s26 + $0x48] sm:$0xff] %vm1241_vm7, %v2638_v4  ;;  %v2019_v24 = vpop.f32.mrb[9].mxu0  ;;  %v2248_v54 = vmul.f32 %v2638_v4, %v2638_v4  ;;  %v2187_v37 = vsel %vm1241_vm7, %v2638_v4, 0.0 }
 0x24c   : > { %2146 = vst.msk [vmem:[%s4287_s26 + $0x40] sm:$0xff] %vm1241_vm7, %v2019_v24  ;;  %v2185_v62 = vsel %vm1241_vm7, %v2019_v24, 0.0  ;;  %v2247_v9 = vmul.f32 %v2019_v24, %v2019_v24 }
 0x24d   : > { %v2186_v32 = vadd.f32 %v2185_v62, %v2184_v56  ;;  %v2288_v28 = vsel %vm1241_vm7, %v2248_v54, 0.0 }
 0x24e   : > { %v2286_v20 = vsel %vm1241_vm7, %v2247_v9, 0.0 }
 0x24f   : > { %v2287_v13 = vadd.f32 %v2286_v20, %v2285_v23  ;;  %v2188_v42 = vadd.f32 %v2187_v37, %v2186_v32 }
 0x251   : > { %v2289_v27 = vadd.f32 %v2288_v28, %v2287_v13 }
 0x252   : > { %v2641_v59 = vpop.f32.mrb[10].mxu0 }
 0x253   : > { %2149 = vst.msk [vmem:[%s4287_s26 + $0x58] sm:$0xff] %vm1241_vm7, %v2641_v59  ;;  %v2029_v21 = vpop.f32.mrb[11].mxu0  ;;  %v2250_v10 = vmul.f32 %v2641_v59, %v2641_v59  ;;  %v2191_v40 = vsel %vm1241_vm7, %v2641_v59, 0.0 }
 0x254   : > { %2148 = vst.msk [vmem:[%s4287_s26 + $0x50] sm:$0xff] %vm1241_vm7, %v2029_v21  ;;  %v2189_v44 = vsel %vm1241_vm7, %v2029_v21, 0.0  ;;  %v2249_v33 = vmul.f32 %v2029_v21, %v2029_v21 }
 0x255   : > { %v2190_v48 = vadd.f32 %v2189_v44, %v2188_v42  ;;  %v2292_v45 = vsel %vm1241_vm7, %v2250_v10, 0.0 }
 0x256   : > { %v2290_v3 = vsel %vm1241_vm7, %v2249_v33, 0.0 }
 0x257   : > { %v2291_v7 = vadd.f32 %v2290_v3, %v2289_v27  ;;  %v2192_v5 = vadd.f32 %v2191_v40, %v2190_v48 }
 0x259   : > { %v2293_v53 = vadd.f32 %v2292_v45, %v2291_v7 }
 0x25a   : > { %v2644_v16 = vpop.f32.mrb[12].mxu0 }
 0x25b   : > { %2151 = vst.msk [vmem:[%s4287_s26 + $0x68] sm:$0xff] %vm1241_vm7, %v2644_v16  ;;  %v2039_v50 = vpop.f32.mrb[13].mxu0  ;;  %v2252_v17 = vmul.f32 %v2644_v16, %v2644_v16  ;;  %v2195_v35 = vsel %vm1241_vm7, %v2644_v16, 0.0 }
 0x25c   : > { %2150 = vst.msk [vmem:[%s4287_s26 + $0x60] sm:$0xff] %vm1241_vm7, %v2039_v50  ;;  %v2193_v26 = vsel %vm1241_vm7, %v2039_v50, 0.0  ;;  %v2251_v38 = vmul.f32 %v2039_v50, %v2039_v50 }
 0x25d   : > { %v2194_v15 = vadd.f32 %v2193_v26, %v2192_v5  ;;  %v2296_v29 = vsel %vm1241_vm7, %v2252_v17, 0.0 }
 0x25e   : > { %v2294_v14 = vsel %vm1241_vm7, %v2251_v38, 0.0 }
 0x25f   : > { %v2295_v58 = vadd.f32 %v2294_v14, %v2293_v53  ;;  %v2196_v41 = vadd.f32 %v2195_v35, %v2194_v15 }
 0x261   : > { %v2297_v0 = vadd.f32 %v2296_v29, %v2295_v58 }
 0x262   : > { %v2647_v43 = vpop.f32.mrb[14].mxu0 }
 0x263   : > { %2153 = vst.msk [vmem:[%s4287_s26 + $0x78] sm:$0xff] %vm1241_vm7, %v2647_v43  ;;  %v2049_v46 = vpop.f32.mrb[15].mxu0  ;;  %v2254_v19 = vmul.f32 %v2647_v43, %v2647_v43  ;;  %v2199_v30 = vsel %vm1241_vm7, %v2647_v43, 0.0 }
 0x264   : > { %2152 = vst.msk [vmem:[%s4287_s26 + $0x70] sm:$0xff] %vm1241_vm7, %v2049_v46  ;;  %v2197_v2 = vsel %vm1241_vm7, %v2049_v46, 0.0  ;;  %v2253_v12 = vmul.f32 %v2049_v46, %v2049_v46 }
 0x265   : > { %v2198_v55 = vadd.f32 %v2197_v2, %v2196_v41  ;;  %v2300_v52 = vsel %vm1241_vm7, %v2254_v19, 0.0 }
 0x266   : > { %v2298_v57 = vsel %vm1241_vm7, %v2253_v12, 0.0 }
 0x267   : > { %v2200_v36 = vadd.f32 %v2199_v30, %v2198_v55  ;;  %v2299_v39 = vadd.f32 %v2298_v57, %v2297_v0 }
 0x269   : > { %v2301_v18 = vadd.f32 %v2300_v52, %v2299_v39 }
 0x26a   : > { %v2650_v25 = vpop.f32.mrb[0].mxu1 }
 0x26b   : > { %2155 = vst.msk [vmem:[%s4287_s26 + $0x88] sm:$0xff] %vm1241_vm7, %v2650_v25  ;;  %v2059_v61 = vpop.f32.mrb[1].mxu1  ;;  %v2256_v49 = vmul.f32 %v2650_v25, %v2650_v25  ;;  %v2203_v11 = vsel %vm1241_vm7, %v2650_v25, 0.0 }
 0x26c   : > { %2154 = vst.msk [vmem:[%s4287_s26 + $0x80] sm:$0xff] %vm1241_vm7, %v2059_v61  ;;  %v2201_v31 = vsel %vm1241_vm7, %v2059_v61, 0.0  ;;  %v2255_v60 = vmul.f32 %v2059_v61, %v2059_v61 }
 0x26d   : > { %v2202_v34 = vadd.f32 %v2201_v31, %v2200_v36  ;;  %v2304_v1 = vsel %vm1241_vm7, %v2256_v49, 0.0 }
 0x26e   : > { %v2302_v22 = vsel %vm1241_vm7, %v2255_v60, 0.0 }
 0x26f   : > { %v2303_v8 = vadd.f32 %v2302_v22, %v2301_v18  ;;  %v2204_v63 = vadd.f32 %v2203_v11, %v2202_v34 }
 0x271   : > { %v2305_v51 = vadd.f32 %v2304_v1, %v2303_v8 }
 0x272   : > { %v2653_v47 = vpop.f32.mrb[2].mxu1 }
 0x273   : > { %2157 = vst.msk [vmem:[%s4287_s26 + $0x98] sm:$0xff] %vm1241_vm7, %v2653_v47  ;;  %v2069_v56 = vpop.f32.mrb[3].mxu1  ;;  %v2258_v6 = vmul.f32 %v2653_v47, %v2653_v47  ;;  %v2207_v54 = vsel %vm1241_vm7, %v2653_v47, 0.0 }
 0x274   : > { %2156 = vst.msk [vmem:[%s4287_s26 + $0x90] sm:$0xff] %vm1241_vm7, %v2069_v56  ;;  %v2205_v23 = vsel %vm1241_vm7, %v2069_v56, 0.0  ;;  %v2257_v4 = vmul.f32 %v2069_v56, %v2069_v56 }
 0x275   : > { %v2206_v24 = vadd.f32 %v2205_v23, %v2204_v63  ;;  %v2308_v37 = vsel %vm1241_vm7, %v2258_v6, 0.0 }
 0x276   : > { %v2306_v62 = vsel %vm1241_vm7, %v2257_v4, 0.0 }
 0x277   : > { %v2307_v9 = vadd.f32 %v2306_v62, %v2305_v51  ;;  %v2208_v32 = vadd.f32 %v2207_v54, %v2206_v24 }
 0x279   : > { %v2309_v20 = vadd.f32 %v2308_v37, %v2307_v9 }
 0x27a   : > { %v2656_v13 = vpop.f32.mrb[4].mxu1 }
 0x27b   : > { %2159 = vst.msk [vmem:[%s4287_s26 + $0xa8] sm:$0xff] %vm1241_vm7, %v2656_v13  ;;  %v2079_v42 = vpop.f32.mrb[5].mxu1  ;;  %v2260_v28 = vmul.f32 %v2656_v13, %v2656_v13  ;;  %v2211_v10 = vsel %vm1241_vm7, %v2656_v13, 0.0 }
 0x27c   : > { %2158 = vst.msk [vmem:[%s4287_s26 + $0xa0] sm:$0xff] %vm1241_vm7, %v2079_v42  ;;  %v2209_v27 = vsel %vm1241_vm7, %v2079_v42, 0.0  ;;  %v2259_v59 = vmul.f32 %v2079_v42, %v2079_v42 }
 0x27d   : > { %v2210_v21 = vadd.f32 %v2209_v27, %v2208_v32  ;;  %v2312_v40 = vsel %vm1241_vm7, %v2260_v28, 0.0 }
 0x27e   : > { %v2310_v44 = vsel %vm1241_vm7, %v2259_v59, 0.0 }
 0x27f   : > { %v2311_v33 = vadd.f32 %v2310_v44, %v2309_v20  ;;  %v2212_v48 = vadd.f32 %v2211_v10, %v2210_v21 }
 0x281   : > { %v2313_v3 = vadd.f32 %v2312_v40, %v2311_v33 }
 0x282   : > { %v2659_v7 = vpop.f32.mrb[6].mxu1 }
 0x283   : > { %2161 = vst.msk [vmem:[%s4287_s26 + $0xb8] sm:$0xff] %vm1241_vm7, %v2659_v7  ;;  %v2089_v5 = vpop.f32.mrb[7].mxu1  ;;  %v2262_v45 = vmul.f32 %v2659_v7, %v2659_v7  ;;  %v2215_v17 = vsel %vm1241_vm7, %v2659_v7, 0.0 }
 0x284   : > { %2160 = vst.msk [vmem:[%s4287_s26 + $0xb0] sm:$0xff] %vm1241_vm7, %v2089_v5  ;;  %v2213_v53 = vsel %vm1241_vm7, %v2089_v5, 0.0  ;;  %v2261_v16 = vmul.f32 %v2089_v5, %v2089_v5 }
 0x285   : > { %v2214_v50 = vadd.f32 %v2213_v53, %v2212_v48  ;;  %v2316_v35 = vsel %vm1241_vm7, %v2262_v45, 0.0 }
 0x286   : > { %v2314_v26 = vsel %vm1241_vm7, %v2261_v16, 0.0 }
 0x287   : > { %v2315_v38 = vadd.f32 %v2314_v26, %v2313_v3  ;;  %v2216_v15 = vadd.f32 %v2215_v17, %v2214_v50 }
 0x289   : > { %v2317_v14 = vadd.f32 %v2316_v35, %v2315_v38 }
 0x28a   : > { %v2662_v58 = vpop.f32.mrb[8].mxu1 }
 0x28b   : > { %2163 = vst.msk [vmem:[%s4287_s26 + $0xc8] sm:$0xff] %vm1241_vm7, %v2662_v58  ;;  %v2099_v41 = vpop.f32.mrb[9].mxu1  ;;  %v2264_v29 = vmul.f32 %v2662_v58, %v2662_v58  ;;  %v2219_v19 = vsel %vm1241_vm7, %v2662_v58, 0.0 }
 0x28c   : > { %2162 = vst.msk [vmem:[%s4287_s26 + $0xc0] sm:$0xff] %vm1241_vm7, %v2099_v41  ;;  %v2217_v0 = vsel %vm1241_vm7, %v2099_v41, 0.0  ;;  %v2263_v43 = vmul.f32 %v2099_v41, %v2099_v41 }
 0x28d   : > { %v2218_v46 = vadd.f32 %v2217_v0, %v2216_v15  ;;  %v2320_v30 = vsel %vm1241_vm7, %v2264_v29, 0.0 }
 0x28e   : > { %v2318_v2 = vsel %vm1241_vm7, %v2263_v43, 0.0 }
 0x28f   : > { %v2319_v12 = vadd.f32 %v2318_v2, %v2317_v14  ;;  %v2220_v55 = vadd.f32 %v2219_v19, %v2218_v46 }
 0x291   : > { %v2321_v57 = vadd.f32 %v2320_v30, %v2319_v12 }
 0x292   : > { %v2665_v36 = vpop.f32.mrb[10].mxu1 }
 0x293   : > { %2165 = vst.msk [vmem:[%s4287_s26 + $0xd8] sm:$0xff] %vm1241_vm7, %v2665_v36  ;;  %v2109_v39 = vpop.f32.mrb[11].mxu1  ;;  %v2266_v52 = vmul.f32 %v2665_v36, %v2665_v36  ;;  %v2223_v49 = vsel %vm1241_vm7, %v2665_v36, 0.0 }
 0x294   : > { %2164 = vst.msk [vmem:[%s4287_s26 + $0xd0] sm:$0xff] %vm1241_vm7, %v2109_v39  ;;  %v2221_v18 = vsel %vm1241_vm7, %v2109_v39, 0.0  ;;  %v2265_v25 = vmul.f32 %v2109_v39, %v2109_v39 }
 0x295   : > { %v2222_v61 = vadd.f32 %v2221_v18, %v2220_v55  ;;  %v2324_v11 = vsel %vm1241_vm7, %v2266_v52, 0.0 }
 0x296   : > { %v2322_v31 = vsel %vm1241_vm7, %v2265_v25, 0.0 }
 0x297   : > { %v2323_v60 = vadd.f32 %v2322_v31, %v2321_v57  ;;  %v2224_v34 = vadd.f32 %v2223_v49, %v2222_v61 }
 0x299   : > { %v2325_v22 = vadd.f32 %v2324_v11, %v2323_v60 }
 0x29a   : > { %v2668_v8 = vpop.f32.mrb[12].mxu1 }
 0x29b   : > { %2167 = vst.msk [vmem:[%s4287_s26 + $0xe8] sm:$0xff] %vm1241_vm7, %v2668_v8  ;;  %v2119_v63 = vpop.f32.mrb[13].mxu1  ;;  %v2268_v1 = vmul.f32 %v2668_v8, %v2668_v8  ;;  %v2227_v6 = vsel %vm1241_vm7, %v2668_v8, 0.0 }
 0x29c   : > { %2166 = vst.msk [vmem:[%s4287_s26 + $0xe0] sm:$0xff] %vm1241_vm7, %v2119_v63  ;;  %v2225_v51 = vsel %vm1241_vm7, %v2119_v63, 0.0  ;;  %v2267_v47 = vmul.f32 %v2119_v63, %v2119_v63 }
 0x29d   : > { %v2226_v56 = vadd.f32 %v2225_v51, %v2224_v34  ;;  %v2328_v54 = vsel %vm1241_vm7, %v2268_v1, 0.0 }
 0x29e   : > { %v2326_v23 = vsel %vm1241_vm7, %v2267_v47, 0.0 }
 0x29f   : > { %v2327_v4 = vadd.f32 %v2326_v23, %v2325_v22  ;;  %v2228_v24 = vadd.f32 %v2227_v6, %v2226_v56 }
 0x2a1   : > { %v2329_v62 = vadd.f32 %v2328_v54, %v2327_v4 }
 0x2a2   : > { %v2671_v9 = vpop.f32.mrb[14].mxu1 }
 0x2a3   : > { %2169 = vst.msk [vmem:[%s4287_s26 + $0xf8] sm:$0xff] %vm1241_vm7, %v2671_v9  ;;  %v2129_v32 = vpop.f32.mrb[15].mxu1  ;;  %v2270_v37 = vmul.f32 %v2671_v9, %v2671_v9  ;;  %v2231_v28 = vsel %vm1241_vm7, %v2671_v9, 0.0 }
 0x2a4   : > { %2168 = vst.msk [vmem:[%s4287_s26 + $0xf0] sm:$0xff] %vm1241_vm7, %v2129_v32  ;;  %v2229_v20 = vsel %vm1241_vm7, %v2129_v32, 0.0  ;;  %v2269_v13 = vmul.f32 %v2129_v32, %v2129_v32 }
 0x2a5   : > { %v2230_v42 = vadd.f32 %v2229_v20, %v2228_v24  ;;  %v2332_v10 = vsel %vm1241_vm7, %v2270_v37, 0.0 }
 0x2a6   : > { %v2330_v27 = vsel %vm1241_vm7, %v2269_v13, 0.0 }
 0x2a7   : > { %v2232_v59 = vadd.f32 %v2231_v28, %v2230_v42  ;;  %v2331_v21 = vadd.f32 %v2330_v27, %v2329_v62 }
 0x2a9   : > { %v2333_v44 = vadd.f32 %v2332_v10, %v2331_v21  ;;  %v2233_v45 = vrot.slane %v2232_v59, 4 }
 0x2ab   : > { %v2334_v33 = vrot.slane %v2333_v44, 4  ;;  %v2234_v53 = vadd.f32 %v2233_v45, %v2232_v59 }
 0x2ad   : > { %v2335_v48 = vadd.f32 %v2334_v33, %v2333_v44  ;;  %v2235_v16 = vrot.slane %v2234_v53, 2 }
 0x2af   : > { %v2336_v40 = vrot.slane %v2335_v48, 2  ;;  %v2236_v50 = vadd.f32 %v2235_v16, %v2234_v53 }
 0x2b1   : > { %v2337_v3 = vadd.f32 %v2336_v40, %v2335_v48  ;;  %v2237_v17 = vrot.slane %v2236_v50, 1 }
 0x2b3   : > { %v2338_v7 = vrot.slane %v2337_v3, 1  ;;  %v2238_v26 = vadd.f32 %v2237_v17, %v2236_v50 }
 0x2b5   : > { %v2339_v5 = vadd.f32 %v2338_v7, %v2337_v3 }
 0x2b7   : > { %2341 = vrot.lane.b32.xlu0 %v2339_v5, %s2738_s19 }
 0x329   : > { %v2342_v38 = vpop.permute.xlu0 %2341 }
 0x32a   : > { %v2344_v15 = vsel %vm1241_vm7, %v2238_v26, %v2342_v38 }
 0x32b   : > { %2346 = vst.msk [vmem:[%s490_s11] sm:$0x1] %vm2345_vm14, %v2344_v15 }
 0x32c PF: > { %s19_s29 = sadd.s32 1, %s2736_s29   ;;  %s4586_s27 = smov %s2732_s28 }
 0x32d   : > { %p16_p5 = scmp.ge.s32.totalorder %s19_s29, 4   ;;  %s4587_s28 = smov %s4589_s30 }
 0x32f   :  { %18 = sbr.rel (!%p16_p5) target bundleno = 2 (0x2), region = 96 }

</bundles_post_ra>
